<compile_context>
chip_gen: v7x
topology: tpu7x:2x2x1
jax: 0.10.0
libtpu: 0.0.40
codegen_flags: <defaults>
</compile_context>

<pallas_src>
import math
import functools

import jax
import jax.numpy as jnp
from jax.experimental import pallas as pl
from jax.experimental.pallas import tpu as pltpu


# Large-negative additive mask (review: derive from finfo rather than -1e9).
_MASK_VALUE = float(jnp.finfo(jnp.float32).min) / 2.0


# ----------------------------------------------------------------------------- kernel

def cross_attention_kernel(audio_ref, text_ref, bias_ref,
                           wq_ref, bq_ref, wk_ref, bk_ref, wv_ref, bv_ref,
                           wo_ref, bo_ref, o_ref,
                           q_scr, k_scr, v_scr,
                           *, n_heads, compute_dtype):
    """One batch-block: full multi-head cross-attention.

    audio_ref: (Bblk, Sq, Da)   text_ref: (Bblk, Sk, Dt)   bias_ref: (Bblk, 1, Sk)
    wq_ref: (Da, Da)  wk_ref/wv_ref: (Dt, Da)   (already transposed, scale folded in)
    bq/bk/bv_ref: (1, Da) f32   wo_ref: (H, Dh, Da)   bo_ref: (1, Da) f32
    o_ref: (Bblk, Sq, Da)
    q_scr: (Bblk*Sq, Da)  k_scr/v_scr: (Bblk*Sk, Da)   VMEM scratch in compute dtype.
    """
    Bblk, Sq, Da = audio_ref.shape
    Sk, Dt = text_ref.shape[1], text_ref.shape[2]
    Dh = Da // n_heads

    # ---- full-width projections (one big MXU matmul each, f32 accumulation) ----
    af = audio_ref[...].reshape(Bblk * Sq, Da).astype(compute_dtype)
    tf = text_ref[...].reshape(Bblk * Sk, Dt).astype(compute_dtype)

    q_scr[...] = (jnp.dot(af, wq_ref[...], preferred_element_type=jnp.float32)
                  + bq_ref[...]).astype(compute_dtype)          # scale folded into wq/bq
    k_scr[...] = (jnp.dot(tf, wk_ref[...], preferred_element_type=jnp.float32)
                  + bk_ref[...]).astype(compute_dtype)
    v_scr[...] = (jnp.dot(tf, wv_ref[...], preferred_element_type=jnp.float32)
                  + bv_ref[...]).astype(compute_dtype)

    bias = bias_ref[...]                                        # (Bblk, 1, Sk) f32

    # ---- per-head attention, out-proj accumulated in f32 (no (H,Sq,Da) slab) ----
    acc = jnp.zeros((Bblk * Sq, Da), jnp.float32)
    for h in range(n_heads):                                    # static, small H
        sl = slice(h * Dh, (h + 1) * Dh)
        qh = q_scr[:, sl].reshape(Bblk, Sq, Dh)
        kh = k_scr[:, sl].reshape(Bblk, Sk, Dh)
        vh = v_scr[:, sl].reshape(Bblk, Sk, Dh)

        s = jnp.einsum('bqd,bkd->bqk', qh, kh,
                       preferred_element_type=jnp.float32)       # (Bblk, Sq, Sk)
        # key_padding_mask as an additive bias (0 / finfo.min/2).
        # TODO(synk): rows whose keys are ALL masked differ from PyTorch (NaN there);
        #             here they fall back to uniform attention over masked keys.
        s = s + bias

        # Numerically stable softmax in f32; exact divide for the denominator.
        s = s - jnp.max(s, axis=-1, keepdims=True)
        p = jnp.exp(s)
        p = p / jnp.sum(p, axis=-1, keepdims=True)

        o = jnp.einsum('bqk,bkd->bqd', p.astype(compute_dtype), vh,
                       preferred_element_type=jnp.float32)       # (Bblk, Sq, Dh)

        # out_proj contribution of head h: (Bblk*Sq, Dh) @ (Dh, Da), full lane width.
        acc = acc + jnp.dot(o.reshape(Bblk * Sq, Dh).astype(compute_dtype),
                            wo_ref[h], preferred_element_type=jnp.float32)

    out = acc + bo_ref[...]
    o_ref[...] = out.reshape(Bblk, Sq, Da).astype(o_ref.dtype)


# ----------------------------------------------------------------------------- wrapper

def cross_attention(audio, text, q_w, k_w, v_w, in_bias, out_w, out_b, *,
                    n_heads, text_mask=None, compute_dtype=None, block_b=None):
    """Equivalent of CrossAttention.forward(audio, text, text_mask).

    Parameter layout matches torch.nn.MultiheadAttention(kdim=vdim=d_text):
      q_w: (Da, Da)  k_w: (Da, Dt)  v_w: (Da, Dt)  in_bias: (3*Da,)
      out_w: (Da, Da)  out_b: (Da,)
    text_mask: optional bool (B, Sk), True = ignore that key.
    """
    B, Sq, Da = audio.shape
    _, Sk, Dt = text.shape
    assert Da % n_heads == 0
    Dh = Da // n_heads

    if compute_dtype is None:
        # v5e: no native bf16 VPU -> keep f32 (drops cast traffic). bf16 elsewhere.
        try:
            kind = jax.devices()[0].device_kind.lower()
        except Exception:  # pragma: no cover
            kind = ""
        compute_dtype = jnp.float32 if ("v5 lite" in kind or "v5e" in kind) else jnp.bfloat16

    # Batch blocking: fold as much of B as possible into one grid step while keeping a
    # 2-way "parallel" axis for the two v7x TensorCores (no-op on single-TC v5e/v6e).
    if block_b is None:
        block_b = B // 2 if (B % 2 == 0 and B >= 2) else B
    assert B % block_b == 0
    grid = (B // block_b,)

    scale = 1.0 / math.sqrt(Dh)
    bq, bk, bv = jnp.split(in_bias.astype(jnp.float32), 3)

    # Pre-transposed weights (kernel does x @ W); 1/sqrt(Dh) folded into Wq and bq.
    wq_t = (q_w.T * scale).astype(compute_dtype)          # (Da, Da)
    wk_t = k_w.T.astype(compute_dtype)                    # (Dt, Da)
    wv_t = v_w.T.astype(compute_dtype)                    # (Dt, Da)
    bq_s = (bq * scale).reshape(1, Da)
    bk_s = bk.reshape(1, Da)
    bv_s = bv.reshape(1, Da)
    wo_h = out_w.T.reshape(n_heads, Dh, Da).astype(compute_dtype)   # per-head out-proj
    bo = out_b.reshape(1, Da).astype(jnp.float32)

    if text_mask is None:
        bias = jnp.zeros((B, 1, Sk), jnp.float32)
    else:
        bias = jnp.where(text_mask, _MASK_VALUE, 0.0).astype(jnp.float32).reshape(B, 1, Sk)

    kernel = functools.partial(cross_attention_kernel,
                               n_heads=n_heads, compute_dtype=compute_dtype)

    def run(single_buffer_weights):
        def wspec(shape):
            zero_map = lambda g: (0,) * len(shape)
            if single_buffer_weights:
                # Weights/biases are grid-invariant -> single-buffer them (VMEM win).
                return pl.BlockSpec(shape, zero_map, pipeline_mode=pl.Buffered(1))
            return pl.BlockSpec(shape, zero_map)

        return pl.pallas_call(
            kernel,
            out_shape=jax.ShapeDtypeStruct((B, Sq, Da), audio.dtype),
            grid=grid,
            in_specs=[
                pl.BlockSpec((block_b, Sq, Da), lambda g: (g, 0, 0)),   # audio
                pl.BlockSpec((block_b, Sk, Dt), lambda g: (g, 0, 0)),   # text
                pl.BlockSpec((block_b, 1, Sk), lambda g: (g, 0, 0)),    # mask bias
                wspec((Da, Da)), wspec((1, Da)),                        # wq, bq
                wspec((Dt, Da)), wspec((1, Da)),                        # wk, bk
                wspec((Dt, Da)), wspec((1, Da)),                        # wv, bv
                wspec((n_heads, Dh, Da)), wspec((1, Da)),               # wo, bo
            ],
            out_specs=pl.BlockSpec((block_b, Sq, Da), lambda g: (g, 0, 0)),
            scratch_shapes=[
                pltpu.VMEM((block_b * Sq, Da), compute_dtype),          # q
                pltpu.VMEM((block_b * Sk, Da), compute_dtype),          # k
                pltpu.VMEM((block_b * Sk, Da), compute_dtype),          # v
            ],
            compiler_params=pltpu.CompilerParams(
                dimension_semantics=("parallel",)),                     # megacore on v7x
        )(audio, text, bias, wq_t, bq_s, wk_t, bk_s, wv_t, bv_s, wo_h, bo)

    try:
        return run(True)
    except Exception:
        # Fallback if this JAX version rejects single-buffered weight BlockSpecs.
        return run(False)


# --------------------------------------------------------------------- pure-JAX reference

def cross_attention_reference(audio, text, q_w, k_w, v_w, in_bias, out_w, out_b,
                              n_heads, text_mask=None):
    B, Sq, Da = audio.shape
    Sk = text.shape[1]
    Dh = Da // n_heads
    bq, bk, bv = jnp.split(in_bias, 3)
    q = audio @ q_w.T + bq
    k = text @ k_w.T + bk
    v = text @ v_w.T + bv
    q = q.reshape(B, Sq, n_heads, Dh).transpose(0, 2, 1, 3)
    k = k.reshape(B, Sk, n_heads, Dh).transpose(0, 2, 1, 3)
    v = v.reshape(B, Sk, n_heads, Dh).transpose(0, 2, 1, 3)
    s = jnp.einsum('bhqd,bhkd->bhqk', q, k) / math.sqrt(Dh)
    if text_mask is not None:
        s = s + jnp.where(text_mask, _MASK_VALUE, 0.0)[:, None, None, :]
    p = jax.nn.softmax(s, axis=-1)
    o = jnp.einsum('bhqk,bhkd->bhqd', p, v)
    o = o.transpose(0, 2, 1, 3).reshape(B, Sq, Da)
    return o @ out_w.T + out_b


# ------------------------------------------------------------------------------ main

if __name__ == "__main__":
    B, Sq, Sk = 2, 16, 24
    d_audio, d_text, n_heads = 128, 64, 4      # d_audio=128 keeps the output lane-dense

    key = jax.random.PRNGKey(0)
    ks = jax.random.split(key, 8)
    audio = jax.random.normal(ks[0], (B, Sq, d_audio), jnp.float32)
    text = jax.random.normal(ks[1], (B, Sk, d_text), jnp.float32)

    std = 0.05
    q_w = (std * jax.random.normal(ks[2], (d_audio, d_audio))).astype(jnp.float32)
    k_w = (std * jax.random.normal(ks[3], (d_audio, d_text))).astype(jnp.float32)
    v_w = (std * jax.random.normal(ks[4], (d_audio, d_text))).astype(jnp.float32)
    in_bias = (std * jax.random.normal(ks[5], (3 * d_audio,))).astype(jnp.float32)
    out_w = (std * jax.random.normal(ks[6], (d_audio, d_audio))).astype(jnp.float32)
    out_b = (std * jax.random.normal(ks[7], (d_audio,))).astype(jnp.float32)

    # key-padding mask: ignore the last 6 text tokens of the second example
    text_mask = jnp.zeros((B, Sk), bool).at[1, Sk - 6:].set(True)

    out = cross_attention(audio, text, q_w, k_w, v_w, in_bias, out_w, out_b,
                          n_heads=n_heads, text_mask=text_mask)
    out = jax.block_until_ready(out)

    ref = cross_attention_reference(audio, text, q_w, k_w, v_w, in_bias, out_w, out_b,
                                    n_heads, text_mask=text_mask)

    assert out.shape == (B, Sq, d_audio), out.shape
    assert bool(jnp.all(jnp.isfinite(out)))
    # bf16 matmul operands (f32 accumulation, exact softmax divide) vs f32 reference
    err = float(jnp.max(jnp.abs(out - ref)))
    assert err < 5e-2, err
    print("KERNEL_OK")
</pallas_src>

<mosaic_0001>
module attributes {stable_mosaic.version = 11 : i64} {
  func.func @cross_attention_kernel(%arg0: i32, %arg1: memref<1x16x128xf32, #tpu.memory_space<vmem>>, %arg2: memref<1x24x64xf32, #tpu.memory_space<vmem>>, %arg3: memref<1x1x24xf32, #tpu.memory_space<vmem>>, %arg4: memref<128x128xbf16, #tpu.memory_space<vmem>>, %arg5: memref<1x128xf32, #tpu.memory_space<vmem>>, %arg6: memref<64x128xbf16, #tpu.memory_space<vmem>>, %arg7: memref<1x128xf32, #tpu.memory_space<vmem>>, %arg8: memref<64x128xbf16, #tpu.memory_space<vmem>>, %arg9: memref<1x128xf32, #tpu.memory_space<vmem>>, %arg10: memref<4x32x128xbf16, #tpu.memory_space<vmem>>, %arg11: memref<1x128xf32, #tpu.memory_space<vmem>>, %arg12: memref<1x16x128xf32, #tpu.memory_space<vmem>>, %arg13: memref<16x128xbf16, #tpu.memory_space<vmem>>, %arg14: memref<24x128xbf16, #tpu.memory_space<vmem>>, %arg15: memref<24x128xbf16, #tpu.memory_space<vmem>>) attributes {dimension_semantics = [#tpu.dimension_semantics<parallel>], iteration_bounds = array<i64: 2>, scalar_prefetch = 0 : i64, scratch_operands = 3 : i64, tpu.core_type = #tpu.core_type<tc>, window_params = [{transform_indices = @transform_0, window_bounds = array<i64: 1, 16, 128>}, {transform_indices = @transform_1, window_bounds = array<i64: 1, 24, 64>}, {transform_indices = @transform_2, window_bounds = array<i64: 1, 1, 24>}, {pipeline_mode = #tpu.pipeline_mode<synchronous>, transform_indices = @transform_3, window_bounds = array<i64: 128, 128>}, {pipeline_mode = #tpu.pipeline_mode<synchronous>, transform_indices = @transform_4, window_bounds = array<i64: 1, 128>}, {pipeline_mode = #tpu.pipeline_mode<synchronous>, transform_indices = @transform_5, window_bounds = array<i64: 64, 128>}, {pipeline_mode = #tpu.pipeline_mode<synchronous>, transform_indices = @transform_6, window_bounds = array<i64: 1, 128>}, {pipeline_mode = #tpu.pipeline_mode<synchronous>, transform_indices = @transform_7, window_bounds = array<i64: 64, 128>}, {pipeline_mode = #tpu.pipeline_mode<synchronous>, transform_indices = @transform_8, window_bounds = array<i64: 1, 128>}, {pipeline_mode = #tpu.pipeline_mode<synchronous>, transform_indices = @transform_9, window_bounds = array<i64: 4, 32, 128>}, {pipeline_mode = #tpu.pipeline_mode<synchronous>, transform_indices = @transform_10, window_bounds = array<i64: 1, 128>}, {transform_indices = @transform_11, window_bounds = array<i64: 1, 16, 128>}]} {
    %c0 = arith.constant 0 : index
    %c0_0 = arith.constant 0 : index
    %c0_1 = arith.constant 0 : index
    %0 = vector.load %arg1[%c0, %c0_0, %c0_1] : memref<1x16x128xf32, #tpu.memory_space<vmem>>, vector<1x16x128xf32>
    %1 = vector.shape_cast %0 : vector<1x16x128xf32> to vector<16x128xf32>
    %2 = arith.truncf %1 : vector<16x128xf32> to vector<16x128xbf16>
    %c0_2 = arith.constant 0 : index
    %c0_3 = arith.constant 0 : index
    %c0_4 = arith.constant 0 : index
    %3 = vector.load %arg2[%c0_2, %c0_3, %c0_4] : memref<1x24x64xf32, #tpu.memory_space<vmem>>, vector<1x24x64xf32>
    %4 = vector.shape_cast %3 : vector<1x24x64xf32> to vector<24x64xf32>
    %5 = arith.truncf %4 : vector<24x64xf32> to vector<24x64xbf16>
    %c0_5 = arith.constant 0 : index
    %c0_6 = arith.constant 0 : index
    %6 = vector.load %arg4[%c0_5, %c0_6] : memref<128x128xbf16, #tpu.memory_space<vmem>>, vector<128x128xbf16>
    %cst = arith.constant dense<0.000000e+00> : vector<16x128xf32>
    %7 = tpu.matmul %2, %6, %cst {dimension_numbers = #tpu.dot_dimension_numbers<[1], [0], [0], [1], [0, 0, 1, 1], [], []>} : vector<16x128xbf16>, vector<128x128xbf16>, vector<16x128xf32> -> vector<16x128xf32>
    %c0_7 = arith.constant 0 : index
    %c0_8 = arith.constant 0 : index
    %8 = vector.load %arg5[%c0_7, %c0_8] : memref<1x128xf32, #tpu.memory_space<vmem>>, vector<1x128xf32>
    %9 = vector.broadcast %8 : vector<1x128xf32> to vector<16x128xf32>
    %10 = arith.addf %7, %9 : vector<16x128xf32>
    %11 = arith.truncf %10 : vector<16x128xf32> to vector<16x128xbf16>
    %c0_9 = arith.constant 0 : index
    %c0_10 = arith.constant 0 : index
    %12 = vector.load %arg13[%c0_9, %c0_10] : memref<16x128xbf16, #tpu.memory_space<vmem>>, vector<16x128xbf16>
    tpu.vector_store %arg13[%c0_9, %c0_10], %11 {strides = array<i32>} : memref<16x128xbf16, #tpu.memory_space<vmem>>, vector<16x128xbf16>,
    %c0_11 = arith.constant 0 : index
    %c0_12 = arith.constant 0 : index
    %13 = vector.load %arg6[%c0_11, %c0_12] : memref<64x128xbf16, #tpu.memory_space<vmem>>, vector<64x128xbf16>
    %cst_13 = arith.constant dense<0.000000e+00> : vector<24x128xf32>
    %14 = tpu.matmul %5, %13, %cst_13 {dimension_numbers = #tpu.dot_dimension_numbers<[1], [0], [0], [1], [0, 0, 1, 1], [], []>} : vector<24x64xbf16>, vector<64x128xbf16>, vector<24x128xf32> -> vector<24x128xf32>
    %c0_14 = arith.constant 0 : index
    %c0_15 = arith.constant 0 : index
    %15 = vector.load %arg7[%c0_14, %c0_15] : memref<1x128xf32, #tpu.memory_space<vmem>>, vector<1x128xf32>
    %16 = vector.broadcast %15 : vector<1x128xf32> to vector<24x128xf32>
    %17 = arith.addf %14, %16 : vector<24x128xf32>
    %18 = arith.truncf %17 : vector<24x128xf32> to vector<24x128xbf16>
    %c0_16 = arith.constant 0 : index
    %c0_17 = arith.constant 0 : index
    %19 = vector.load %arg14[%c0_16, %c0_17] : memref<24x128xbf16, #tpu.memory_space<vmem>>, vector<24x128xbf16>
    tpu.vector_store %arg14[%c0_16, %c0_17], %18 {strides = array<i32>} : memref<24x128xbf16, #tpu.memory_space<vmem>>, vector<24x128xbf16>,
    %c0_18 = arith.constant 0 : index
    %c0_19 = arith.constant 0 : index
    %20 = vector.load %arg8[%c0_18, %c0_19] : memref<64x128xbf16, #tpu.memory_space<vmem>>, vector<64x128xbf16>
    %cst_20 = arith.constant dense<0.000000e+00> : vector<24x128xf32>
    %21 = tpu.matmul %5, %20, %cst_20 {dimension_numbers = #tpu.dot_dimension_numbers<[1], [0], [0], [1], [0, 0, 1, 1], [], []>} : vector<24x64xbf16>, vector<64x128xbf16>, vector<24x128xf32> -> vector<24x128xf32>
    %c0_21 = arith.constant 0 : index
    %c0_22 = arith.constant 0 : index
    %22 = vector.load %arg9[%c0_21, %c0_22] : memref<1x128xf32, #tpu.memory_space<vmem>>, vector<1x128xf32>
    %23 = vector.broadcast %22 : vector<1x128xf32> to vector<24x128xf32>
    %24 = arith.addf %21, %23 : vector<24x128xf32>
    %25 = arith.truncf %24 : vector<24x128xf32> to vector<24x128xbf16>
    %c0_23 = arith.constant 0 : index
    %c0_24 = arith.constant 0 : index
    %26 = vector.load %arg15[%c0_23, %c0_24] : memref<24x128xbf16, #tpu.memory_space<vmem>>, vector<24x128xbf16>
    tpu.vector_store %arg15[%c0_23, %c0_24], %25 {strides = array<i32>} : memref<24x128xbf16, #tpu.memory_space<vmem>>, vector<24x128xbf16>,
    %c0_25 = arith.constant 0 : index
    %c0_26 = arith.constant 0 : index
    %c0_27 = arith.constant 0 : index
    %27 = vector.load %arg3[%c0_25, %c0_26, %c0_27] : memref<1x1x24xf32, #tpu.memory_space<vmem>>, vector<1x1x24xf32>
    %cst_28 = arith.constant 0.000000e+00 : f32
    %28 = vector.broadcast %cst_28 : f32 to vector<16x128xf32>
    %c0_29 = arith.constant 0 : index
    %c0_30 = arith.constant 0 : index
    %29 = vector.load %arg13[%c0_29, %c0_30] : memref<16x128xbf16, #tpu.memory_space<vmem>>, vector<16x32xbf16>
    %30 = vector.shape_cast %29 : vector<16x32xbf16> to vector<1x16x32xbf16>
    %c0_31 = arith.constant 0 : index
    %c0_32 = arith.constant 0 : index
    %31 = vector.load %arg14[%c0_31, %c0_32] : memref<24x128xbf16, #tpu.memory_space<vmem>>, vector<24x32xbf16>
    %32 = vector.shape_cast %31 : vector<24x32xbf16> to vector<1x24x32xbf16>
    %c0_33 = arith.constant 0 : index
    %c0_34 = arith.constant 0 : index
    %33 = vector.load %arg15[%c0_33, %c0_34] : memref<24x128xbf16, #tpu.memory_space<vmem>>, vector<24x32xbf16>
    %34 = vector.shape_cast %33 : vector<24x32xbf16> to vector<1x24x32xbf16>
    "tpu.trace_start"() <{level = 10 : i32, message = "bqd,bkd->bqk"}> : () -> ()
    %cst_35 = arith.constant dense<0.000000e+00> : vector<1x16x24xf32>
    %35 = tpu.matmul %30, %32, %cst_35 {dimension_numbers = #tpu.dot_dimension_numbers<[2], [2], [1], [1], [0, 0, 0, 1, 1, 1], [0], [0]>} : vector<1x16x32xbf16>, vector<1x24x32xbf16>, vector<1x16x24xf32> -> vector<1x16x24xf32>
    "tpu.trace_stop"() : () -> ()
    %36 = vector.broadcast %27 : vector<1x1x24xf32> to vector<1x16x24xf32>
    %37 = arith.addf %35, %36 : vector<1x16x24xf32>
    %cst_36 = arith.constant dense<0xFF800000> : vector<1x16xf32>
    %38 = vector.multi_reduction <maximumf>, %37, %cst_36 [2] : vector<1x16x24xf32> to vector<1x16xf32>
    %39 = vector.shape_cast %38 : vector<1x16xf32> to vector<1x16x1xf32>
    %40 = vector.broadcast %39 : vector<1x16x1xf32> to vector<1x16x24xf32>
    %41 = arith.subf %37, %40 : vector<1x16x24xf32>
    %42 = math.exp %41 : vector<1x16x24xf32>
    %cst_37 = arith.constant dense<0.000000e+00> : vector<1x16xf32>
    %43 = vector.multi_reduction <add>, %42, %cst_37 [2] : vector<1x16x24xf32> to vector<1x16xf32>
    %44 = vector.shape_cast %43 : vector<1x16xf32> to vector<1x16x1xf32>
    %45 = vector.broadcast %44 : vector<1x16x1xf32> to vector<1x16x24xf32>
    %46 = arith.divf %42, %45 : vector<1x16x24xf32>
    %47 = arith.truncf %46 : vector<1x16x24xf32> to vector<1x16x24xbf16>
    "tpu.trace_start"() <{level = 10 : i32, message = "bqk,bkd->bqd"}> : () -> ()
    %cst_38 = arith.constant dense<0.000000e+00> : vector<1x16x32xf32>
    %48 = tpu.matmul %47, %34, %cst_38 {dimension_numbers = #tpu.dot_dimension_numbers<[2], [1], [1], [2], [0, 0, 0, 1, 1, 2], [0], [0]>} : vector<1x16x24xbf16>, vector<1x24x32xbf16>, vector<1x16x32xf32> -> vector<1x16x32xf32>
    "tpu.trace_stop"() : () -> ()
    %49 = vector.shape_cast %48 : vector<1x16x32xf32> to vector<16x32xf32>
    %50 = arith.truncf %49 : vector<16x32xf32> to vector<16x32xbf16>
    %c0_39 = arith.constant 0 : index
    %c0_40 = arith.constant 0 : index
    %c0_41 = arith.constant 0 : index
    %51 = vector.load %arg10[%c0_39, %c0_40, %c0_41] : memref<4x32x128xbf16, #tpu.memory_space<vmem>>, vector<1x32x128xbf16>
    %52 = vector.shape_cast %51 : vector<1x32x128xbf16> to vector<32x128xbf16>
    %cst_42 = arith.constant dense<0.000000e+00> : vector<16x128xf32>
    %53 = tpu.matmul %50, %52, %cst_42 {dimension_numbers = #tpu.dot_dimension_numbers<[1], [0], [0], [1], [0, 0, 1, 1], [], []>} : vector<16x32xbf16>, vector<32x128xbf16>, vector<16x128xf32> -> vector<16x128xf32>
    %54 = arith.addf %28, %53 : vector<16x128xf32>
    %c0_43 = arith.constant 0 : index
    %c32 = arith.constant 32 : index
    %55 = vector.load %arg13[%c0_43, %c32] : memref<16x128xbf16, #tpu.memory_space<vmem>>, vector<16x32xbf16>
    %56 = vector.shape_cast %55 : vector<16x32xbf16> to vector<1x16x32xbf16>
    %c0_44 = arith.constant 0 : index
    %c32_45 = arith.constant 32 : index
    %57 = vector.load %arg14[%c0_44, %c32_45] : memref<24x128xbf16, #tpu.memory_space<vmem>>, vector<24x32xbf16>
    %58 = vector.shape_cast %57 : vector<24x32xbf16> to vector<1x24x32xbf16>
    %c0_46 = arith.constant 0 : index
    %c32_47 = arith.constant 32 : index
    %59 = vector.load %arg15[%c0_46, %c32_47] : memref<24x128xbf16, #tpu.memory_space<vmem>>, vector<24x32xbf16>
    %60 = vector.shape_cast %59 : vector<24x32xbf16> to vector<1x24x32xbf16>
    "tpu.trace_start"() <{level = 10 : i32, message = "bqd,bkd->bqk"}> : () -> ()
    %cst_48 = arith.constant dense<0.000000e+00> : vector<1x16x24xf32>
    %61 = tpu.matmul %56, %58, %cst_48 {dimension_numbers = #tpu.dot_dimension_numbers<[2], [2], [1], [1], [0, 0, 0, 1, 1, 1], [0], [0]>} : vector<1x16x32xbf16>, vector<1x24x32xbf16>, vector<1x16x24xf32> -> vector<1x16x24xf32>
    "tpu.trace_stop"() : () -> ()
    %62 = vector.broadcast %27 : vector<1x1x24xf32> to vector<1x16x24xf32>
    %63 = arith.addf %61, %62 : vector<1x16x24xf32>
    %cst_49 = arith.constant dense<0xFF800000> : vector<1x16xf32>
    %64 = vector.multi_reduction <maximumf>, %63, %cst_49 [2] : vector<1x16x24xf32> to vector<1x16xf32>
    %65 = vector.shape_cast %64 : vector<1x16xf32> to vector<1x16x1xf32>
    %66 = vector.broadcast %65 : vector<1x16x1xf32> to vector<1x16x24xf32>
    %67 = arith.subf %63, %66 : vector<1x16x24xf32>
    %68 = math.exp %67 : vector<1x16x24xf32>
    %cst_50 = arith.constant dense<0.000000e+00> : vector<1x16xf32>
    %69 = vector.multi_reduction <add>, %68, %cst_50 [2] : vector<1x16x24xf32> to vector<1x16xf32>
    %70 = vector.shape_cast %69 : vector<1x16xf32> to vector<1x16x1xf32>
    %71 = vector.broadcast %70 : vector<1x16x1xf32> to vector<1x16x24xf32>
    %72 = arith.divf %68, %71 : vector<1x16x24xf32>
    %73 = arith.truncf %72 : vector<1x16x24xf32> to vector<1x16x24xbf16>
    "tpu.trace_start"() <{level = 10 : i32, message = "bqk,bkd->bqd"}> : () -> ()
    %cst_51 = arith.constant dense<0.000000e+00> : vector<1x16x32xf32>
    %74 = tpu.matmul %73, %60, %cst_51 {dimension_numbers = #tpu.dot_dimension_numbers<[2], [1], [1], [2], [0, 0, 0, 1, 1, 2], [0], [0]>} : vector<1x16x24xbf16>, vector<1x24x32xbf16>, vector<1x16x32xf32> -> vector<1x16x32xf32>
    "tpu.trace_stop"() : () -> ()
    %75 = vector.shape_cast %74 : vector<1x16x32xf32> to vector<16x32xf32>
    %76 = arith.truncf %75 : vector<16x32xf32> to vector<16x32xbf16>
    %c1 = arith.constant 1 : index
    %c0_52 = arith.constant 0 : index
    %c0_53 = arith.constant 0 : index
    %77 = vector.load %arg10[%c1, %c0_52, %c0_53] : memref<4x32x128xbf16, #tpu.memory_space<vmem>>, vector<1x32x128xbf16>
    %78 = vector.shape_cast %77 : vector<1x32x128xbf16> to vector<32x128xbf16>
    %cst_54 = arith.constant dense<0.000000e+00> : vector<16x128xf32>
    %79 = tpu.matmul %76, %78, %cst_54 {dimension_numbers = #tpu.dot_dimension_numbers<[1], [0], [0], [1], [0, 0, 1, 1], [], []>} : vector<16x32xbf16>, vector<32x128xbf16>, vector<16x128xf32> -> vector<16x128xf32>
    %80 = arith.addf %54, %79 : vector<16x128xf32>
    %c0_55 = arith.constant 0 : index
    %c64 = arith.constant 64 : index
    %81 = vector.load %arg13[%c0_55, %c64] : memref<16x128xbf16, #tpu.memory_space<vmem>>, vector<16x32xbf16>
    %82 = vector.shape_cast %81 : vector<16x32xbf16> to vector<1x16x32xbf16>
    %c0_56 = arith.constant 0 : index
    %c64_57 = arith.constant 64 : index
    %83 = vector.load %arg14[%c0_56, %c64_57] : memref<24x128xbf16, #tpu.memory_space<vmem>>, vector<24x32xbf16>
    %84 = vector.shape_cast %83 : vector<24x32xbf16> to vector<1x24x32xbf16>
    %c0_58 = arith.constant 0 : index
    %c64_59 = arith.constant 64 : index
    %85 = vector.load %arg15[%c0_58, %c64_59] : memref<24x128xbf16, #tpu.memory_space<vmem>>, vector<24x32xbf16>
    %86 = vector.shape_cast %85 : vector<24x32xbf16> to vector<1x24x32xbf16>
    "tpu.trace_start"() <{level = 10 : i32, message = "bqd,bkd->bqk"}> : () -> ()
    %cst_60 = arith.constant dense<0.000000e+00> : vector<1x16x24xf32>
    %87 = tpu.matmul %82, %84, %cst_60 {dimension_numbers = #tpu.dot_dimension_numbers<[2], [2], [1], [1], [0, 0, 0, 1, 1, 1], [0], [0]>} : vector<1x16x32xbf16>, vector<1x24x32xbf16>, vector<1x16x24xf32> -> vector<1x16x24xf32>
    "tpu.trace_stop"() : () -> ()
    %88 = vector.broadcast %27 : vector<1x1x24xf32> to vector<1x16x24xf32>
    %89 = arith.addf %87, %88 : vector<1x16x24xf32>
    %cst_61 = arith.constant dense<0xFF800000> : vector<1x16xf32>
    %90 = vector.multi_reduction <maximumf>, %89, %cst_61 [2] : vector<1x16x24xf32> to vector<1x16xf32>
    %91 = vector.shape_cast %90 : vector<1x16xf32> to vector<1x16x1xf32>
    %92 = vector.broadcast %91 : vector<1x16x1xf32> to vector<1x16x24xf32>
    %93 = arith.subf %89, %92 : vector<1x16x24xf32>
    %94 = math.exp %93 : vector<1x16x24xf32>
    %cst_62 = arith.constant dense<0.000000e+00> : vector<1x16xf32>
    %95 = vector.multi_reduction <add>, %94, %cst_62 [2] : vector<1x16x24xf32> to vector<1x16xf32>
    %96 = vector.shape_cast %95 : vector<1x16xf32> to vector<1x16x1xf32>
    %97 = vector.broadcast %96 : vector<1x16x1xf32> to vector<1x16x24xf32>
    %98 = arith.divf %94, %97 : vector<1x16x24xf32>
    %99 = arith.truncf %98 : vector<1x16x24xf32> to vector<1x16x24xbf16>
    "tpu.trace_start"() <{level = 10 : i32, message = "bqk,bkd->bqd"}> : () -> ()
    %cst_63 = arith.constant dense<0.000000e+00> : vector<1x16x32xf32>
    %100 = tpu.matmul %99, %86, %cst_63 {dimension_numbers = #tpu.dot_dimension_numbers<[2], [1], [1], [2], [0, 0, 0, 1, 1, 2], [0], [0]>} : vector<1x16x24xbf16>, vector<1x24x32xbf16>, vector<1x16x32xf32> -> vector<1x16x32xf32>
    "tpu.trace_stop"() : () -> ()
    %101 = vector.shape_cast %100 : vector<1x16x32xf32> to vector<16x32xf32>
    %102 = arith.truncf %101 : vector<16x32xf32> to vector<16x32xbf16>
    %c2 = arith.constant 2 : index
    %c0_64 = arith.constant 0 : index
    %c0_65 = arith.constant 0 : index
    %103 = vector.load %arg10[%c2, %c0_64, %c0_65] : memref<4x32x128xbf16, #tpu.memory_space<vmem>>, vector<1x32x128xbf16>
    %104 = vector.shape_cast %103 : vector<1x32x128xbf16> to vector<32x128xbf16>
    %cst_66 = arith.constant dense<0.000000e+00> : vector<16x128xf32>
    %105 = tpu.matmul %102, %104, %cst_66 {dimension_numbers = #tpu.dot_dimension_numbers<[1], [0], [0], [1], [0, 0, 1, 1], [], []>} : vector<16x32xbf16>, vector<32x128xbf16>, vector<16x128xf32> -> vector<16x128xf32>
    %106 = arith.addf %80, %105 : vector<16x128xf32>
    %c0_67 = arith.constant 0 : index
    %c96 = arith.constant 96 : index
    %107 = vector.load %arg13[%c0_67, %c96] : memref<16x128xbf16, #tpu.memory_space<vmem>>, vector<16x32xbf16>
    %108 = vector.shape_cast %107 : vector<16x32xbf16> to vector<1x16x32xbf16>
    %c0_68 = arith.constant 0 : index
    %c96_69 = arith.constant 96 : index
    %109 = vector.load %arg14[%c0_68, %c96_69] : memref<24x128xbf16, #tpu.memory_space<vmem>>, vector<24x32xbf16>
    %110 = vector.shape_cast %109 : vector<24x32xbf16> to vector<1x24x32xbf16>
    %c0_70 = arith.constant 0 : index
    %c96_71 = arith.constant 96 : index
    %111 = vector.load %arg15[%c0_70, %c96_71] : memref<24x128xbf16, #tpu.memory_space<vmem>>, vector<24x32xbf16>
    %112 = vector.shape_cast %111 : vector<24x32xbf16> to vector<1x24x32xbf16>
    "tpu.trace_start"() <{level = 10 : i32, message = "bqd,bkd->bqk"}> : () -> ()
    %cst_72 = arith.constant dense<0.000000e+00> : vector<1x16x24xf32>
    %113 = tpu.matmul %108, %110, %cst_72 {dimension_numbers = #tpu.dot_dimension_numbers<[2], [2], [1], [1], [0, 0, 0, 1, 1, 1], [0], [0]>} : vector<1x16x32xbf16>, vector<1x24x32xbf16>, vector<1x16x24xf32> -> vector<1x16x24xf32>
    "tpu.trace_stop"() : () -> ()
    %114 = vector.broadcast %27 : vector<1x1x24xf32> to vector<1x16x24xf32>
    %115 = arith.addf %113, %114 : vector<1x16x24xf32>
    %cst_73 = arith.constant dense<0xFF800000> : vector<1x16xf32>
    %116 = vector.multi_reduction <maximumf>, %115, %cst_73 [2] : vector<1x16x24xf32> to vector<1x16xf32>
    %117 = vector.shape_cast %116 : vector<1x16xf32> to vector<1x16x1xf32>
    %118 = vector.broadcast %117 : vector<1x16x1xf32> to vector<1x16x24xf32>
    %119 = arith.subf %115, %118 : vector<1x16x24xf32>
    %120 = math.exp %119 : vector<1x16x24xf32>
    %cst_74 = arith.constant dense<0.000000e+00> : vector<1x16xf32>
    %121 = vector.multi_reduction <add>, %120, %cst_74 [2] : vector<1x16x24xf32> to vector<1x16xf32>
    %122 = vector.shape_cast %121 : vector<1x16xf32> to vector<1x16x1xf32>
    %123 = vector.broadcast %122 : vector<1x16x1xf32> to vector<1x16x24xf32>
    %124 = arith.divf %120, %123 : vector<1x16x24xf32>
    %125 = arith.truncf %124 : vector<1x16x24xf32> to vector<1x16x24xbf16>
    "tpu.trace_start"() <{level = 10 : i32, message = "bqk,bkd->bqd"}> : () -> ()
    %cst_75 = arith.constant dense<0.000000e+00> : vector<1x16x32xf32>
    %126 = tpu.matmul %125, %112, %cst_75 {dimension_numbers = #tpu.dot_dimension_numbers<[2], [1], [1], [2], [0, 0, 0, 1, 1, 2], [0], [0]>} : vector<1x16x24xbf16>, vector<1x24x32xbf16>, vector<1x16x32xf32> -> vector<1x16x32xf32>
    "tpu.trace_stop"() : () -> ()
    %127 = vector.shape_cast %126 : vector<1x16x32xf32> to vector<16x32xf32>
    %128 = arith.truncf %127 : vector<16x32xf32> to vector<16x32xbf16>
    %c3 = arith.constant 3 : index
    %c0_76 = arith.constant 0 : index
    %c0_77 = arith.constant 0 : index
    %129 = vector.load %arg10[%c3, %c0_76, %c0_77] : memref<4x32x128xbf16, #tpu.memory_space<vmem>>, vector<1x32x128xbf16>
    %130 = vector.shape_cast %129 : vector<1x32x128xbf16> to vector<32x128xbf16>
    %cst_78 = arith.constant dense<0.000000e+00> : vector<16x128xf32>
    %131 = tpu.matmul %128, %130, %cst_78 {dimension_numbers = #tpu.dot_dimension_numbers<[1], [0], [0], [1], [0, 0, 1, 1], [], []>} : vector<16x32xbf16>, vector<32x128xbf16>, vector<16x128xf32> -> vector<16x128xf32>
    %132 = arith.addf %106, %131 : vector<16x128xf32>
    %c0_79 = arith.constant 0 : index
    %c0_80 = arith.constant 0 : index
    %133 = vector.load %arg11[%c0_79, %c0_80] : memref<1x128xf32, #tpu.memory_space<vmem>>, vector<1x128xf32>
    %134 = vector.broadcast %133 : vector<1x128xf32> to vector<16x128xf32>
    %135 = arith.addf %132, %134 : vector<16x128xf32>
    %136 = vector.shape_cast %135 : vector<16x128xf32> to vector<1x16x128xf32>
    %c0_81 = arith.constant 0 : index
    %c0_82 = arith.constant 0 : index
    %c0_83 = arith.constant 0 : index
    %137 = vector.load %arg12[%c0_81, %c0_82, %c0_83] : memref<1x16x128xf32, #tpu.memory_space<vmem>>, vector<1x16x128xf32>
    tpu.vector_store %arg12[%c0_81, %c0_82, %c0_83], %136 {strides = array<i32>} : memref<1x16x128xf32, #tpu.memory_space<vmem>>, vector<1x16x128xf32>,
    return
  }
  func.func @transform_0(%arg0: i32) -> (i32, i32, i32) {
    %c0_i32 = arith.constant 0 : i32
    %c0_i32_0 = arith.constant 0 : i32
    %c0_i32_1 = arith.constant 0 : i32
    return %arg0, %c0_i32, %c0_i32_0 : i32, i32, i32
  }
  func.func @transform_1(%arg0: i32) -> (i32, i32, i32) {
    %c0_i32 = arith.constant 0 : i32
    %c0_i32_0 = arith.constant 0 : i32
    %c0_i32_1 = arith.constant 0 : i32
    return %arg0, %c0_i32, %c0_i32_0 : i32, i32, i32
  }
  func.func @transform_2(%arg0: i32) -> (i32, i32, i32) {
    %c0_i32 = arith.constant 0 : i32
    %c0_i32_0 = arith.constant 0 : i32
    %c0_i32_1 = arith.constant 0 : i32
    return %arg0, %c0_i32, %c0_i32_0 : i32, i32, i32
  }
  func.func @transform_3(%arg0: i32) -> (i32, i32) {
    %c0_i32 = arith.constant 0 : i32
    %c0_i32_0 = arith.constant 0 : i32
    %c0_i32_1 = arith.constant 0 : i32
    return %c0_i32, %c0_i32_0 : i32, i32
  }
  func.func @transform_4(%arg0: i32) -> (i32, i32) {
    %c0_i32 = arith.constant 0 : i32
    %c0_i32_0 = arith.constant 0 : i32
    %c0_i32_1 = arith.constant 0 : i32
    return %c0_i32, %c0_i32_0 : i32, i32
  }
  func.func @transform_5(%arg0: i32) -> (i32, i32) {
    %c0_i32 = arith.constant 0 : i32
    %c0_i32_0 = arith.constant 0 : i32
    %c0_i32_1 = arith.constant 0 : i32
    return %c0_i32, %c0_i32_0 : i32, i32
  }
  func.func @transform_6(%arg0: i32) -> (i32, i32) {
    %c0_i32 = arith.constant 0 : i32
    %c0_i32_0 = arith.constant 0 : i32
    %c0_i32_1 = arith.constant 0 : i32
    return %c0_i32, %c0_i32_0 : i32, i32
  }
  func.func @transform_7(%arg0: i32) -> (i32, i32) {
    %c0_i32 = arith.constant 0 : i32
    %c0_i32_0 = arith.constant 0 : i32
    %c0_i32_1 = arith.constant 0 : i32
    return %c0_i32, %c0_i32_0 : i32, i32
  }
  func.func @transform_8(%arg0: i32) -> (i32, i32) {
    %c0_i32 = arith.constant 0 : i32
    %c0_i32_0 = arith.constant 0 : i32
    %c0_i32_1 = arith.constant 0 : i32
    return %c0_i32, %c0_i32_0 : i32, i32
  }
  func.func @transform_9(%arg0: i32) -> (i32, i32, i32) {
    %c0_i32 = arith.constant 0 : i32
    %c0_i32_0 = arith.constant 0 : i32
    %c0_i32_1 = arith.constant 0 : i32
    %c0_i32_2 = arith.constant 0 : i32
    return %c0_i32, %c0_i32_0, %c0_i32_1 : i32, i32, i32
  }
  func.func @transform_10(%arg0: i32) -> (i32, i32) {
    %c0_i32 = arith.constant 0 : i32
    %c0_i32_0 = arith.constant 0 : i32
    %c0_i32_1 = arith.constant 0 : i32
    return %c0_i32, %c0_i32_0 : i32, i32
  }
  func.func @transform_11(%arg0: i32) -> (i32, i32, i32) {
    %c0_i32 = arith.constant 0 : i32
    %c0_i32_0 = arith.constant 0 : i32
    %c0_i32_1 = arith.constant 0 : i32
    return %arg0, %c0_i32, %c0_i32_0 : i32, i32, i32
  }
}

module attributes {stable_mosaic.version = 11 : i64} {
  func.func @cross_attention_kernel(%arg0: i32, %arg1: memref<1x16x128xf32, #tpu.memory_space<vmem>>, %arg2: memref<1x24x64xf32, #tpu.memory_space<vmem>>, %arg3: memref<1x1x24xf32, #tpu.memory_space<vmem>>, %arg4: memref<128x128xbf16, #tpu.memory_space<vmem>>, %arg5: memref<1x128xf32, #tpu.memory_space<vmem>>, %arg6: memref<64x128xbf16, #tpu.memory_space<vmem>>, %arg7: memref<1x128xf32, #tpu.memory_space<vmem>>, %arg8: memref<64x128xbf16, #tpu.memory_space<vmem>>, %arg9: memref<1x128xf32, #tpu.memory_space<vmem>>, %arg10: memref<4x32x128xbf16, #tpu.memory_space<vmem>>, %arg11: memref<1x128xf32, #tpu.memory_space<vmem>>, %arg12: memref<1x16x128xf32, #tpu.memory_space<vmem>>, %arg13: memref<16x128xbf16, #tpu.memory_space<vmem>>, %arg14: memref<24x128xbf16, #tpu.memory_space<vmem>>, %arg15: memref<24x128xbf16, #tpu.memory_space<vmem>>) attributes {dimension_semantics = [#tpu.dimension_semantics<parallel>], iteration_bounds = array<i64: 2>, scalar_prefetch = 0 : i64, scratch_operands = 3 : i64, tpu.core_type = #tpu.core_type<tc>, window_params = [{transform_indices = @transform_0, window_bounds = array<i64: 1, 16, 128>}, {transform_indices = @transform_1, window_bounds = array<i64: 1, 24, 64>}, {transform_indices = @transform_2, window_bounds = array<i64: 1, 1, 24>}, {pipeline_mode = #tpu.pipeline_mode<synchronous>, transform_indices = @transform_3, window_bounds = array<i64: 128, 128>}, {pipeline_mode = #tpu.pipeline_mode<synchronous>, transform_indices = @transform_4, window_bounds = array<i64: 1, 128>}, {pipeline_mode = #tpu.pipeline_mode<synchronous>, transform_indices = @transform_5, window_bounds = array<i64: 64, 128>}, {pipeline_mode = #tpu.pipeline_mode<synchronous>, transform_indices = @transform_6, window_bounds = array<i64: 1, 128>}, {pipeline_mode = #tpu.pipeline_mode<synchronous>, transform_indices = @transform_7, window_bounds = array<i64: 64, 128>}, {pipeline_mode = #tpu.pipeline_mode<synchronous>, transform_indices = @transform_8, window_bounds = array<i64: 1, 128>}, {pipeline_mode = #tpu.pipeline_mode<synchronous>, transform_indices = @transform_9, window_bounds = array<i64: 4, 32, 128>}, {pipeline_mode = #tpu.pipeline_mode<synchronous>, transform_indices = @transform_10, window_bounds = array<i64: 1, 128>}, {transform_indices = @transform_11, window_bounds = array<i64: 1, 16, 128>}]} {
    %c0 = arith.constant 0 : index
    %c0_0 = arith.constant 0 : index
    %c0_1 = arith.constant 0 : index
    %0 = vector.load %arg1[%c0, %c0_0, %c0_1] : memref<1x16x128xf32, #tpu.memory_space<vmem>>, vector<1x16x128xf32>
    %1 = vector.shape_cast %0 : vector<1x16x128xf32> to vector<16x128xf32>
    %2 = arith.truncf %1 : vector<16x128xf32> to vector<16x128xbf16>
    %c0_2 = arith.constant 0 : index
    %c0_3 = arith.constant 0 : index
    %c0_4 = arith.constant 0 : index
    %3 = vector.load %arg2[%c0_2, %c0_3, %c0_4] : memref<1x24x64xf32, #tpu.memory_space<vmem>>, vector<1x24x64xf32>
    %4 = vector.shape_cast %3 : vector<1x24x64xf32> to vector<24x64xf32>
    %5 = arith.truncf %4 : vector<24x64xf32> to vector<24x64xbf16>
    %c0_5 = arith.constant 0 : index
    %c0_6 = arith.constant 0 : index
    %6 = vector.load %arg4[%c0_5, %c0_6] : memref<128x128xbf16, #tpu.memory_space<vmem>>, vector<128x128xbf16>
    %cst = arith.constant dense<0.000000e+00> : vector<16x128xf32>
    %7 = tpu.matmul %2, %6, %cst {dimension_numbers = #tpu.dot_dimension_numbers<[1], [0], [0], [1], [0, 0, 1, 1], [], []>} : vector<16x128xbf16>, vector<128x128xbf16>, vector<16x128xf32> -> vector<16x128xf32>
    %c0_7 = arith.constant 0 : index
    %c0_8 = arith.constant 0 : index
    %8 = vector.load %arg5[%c0_7, %c0_8] : memref<1x128xf32, #tpu.memory_space<vmem>>, vector<1x128xf32>
    %9 = vector.broadcast %8 : vector<1x128xf32> to vector<16x128xf32>
    %10 = arith.addf %7, %9 : vector<16x128xf32>
    %11 = arith.truncf %10 : vector<16x128xf32> to vector<16x128xbf16>
    %c0_9 = arith.constant 0 : index
    %c0_10 = arith.constant 0 : index
    %12 = vector.load %arg13[%c0_9, %c0_10] : memref<16x128xbf16, #tpu.memory_space<vmem>>, vector<16x128xbf16>
    tpu.vector_store %arg13[%c0_9, %c0_10], %11 {strides = array<i32>} : memref<16x128xbf16, #tpu.memory_space<vmem>>, vector<16x128xbf16>,
    %c0_11 = arith.constant 0 : index
    %c0_12 = arith.constant 0 : index
    %13 = vector.load %arg6[%c0_11, %c0_12] : memref<64x128xbf16, #tpu.memory_space<vmem>>, vector<64x128xbf16>
    %cst_13 = arith.constant dense<0.000000e+00> : vector<24x128xf32>
    %14 = tpu.matmul %5, %13, %cst_13 {dimension_numbers = #tpu.dot_dimension_numbers<[1], [0], [0], [1], [0, 0, 1, 1], [], []>} : vector<24x64xbf16>, vector<64x128xbf16>, vector<24x128xf32> -> vector<24x128xf32>
    %c0_14 = arith.constant 0 : index
    %c0_15 = arith.constant 0 : index
    %15 = vector.load %arg7[%c0_14, %c0_15] : memref<1x128xf32, #tpu.memory_space<vmem>>, vector<1x128xf32>
    %16 = vector.broadcast %15 : vector<1x128xf32> to vector<24x128xf32>
    %17 = arith.addf %14, %16 : vector<24x128xf32>
    %18 = arith.truncf %17 : vector<24x128xf32> to vector<24x128xbf16>
    %c0_16 = arith.constant 0 : index
    %c0_17 = arith.constant 0 : index
    %19 = vector.load %arg14[%c0_16, %c0_17] : memref<24x128xbf16, #tpu.memory_space<vmem>>, vector<24x128xbf16>
    tpu.vector_store %arg14[%c0_16, %c0_17], %18 {strides = array<i32>} : memref<24x128xbf16, #tpu.memory_space<vmem>>, vector<24x128xbf16>,
    %c0_18 = arith.constant 0 : index
    %c0_19 = arith.constant 0 : index
    %20 = vector.load %arg8[%c0_18, %c0_19] : memref<64x128xbf16, #tpu.memory_space<vmem>>, vector<64x128xbf16>
    %cst_20 = arith.constant dense<0.000000e+00> : vector<24x128xf32>
    %21 = tpu.matmul %5, %20, %cst_20 {dimension_numbers = #tpu.dot_dimension_numbers<[1], [0], [0], [1], [0, 0, 1, 1], [], []>} : vector<24x64xbf16>, vector<64x128xbf16>, vector<24x128xf32> -> vector<24x128xf32>
    %c0_21 = arith.constant 0 : index
    %c0_22 = arith.constant 0 : index
    %22 = vector.load %arg9[%c0_21, %c0_22] : memref<1x128xf32, #tpu.memory_space<vmem>>, vector<1x128xf32>
    %23 = vector.broadcast %22 : vector<1x128xf32> to vector<24x128xf32>
    %24 = arith.addf %21, %23 : vector<24x128xf32>
    %25 = arith.truncf %24 : vector<24x128xf32> to vector<24x128xbf16>
    %c0_23 = arith.constant 0 : index
    %c0_24 = arith.constant 0 : index
    %26 = vector.load %arg15[%c0_23, %c0_24] : memref<24x128xbf16, #tpu.memory_space<vmem>>, vector<24x128xbf16>
    tpu.vector_store %arg15[%c0_23, %c0_24], %25 {strides = array<i32>} : memref<24x128xbf16, #tpu.memory_space<vmem>>, vector<24x128xbf16>,
    %c0_25 = arith.constant 0 : index
    %c0_26 = arith.constant 0 : index
    %c0_27 = arith.constant 0 : index
    %27 = vector.load %arg3[%c0_25, %c0_26, %c0_27] : memref<1x1x24xf32, #tpu.memory_space<vmem>>, vector<1x1x24xf32>
    %cst_28 = arith.constant 0.000000e+00 : f32
    %28 = vector.broadcast %cst_28 : f32 to vector<16x128xf32>
    %c0_29 = arith.constant 0 : index
    %c0_30 = arith.constant 0 : index
    %29 = vector.load %arg13[%c0_29, %c0_30] : memref<16x128xbf16, #tpu.memory_space<vmem>>, vector<16x32xbf16>
    %30 = vector.shape_cast %29 : vector<16x32xbf16> to vector<1x16x32xbf16>
    %c0_31 = arith.constant 0 : index
    %c0_32 = arith.constant 0 : index
    %31 = vector.load %arg14[%c0_31, %c0_32] : memref<24x128xbf16, #tpu.memory_space<vmem>>, vector<24x32xbf16>
    %32 = vector.shape_cast %31 : vector<24x32xbf16> to vector<1x24x32xbf16>
    %c0_33 = arith.constant 0 : index
    %c0_34 = arith.constant 0 : index
    %33 = vector.load %arg15[%c0_33, %c0_34] : memref<24x128xbf16, #tpu.memory_space<vmem>>, vector<24x32xbf16>
    %34 = vector.shape_cast %33 : vector<24x32xbf16> to vector<1x24x32xbf16>
    "tpu.trace_start"() <{level = 10 : i32, message = "bqd,bkd->bqk"}> : () -> ()
    %cst_35 = arith.constant dense<0.000000e+00> : vector<1x16x24xf32>
    %35 = tpu.matmul %30, %32, %cst_35 {dimension_numbers = #tpu.dot_dimension_numbers<[2], [2], [1], [1], [0, 0, 0, 1, 1, 1], [0], [0]>} : vector<1x16x32xbf16>, vector<1x24x32xbf16>, vector<1x16x24xf32> -> vector<1x16x24xf32>
    "tpu.trace_stop"() : () -> ()
    %36 = vector.broadcast %27 : vector<1x1x24xf32> to vector<1x16x24xf32>
    %37 = arith.addf %35, %36 : vector<1x16x24xf32>
    %cst_36 = arith.constant dense<0xFF800000> : vector<1x16xf32>
    %38 = vector.multi_reduction <maximumf>, %37, %cst_36 [2] : vector<1x16x24xf32> to vector<1x16xf32>
    %39 = vector.shape_cast %38 : vector<1x16xf32> to vector<1x16x1xf32>
    %40 = vector.broadcast %39 : vector<1x16x1xf32> to vector<1x16x24xf32>
    %41 = arith.subf %37, %40 : vector<1x16x24xf32>
    %42 = math.exp %41 : vector<1x16x24xf32>
    %cst_37 = arith.constant dense<0.000000e+00> : vector<1x16xf32>
    %43 = vector.multi_reduction <add>, %42, %cst_37 [2] : vector<1x16x24xf32> to vector<1x16xf32>
    %44 = vector.shape_cast %43 : vector<1x16xf32> to vector<1x16x1xf32>
    %45 = vector.broadcast %44 : vector<1x16x1xf32> to vector<1x16x24xf32>
    %46 = arith.divf %42, %45 : vector<1x16x24xf32>
    %47 = arith.truncf %46 : vector<1x16x24xf32> to vector<1x16x24xbf16>
    "tpu.trace_start"() <{level = 10 : i32, message = "bqk,bkd->bqd"}> : () -> ()
    %cst_38 = arith.constant dense<0.000000e+00> : vector<1x16x32xf32>
    %48 = tpu.matmul %47, %34, %cst_38 {dimension_numbers = #tpu.dot_dimension_numbers<[2], [1], [1], [2], [0, 0, 0, 1, 1, 2], [0], [0]>} : vector<1x16x24xbf16>, vector<1x24x32xbf16>, vector<1x16x32xf32> -> vector<1x16x32xf32>
    "tpu.trace_stop"() : () -> ()
    %49 = vector.shape_cast %48 : vector<1x16x32xf32> to vector<16x32xf32>
    %50 = arith.truncf %49 : vector<16x32xf32> to vector<16x32xbf16>
    %c0_39 = arith.constant 0 : index
    %c0_40 = arith.constant 0 : index
    %c0_41 = arith.constant 0 : index
    %51 = vector.load %arg10[%c0_39, %c0_40, %c0_41] : memref<4x32x128xbf16, #tpu.memory_space<vmem>>, vector<1x32x128xbf16>
    %52 = vector.shape_cast %51 : vector<1x32x128xbf16> to vector<32x128xbf16>
    %cst_42 = arith.constant dense<0.000000e+00> : vector<16x128xf32>
    %53 = tpu.matmul %50, %52, %cst_42 {dimension_numbers = #tpu.dot_dimension_numbers<[1], [0], [0], [1], [0, 0, 1, 1], [], []>} : vector<16x32xbf16>, vector<32x128xbf16>, vector<16x128xf32> -> vector<16x128xf32>
    %54 = arith.addf %28, %53 : vector<16x128xf32>
    %c0_43 = arith.constant 0 : index
    %c32 = arith.constant 32 : index
    %55 = vector.load %arg13[%c0_43, %c32] : memref<16x128xbf16, #tpu.memory_space<vmem>>, vector<16x32xbf16>
    %56 = vector.shape_cast %55 : vector<16x32xbf16> to vector<1x16x32xbf16>
    %c0_44 = arith.constant 0 : index
    %c32_45 = arith.constant 32 : index
    %57 = vector.load %arg14[%c0_44, %c32_45] : memref<24x128xbf16, #tpu.memory_space<vmem>>, vector<24x32xbf16>
    %58 = vector.shape_cast %57 : vector<24x32xbf16> to vector<1x24x32xbf16>
    %c0_46 = arith.constant 0 : index
    %c32_47 = arith.constant 32 : index
    %59 = vector.load %arg15[%c0_46, %c32_47] : memref<24x128xbf16, #tpu.memory_space<vmem>>, vector<24x32xbf16>
    %60 = vector.shape_cast %59 : vector<24x32xbf16> to vector<1x24x32xbf16>
    "tpu.trace_start"() <{level = 10 : i32, message = "bqd,bkd->bqk"}> : () -> ()
    %cst_48 = arith.constant dense<0.000000e+00> : vector<1x16x24xf32>
    %61 = tpu.matmul %56, %58, %cst_48 {dimension_numbers = #tpu.dot_dimension_numbers<[2], [2], [1], [1], [0, 0, 0, 1, 1, 1], [0], [0]>} : vector<1x16x32xbf16>, vector<1x24x32xbf16>, vector<1x16x24xf32> -> vector<1x16x24xf32>
    "tpu.trace_stop"() : () -> ()
    %62 = vector.broadcast %27 : vector<1x1x24xf32> to vector<1x16x24xf32>
    %63 = arith.addf %61, %62 : vector<1x16x24xf32>
    %cst_49 = arith.constant dense<0xFF800000> : vector<1x16xf32>
    %64 = vector.multi_reduction <maximumf>, %63, %cst_49 [2] : vector<1x16x24xf32> to vector<1x16xf32>
    %65 = vector.shape_cast %64 : vector<1x16xf32> to vector<1x16x1xf32>
    %66 = vector.broadcast %65 : vector<1x16x1xf32> to vector<1x16x24xf32>
    %67 = arith.subf %63, %66 : vector<1x16x24xf32>
    %68 = math.exp %67 : vector<1x16x24xf32>
    %cst_50 = arith.constant dense<0.000000e+00> : vector<1x16xf32>
    %69 = vector.multi_reduction <add>, %68, %cst_50 [2] : vector<1x16x24xf32> to vector<1x16xf32>
    %70 = vector.shape_cast %69 : vector<1x16xf32> to vector<1x16x1xf32>
    %71 = vector.broadcast %70 : vector<1x16x1xf32> to vector<1x16x24xf32>
    %72 = arith.divf %68, %71 : vector<1x16x24xf32>
    %73 = arith.truncf %72 : vector<1x16x24xf32> to vector<1x16x24xbf16>
    "tpu.trace_start"() <{level = 10 : i32, message = "bqk,bkd->bqd"}> : () -> ()
    %cst_51 = arith.constant dense<0.000000e+00> : vector<1x16x32xf32>
    %74 = tpu.matmul %73, %60, %cst_51 {dimension_numbers = #tpu.dot_dimension_numbers<[2], [1], [1], [2], [0, 0, 0, 1, 1, 2], [0], [0]>} : vector<1x16x24xbf16>, vector<1x24x32xbf16>, vector<1x16x32xf32> -> vector<1x16x32xf32>
    "tpu.trace_stop"() : () -> ()
    %75 = vector.shape_cast %74 : vector<1x16x32xf32> to vector<16x32xf32>
    %76 = arith.truncf %75 : vector<16x32xf32> to vector<16x32xbf16>
    %c1 = arith.constant 1 : index
    %c0_52 = arith.constant 0 : index
    %c0_53 = arith.constant 0 : index
    %77 = vector.load %arg10[%c1, %c0_52, %c0_53] : memref<4x32x128xbf16, #tpu.memory_space<vmem>>, vector<1x32x128xbf16>
    %78 = vector.shape_cast %77 : vector<1x32x128xbf16> to vector<32x128xbf16>
    %cst_54 = arith.constant dense<0.000000e+00> : vector<16x128xf32>
    %79 = tpu.matmul %76, %78, %cst_54 {dimension_numbers = #tpu.dot_dimension_numbers<[1], [0], [0], [1], [0, 0, 1, 1], [], []>} : vector<16x32xbf16>, vector<32x128xbf16>, vector<16x128xf32> -> vector<16x128xf32>
    %80 = arith.addf %54, %79 : vector<16x128xf32>
    %c0_55 = arith.constant 0 : index
    %c64 = arith.constant 64 : index
    %81 = vector.load %arg13[%c0_55, %c64] : memref<16x128xbf16, #tpu.memory_space<vmem>>, vector<16x32xbf16>
    %82 = vector.shape_cast %81 : vector<16x32xbf16> to vector<1x16x32xbf16>
    %c0_56 = arith.constant 0 : index
    %c64_57 = arith.constant 64 : index
    %83 = vector.load %arg14[%c0_56, %c64_57] : memref<24x128xbf16, #tpu.memory_space<vmem>>, vector<24x32xbf16>
    %84 = vector.shape_cast %83 : vector<24x32xbf16> to vector<1x24x32xbf16>
    %c0_58 = arith.constant 0 : index
    %c64_59 = arith.constant 64 : index
    %85 = vector.load %arg15[%c0_58, %c64_59] : memref<24x128xbf16, #tpu.memory_space<vmem>>, vector<24x32xbf16>
    %86 = vector.shape_cast %85 : vector<24x32xbf16> to vector<1x24x32xbf16>
    "tpu.trace_start"() <{level = 10 : i32, message = "bqd,bkd->bqk"}> : () -> ()
    %cst_60 = arith.constant dense<0.000000e+00> : vector<1x16x24xf32>
    %87 = tpu.matmul %82, %84, %cst_60 {dimension_numbers = #tpu.dot_dimension_numbers<[2], [2], [1], [1], [0, 0, 0, 1, 1, 1], [0], [0]>} : vector<1x16x32xbf16>, vector<1x24x32xbf16>, vector<1x16x24xf32> -> vector<1x16x24xf32>
    "tpu.trace_stop"() : () -> ()
    %88 = vector.broadcast %27 : vector<1x1x24xf32> to vector<1x16x24xf32>
    %89 = arith.addf %87, %88 : vector<1x16x24xf32>
    %cst_61 = arith.constant dense<0xFF800000> : vector<1x16xf32>
    %90 = vector.multi_reduction <maximumf>, %89, %cst_61 [2] : vector<1x16x24xf32> to vector<1x16xf32>
    %91 = vector.shape_cast %90 : vector<1x16xf32> to vector<1x16x1xf32>
    %92 = vector.broadcast %91 : vector<1x16x1xf32> to vector<1x16x24xf32>
    %93 = arith.subf %89, %92 : vector<1x16x24xf32>
    %94 = math.exp %93 : vector<1x16x24xf32>
    %cst_62 = arith.constant dense<0.000000e+00> : vector<1x16xf32>
    %95 = vector.multi_reduction <add>, %94, %cst_62 [2] : vector<1x16x24xf32> to vector<1x16xf32>
    %96 = vector.shape_cast %95 : vector<1x16xf32> to vector<1x16x1xf32>
    %97 = vector.broadcast %96 : vector<1x16x1xf32> to vector<1x16x24xf32>
    %98 = arith.divf %94, %97 : vector<1x16x24xf32>
    %99 = arith.truncf %98 : vector<1x16x24xf32> to vector<1x16x24xbf16>
    "tpu.trace_start"() <{level = 10 : i32, message = "bqk,bkd->bqd"}> : () -> ()
    %cst_63 = arith.constant dense<0.000000e+00> : vector<1x16x32xf32>
    %100 = tpu.matmul %99, %86, %cst_63 {dimension_numbers = #tpu.dot_dimension_numbers<[2], [1], [1], [2], [0, 0, 0, 1, 1, 2], [0], [0]>} : vector<1x16x24xbf16>, vector<1x24x32xbf16>, vector<1x16x32xf32> -> vector<1x16x32xf32>
    "tpu.trace_stop"() : () -> ()
    %101 = vector.shape_cast %100 : vector<1x16x32xf32> to vector<16x32xf32>
    %102 = arith.truncf %101 : vector<16x32xf32> to vector<16x32xbf16>
    %c2 = arith.constant 2 : index
    %c0_64 = arith.constant 0 : index
    %c0_65 = arith.constant 0 : index
    %103 = vector.load %arg10[%c2, %c0_64, %c0_65] : memref<4x32x128xbf16, #tpu.memory_space<vmem>>, vector<1x32x128xbf16>
    %104 = vector.shape_cast %103 : vector<1x32x128xbf16> to vector<32x128xbf16>
    %cst_66 = arith.constant dense<0.000000e+00> : vector<16x128xf32>
    %105 = tpu.matmul %102, %104, %cst_66 {dimension_numbers = #tpu.dot_dimension_numbers<[1], [0], [0], [1], [0, 0, 1, 1], [], []>} : vector<16x32xbf16>, vector<32x128xbf16>, vector<16x128xf32> -> vector<16x128xf32>
    %106 = arith.addf %80, %105 : vector<16x128xf32>
    %c0_67 = arith.constant 0 : index
    %c96 = arith.constant 96 : index
    %107 = vector.load %arg13[%c0_67, %c96] : memref<16x128xbf16, #tpu.memory_space<vmem>>, vector<16x32xbf16>
    %108 = vector.shape_cast %107 : vector<16x32xbf16> to vector<1x16x32xbf16>
    %c0_68 = arith.constant 0 : index
    %c96_69 = arith.constant 96 : index
    %109 = vector.load %arg14[%c0_68, %c96_69] : memref<24x128xbf16, #tpu.memory_space<vmem>>, vector<24x32xbf16>
    %110 = vector.shape_cast %109 : vector<24x32xbf16> to vector<1x24x32xbf16>
    %c0_70 = arith.constant 0 : index
    %c96_71 = arith.constant 96 : index
    %111 = vector.load %arg15[%c0_70, %c96_71] : memref<24x128xbf16, #tpu.memory_space<vmem>>, vector<24x32xbf16>
    %112 = vector.shape_cast %111 : vector<24x32xbf16> to vector<1x24x32xbf16>
    "tpu.trace_start"() <{level = 10 : i32, message = "bqd,bkd->bqk"}> : () -> ()
    %cst_72 = arith.constant dense<0.000000e+00> : vector<1x16x24xf32>
    %113 = tpu.matmul %108, %110, %cst_72 {dimension_numbers = #tpu.dot_dimension_numbers<[2], [2], [1], [1], [0, 0, 0, 1, 1, 1], [0], [0]>} : vector<1x16x32xbf16>, vector<1x24x32xbf16>, vector<1x16x24xf32> -> vector<1x16x24xf32>
    "tpu.trace_stop"() : () -> ()
    %114 = vector.broadcast %27 : vector<1x1x24xf32> to vector<1x16x24xf32>
    %115 = arith.addf %113, %114 : vector<1x16x24xf32>
    %cst_73 = arith.constant dense<0xFF800000> : vector<1x16xf32>
    %116 = vector.multi_reduction <maximumf>, %115, %cst_73 [2] : vector<1x16x24xf32> to vector<1x16xf32>
    %117 = vector.shape_cast %116 : vector<1x16xf32> to vector<1x16x1xf32>
    %118 = vector.broadcast %117 : vector<1x16x1xf32> to vector<1x16x24xf32>
    %119 = arith.subf %115, %118 : vector<1x16x24xf32>
    %120 = math.exp %119 : vector<1x16x24xf32>
    %cst_74 = arith.constant dense<0.000000e+00> : vector<1x16xf32>
    %121 = vector.multi_reduction <add>, %120, %cst_74 [2] : vector<1x16x24xf32> to vector<1x16xf32>
    %122 = vector.shape_cast %121 : vector<1x16xf32> to vector<1x16x1xf32>
    %123 = vector.broadcast %122 : vector<1x16x1xf32> to vector<1x16x24xf32>
    %124 = arith.divf %120, %123 : vector<1x16x24xf32>
    %125 = arith.truncf %124 : vector<1x16x24xf32> to vector<1x16x24xbf16>
    "tpu.trace_start"() <{level = 10 : i32, message = "bqk,bkd->bqd"}> : () -> ()
    %cst_75 = arith.constant dense<0.000000e+00> : vector<1x16x32xf32>
    %126 = tpu.matmul %125, %112, %cst_75 {dimension_numbers = #tpu.dot_dimension_numbers<[2], [1], [1], [2], [0, 0, 0, 1, 1, 2], [0], [0]>} : vector<1x16x24xbf16>, vector<1x24x32xbf16>, vector<1x16x32xf32> -> vector<1x16x32xf32>
    "tpu.trace_stop"() : () -> ()
    %127 = vector.shape_cast %126 : vector<1x16x32xf32> to vector<16x32xf32>
    %128 = arith.truncf %127 : vector<16x32xf32> to vector<16x32xbf16>
    %c3 = arith.constant 3 : index
    %c0_76 = arith.constant 0 : index
    %c0_77 = arith.constant 0 : index
    %129 = vector.load %arg10[%c3, %c0_76, %c0_77] : memref<4x32x128xbf16, #tpu.memory_space<vmem>>, vector<1x32x128xbf16>
    %130 = vector.shape_cast %129 : vector<1x32x128xbf16> to vector<32x128xbf16>
    %cst_78 = arith.constant dense<0.000000e+00> : vector<16x128xf32>
    %131 = tpu.matmul %128, %130, %cst_78 {dimension_numbers = #tpu.dot_dimension_numbers<[1], [0], [0], [1], [0, 0, 1, 1], [], []>} : vector<16x32xbf16>, vector<32x128xbf16>, vector<16x128xf32> -> vector<16x128xf32>
    %132 = arith.addf %106, %131 : vector<16x128xf32>
    %c0_79 = arith.constant 0 : index
    %c0_80 = arith.constant 0 : index
    %133 = vector.load %arg11[%c0_79, %c0_80] : memref<1x128xf32, #tpu.memory_space<vmem>>, vector<1x128xf32>
    %134 = vector.broadcast %133 : vector<1x128xf32> to vector<16x128xf32>
    %135 = arith.addf %132, %134 : vector<16x128xf32>
    %136 = vector.shape_cast %135 : vector<16x128xf32> to vector<1x16x128xf32>
    %c0_81 = arith.constant 0 : index
    %c0_82 = arith.constant 0 : index
    %c0_83 = arith.constant 0 : index
    %137 = vector.load %arg12[%c0_81, %c0_82, %c0_83] : memref<1x16x128xf32, #tpu.memory_space<vmem>>, vector<1x16x128xf32>
    tpu.vector_store %arg12[%c0_81, %c0_82, %c0_83], %136 {strides = array<i32>} : memref<1x16x128xf32, #tpu.memory_space<vmem>>, vector<1x16x128xf32>,
    return
  }
  func.func @transform_0(%arg0: i32) -> (i32, i32, i32) {
    %c0_i32 = arith.constant 0 : i32
    %c0_i32_0 = arith.constant 0 : i32
    %c0_i32_1 = arith.constant 0 : i32
    return %arg0, %c0_i32, %c0_i32_0 : i32, i32, i32
  }
  func.func @transform_1(%arg0: i32) -> (i32, i32, i32) {
    %c0_i32 = arith.constant 0 : i32
    %c0_i32_0 = arith.constant 0 : i32
    %c0_i32_1 = arith.constant 0 : i32
    return %arg0, %c0_i32, %c0_i32_0 : i32, i32, i32
  }
  func.func @transform_2(%arg0: i32) -> (i32, i32, i32) {
    %c0_i32 = arith.constant 0 : i32
    %c0_i32_0 = arith.constant 0 : i32
    %c0_i32_1 = arith.constant 0 : i32
    return %arg0, %c0_i32, %c0_i32_0 : i32, i32, i32
  }
  func.func @transform_3(%arg0: i32) -> (i32, i32) {
    %c0_i32 = arith.constant 0 : i32
    %c0_i32_0 = arith.constant 0 : i32
    %c0_i32_1 = arith.constant 0 : i32
    return %c0_i32, %c0_i32_0 : i32, i32
  }
  func.func @transform_4(%arg0: i32) -> (i32, i32) {
    %c0_i32 = arith.constant 0 : i32
    %c0_i32_0 = arith.constant 0 : i32
    %c0_i32_1 = arith.constant 0 : i32
    return %c0_i32, %c0_i32_0 : i32, i32
  }
  func.func @transform_5(%arg0: i32) -> (i32, i32) {
    %c0_i32 = arith.constant 0 : i32
    %c0_i32_0 = arith.constant 0 : i32
    %c0_i32_1 = arith.constant 0 : i32
    return %c0_i32, %c0_i32_0 : i32, i32
  }
  func.func @transform_6(%arg0: i32) -> (i32, i32) {
    %c0_i32 = arith.constant 0 : i32
    %c0_i32_0 = arith.constant 0 : i32
    %c0_i32_1 = arith.constant 0 : i32
    return %c0_i32, %c0_i32_0 : i32, i32
  }
  func.func @transform_7(%arg0: i32) -> (i32, i32) {
    %c0_i32 = arith.constant 0 : i32
    %c0_i32_0 = arith.constant 0 : i32
    %c0_i32_1 = arith.constant 0 : i32
    return %c0_i32, %c0_i32_0 : i32, i32
  }
  func.func @transform_8(%arg0: i32) -> (i32, i32) {
    %c0_i32 = arith.constant 0 : i32
    %c0_i32_0 = arith.constant 0 : i32
    %c0_i32_1 = arith.constant 0 : i32
    return %c0_i32, %c0_i32_0 : i32, i32
  }
  func.func @transform_9(%arg0: i32) -> (i32, i32, i32) {
    %c0_i32 = arith.constant 0 : i32
    %c0_i32_0 = arith.constant 0 : i32
    %c0_i32_1 = arith.constant 0 : i32
    %c0_i32_2 = arith.constant 0 : i32
    return %c0_i32, %c0_i32_0, %c0_i32_1 : i32, i32, i32
  }
  func.func @transform_10(%arg0: i32) -> (i32, i32) {
    %c0_i32 = arith.constant 0 : i32
    %c0_i32_0 = arith.constant 0 : i32
    %c0_i32_1 = arith.constant 0 : i32
    return %c0_i32, %c0_i32_0 : i32, i32
  }
  func.func @transform_11(%arg0: i32) -> (i32, i32, i32) {
    %c0_i32 = arith.constant 0 : i32
    %c0_i32_0 = arith.constant 0 : i32
    %c0_i32_1 = arith.constant 0 : i32
    return %arg0, %c0_i32, %c0_i32_0 : i32, i32, i32
  }
}

</mosaic_0001>

<bundles_post_ra>
// kernel: tpu_custom_call.1
= control target key start
LH: loop header
LB: loop body
LE: loop exit
PB: predicated region body
PF: predicated region fallthrough
CT: control target
= control target key end

     0   :  { %s3227_s0 = inlined_call_operand.hbm [shape: f32[2,16,128], index: 0, kind: input, shape index: {}]   ;;  %s3228_s1 = inlined_call_operand.hbm [shape: f32[2,24,64], index: 1, kind: input, shape index: {}]   ;;  %s3229_s2 = inlined_call_operand.vmem [shape: f32[2,1,24], index: 2, kind: input, shape index: {}]   ;;  %s3230_s3 = inlined_call_operand.hbm [shape: bf16[128,128], index: 3, kind: input, shape index: {}]   ;;  %s3231_s4 = inlined_call_operand.vmem [shape: f32[1,128], index: 4, kind: input, shape index: {}]   ;;  %s3232_s5 = inlined_call_operand.hbm [shape: bf16[64,128], index: 5, kind: input, shape index: {}]   ;;  %s3233_s6 = inlined_call_operand.vmem [shape: f32[1,128], index: 6, kind: input, shape index: {}]   ;;  %s3234_s7 = inlined_call_operand.hbm [shape: bf16[64,128], index: 7, kind: input, shape index: {}]   ;;  %s3235_s8 = inlined_call_operand.vmem [shape: f32[1,128], index: 8, kind: input, shape index: {}]   ;;  %s3236_s9 = inlined_call_operand.hbm [shape: bf16[4,32,128], index: 9, kind: input, shape index: {}]   ;;  %s3237_s10 = inlined_call_operand.vmem [shape: f32[1,128], index: 10, kind: input, shape index: {}]   ;;  %s3238_s11 = inlined_call_operand.hbm [shape: f32[2,16,128], index: 11, kind: output, shape index: {}]  }
   0x1   :  { %3245 = sst [smem:[#allocation25_spill]] %s3227_s0 }
   0x2   :  { %3246 = sst [smem:[#allocation26_spill]] %s3230_s3 }
   0x3   :  { %3247 = sst [smem:[#allocation27_spill]] %s3232_s5 }
   0x4   :  { %3248 = sst [smem:[#allocation28_spill]] %s3234_s7 }
   0x5   :  { %3249 = sst [smem:[#allocation29_spill]] %s3235_s8 }
   0x6   :  { %3250 = sst [smem:[#allocation30_spill]] %s3237_s10 }
   0x7   :  { %3251 = sst [smem:[#allocation31_spill]] %s3238_s11 }
   0x8   :  { %16 = vsyncpa [#allocation6], 0 }
   0x9   :  { %18 = vsyncpa [#allocation6 + $0x1], 0 }
   0xa   :  { %19 = vsyncpa [#allocation9], 0 }
   0xb   :  { %21 = vsyncpa [#allocation9 + $0x1], 0 }
   0xc   :  { %22 = vsyncpa [#allocation12], 0 }
   0xd   :  { %23 = vsyncpa [#allocation15], 0 }
   0xe   :  { %24 = vsyncpa [#allocation7], 0 }
   0xf   :  { %26 = vsyncpa [#allocation7 + $0x1], 0  ;;  %s2708_s17 = smov 0   ;;  %s2710_s18 = smov 0  }
  0x10   :  { %s2712_s19 = smov 0   ;;  %s2714_s20 = smov 0  }
  0x11 LB: > { %3252 = sst [smem:[#allocation23_spill]] %s2616_s17  ;;  %s2729_s21 = sadd.s32 4294967295, %s2628_s20   ;;  %s2628_s20 = sphi %s2714_s20, %s3285_s20   ;;  %s2624_s19 = sphi %s2712_s19, %s3284_s19   ;;  %s2620_s18 = sphi %s2710_s18, %s3283_s18   ;;  %s2616_s17 = sphi %s2708_s17, %s3282_s17  }
  0x12   : > { %s1891_s22 = sadd.s32 4294967294, %s2628_s20   ;;  %p52_p0 = scmp.ne.s32.totalorder %s2620_s18, %s2616_s17 }
  0x13   : > { %p3240_p1 = scmp.eq.s32.totalorder %s2729_s21, 0  ;;  %p302_p3 = scmp.eq.s32.totalorder %s1891_s22, 1 }
  0x14   : > { %p1892_p5 = scmp.ge.s32.totalorder %s2628_s20, 1  ;;  %p309_p7 = scmp.lt.s32.totalorder %s2628_s20, 3 }
  0x15   : > { %p2738_p4 = por %p3240_p1, %p52_p0  ;;  %p2743_p6 = por %p302_p3, %p52_p0 }
  0x16   : > { %p2748_p8 = pnand %p1892_p5, %p309_p7  ;;  %s2630_s26 = smov [#allocation10]  }
  0x17   : > { %s3253_s23 = scalar_select %p2738_p4, 1, 0 }
  0x18   : > { %s3254_s24 = scalar_select %p2743_p6, 1, 0 }
  0x19   : > { %s3256_s25 = scalar_select %p2748_p8, 1, 0 }
  0x1a   : > { %3255 = sst [smem:[#allocation24_spill]] %s3254_s24  ;;  %s321_s27 = sshll.u32 %s2630_s26, 4  ;;  %s2752_s27 = int_to_ptr.vmem [resolvable:$true] %s321_s27 }
  0x1b   : > { %p2221_p9 = pneg %p2748_p8  ;;  %s2631_s29 = smov [#allocation11]  }
  0x1c   : > { %s337_s30 = sshll.u32 %s2631_s29, 4  ;;  %s2632_s12 = smov [#allocation13]   ;;  %s2763_s30 = int_to_ptr.vmem [resolvable:$true] %s337_s30 }
  0x1d   : > { %p2759_p11 = pnand %p2221_p9, %p3240_p1  ;;  %s2765_s13 = sshll.u32 %s2632_s12, 4  ;;  %s354_s13 = int_to_ptr.vmem [resolvable:$true] %s2765_s13 }
  0x1e   : > { %s3258_s3 = sld [smem:[#allocation26_spill]] }
  0x1f   : > { %p2775_p13 = pneg %p2759_p11 }
  0x24   : > { %s2374_s16 = scalar_lea.hbm %s3258_s3, 1024 }
  0x25   : > { %p2375_p12 = scmp.ne.s32.totalorder %s3258_s3, %s2374_s16  ;;  %p2381_p5 = scmp.lt.u32.totalorder %s2374_s16, %s3258_s3 }
  0x27   : > { %p2377_p0 = pnand %p2775_p13, %p2375_p12 }
  0x29   : > { %p2378_p3 = pneg %p2377_p0 }
  0x2b   : > { %p2383_p7 = pnand %p2381_p5, %p2378_p3 }
  0x2d   : > { %2386 = shalt.err (!%p2383_p7)
}
  0x2e   : > { %s2387_s14 = scalar_lea.vmem %s2752_s27, 1024  ;;  %p2395_p2 = scmp.lt.s32.totalorder %s2752_s27, %s2752_s27 }
  0x2f   : > { %p2388_p9 = scmp.ne.s32.totalorder %s2752_s27, %s2387_s14  ;;  %p2396_p6 = scmp.lt.s32.totalorder %s2387_s14, %s2387_s14 }
  0x31   : > { %p2390_p10 = pnand %p2388_p9, %p2775_p13  ;;  %p2397_p12 = por %p2396_p6, %p2395_p2 }
  0x33   : > { %p2391_p1 = pneg %p2390_p10 }
  0x35   : > { %p2398_p0 = pnand %p2397_p12, %p2391_p1 }
  0x37   : > { %2401 = shalt.err (!%p2398_p0)
}
  0x38   : > { %s2633_s15 = smov 64   ;;  %s2634_s16 = smov 4  }
  0x39   : > { %2224 = dma.hbm_to_vmem [thread:$0]  (!%p2759_p11), %s3258_s3, 1024, %s2752_s27, [#allocation9], %s2633_s15, %s2633_s15, %s2634_s16  }
  0x3a   : > { %s3260_s5 = sld [smem:[#allocation27_spill]] }
  0x40   : > { %s2402_s14 = scalar_lea.hbm %s3260_s5, 512 }
  0x41   : > { %p2403_p1 = scmp.ne.s32.totalorder %s3260_s5, %s2402_s14  ;;  %p2409_p10 = scmp.lt.u32.totalorder %s2402_s14, %s3260_s5 }
  0x43   : > { %p2405_p2 = pnand %p2403_p1, %p2775_p13 }
  0x45   : > { %p2406_p6 = pneg %p2405_p2 }
  0x47   : > { %p2411_p3 = pnand %p2409_p10, %p2406_p6 }
  0x49   : > { %2414 = shalt.err (!%p2411_p3)
}
  0x4a   : > { %s2415_s27 = scalar_lea.vmem %s2763_s30, 512  ;;  %p2423_p12 = scmp.lt.s32.totalorder %s2763_s30, %s2763_s30 }
  0x4b   : > { %p2416_p5 = scmp.ne.s32.totalorder %s2763_s30, %s2415_s27  ;;  %p2424_p0 = scmp.lt.s32.totalorder %s2415_s27, %s2415_s27 }
  0x4d   : > { %p2418_p7 = pnand %p2416_p5, %p2775_p13  ;;  %p2425_p1 = por %p2424_p0, %p2423_p12 }
  0x4f   : > { %p2419_p9 = pneg %p2418_p7 }
  0x51   : > { %p2426_p2 = pnand %p2425_p1, %p2419_p9 }
  0x53   : > { %2429 = shalt.err (!%p2426_p2)
}
  0x54   : > { %2227 = dma.hbm_to_vmem [thread:$0]  (!%p2759_p11), %s3260_s5, 512, %s2763_s30, [#allocation12], %s2633_s15, %s2633_s15, %s2634_s16  }
  0x55   : > { %s3261_s7 = sld [smem:[#allocation28_spill]] }
  0x5b   : > { %s2430_s22 = scalar_lea.hbm %s3261_s7, 512 }
  0x5c   : > { %p2431_p6 = scmp.ne.s32.totalorder %s3261_s7, %s2430_s22  ;;  %p2437_p5 = scmp.lt.u32.totalorder %s2430_s22, %s3261_s7 }
  0x5e   : > { %p2433_p10 = pnand %p2431_p6, %p2775_p13 }
  0x60   : > { %p2434_p3 = pneg %p2433_p10 }
  0x62   : > { %p2439_p7 = pnand %p2437_p5, %p2434_p3 }
  0x64   : > { %2442 = shalt.err (!%p2439_p7)
}
  0x65   : > { %s2443_s27 = scalar_lea.vmem %s354_s13, 512  ;;  %p2451_p1 = scmp.lt.s32.totalorder %s354_s13, %s354_s13 }
  0x66   : > { %p2444_p9 = scmp.ne.s32.totalorder %s354_s13, %s2443_s27  ;;  %p2452_p2 = scmp.lt.s32.totalorder %s2443_s27, %s2443_s27 }
  0x68   : > { %p2446_p12 = pnand %p2444_p9, %p2775_p13  ;;  %p2453_p4 = por %p2452_p2, %p2451_p1 }
  0x6a   : > { %p2447_p0 = pneg %p2446_p12 }
  0x6c   : > { %p2454_p8 = pnand %p2453_p4, %p2447_p0 }
  0x6e   : > { %2457 = shalt.err (!%p2454_p8)
}
  0x6f   : > { %2230 = dma.hbm_to_vmem [thread:$0]  (!%p2759_p11), %s3261_s7, 512, %s354_s13, [#allocation12], %s2633_s15, %s2633_s15, %s2634_s16  }
  0x70   : > { %s2635_s10 = smov [#allocation14]   ;;  %s2458_s26 = scalar_lea.hbm %s3236_s9, 1024 }
  0x71   : > { %s369_s11 = sshll.u32 %s2635_s10, 4  ;;  %p2459_p4 = scmp.ne.s32.totalorder %s3236_s9, %s2458_s26  ;;  %s370_s11 = int_to_ptr.vmem [resolvable:$true] %s369_s11 }
  0x72   : > { %p2465_p10 = scmp.lt.u32.totalorder %s2458_s26, %s3236_s9 }
  0x73   : > { %p2461_p8 = pnand %p2459_p4, %p2775_p13 }
  0x75   : > { %p2462_p6 = pneg %p2461_p8 }
  0x77   : > { %p2467_p3 = pnand %p2465_p10, %p2462_p6 }
  0x79   : > { %2470 = shalt.err (!%p2467_p3)
}
  0x7a   : > { %s2471_s13 = scalar_lea.vmem %s370_s11, 1024  ;;  %p2479_p12 = scmp.lt.s32.totalorder %s370_s11, %s370_s11 }
  0x7b   : > { %p2472_p5 = scmp.ne.s32.totalorder %s370_s11, %s2471_s13  ;;  %p2480_p0 = scmp.lt.s32.totalorder %s2471_s13, %s2471_s13 }
  0x7d   : > { %p2474_p7 = pnand %p2472_p5, %p2775_p13  ;;  %p2481_p1 = por %p2480_p0, %p2479_p12 }
  0x7f   : > { %p2475_p9 = pneg %p2474_p7 }
  0x81   : > { %p2482_p2 = pnand %p2481_p1, %p2475_p9 }
  0x83   : > { %2485 = shalt.err (!%p2482_p2)
}
  0x84   : > { %2233 = dma.hbm_to_vmem [thread:$0]  (!%p2759_p11), %s3236_s9, 1024, %s370_s11, [#allocation15], %s2633_s15, %s2633_s15, %s2634_s16  }
  0x85   : > { %s2869_s24 = sadd.s32 1, %s2628_s20   ;;  %s39_s28 = sadd.s32 1, %s2624_s19 }
  0x86   : > { %s36_s10 = ssub.s32 %s2628_s20, %s2869_s24  ;;  %p46_p13 = scmp.ne.s32.totalorder %s2624_s19, %s2620_s18 }
  0x87   : > { %p37_p4 = scmp.eq.s32.totalorder %s36_s10, 0  ;;  %p47_p8 = scmp.eq.s32.totalorder %s2628_s20, 0 }
  0x88   : > { %p3262_p6 = scmp.eq.s32.totalorder %s2729_s21, 1  ;;  %p2249_p3 = scmp.lt.s32.totalorder %s2628_s20, 2 }
  0x89   : > { %s2885_s22 = scalar_select %p37_p4, %s2624_s19, %s39_s28  }
  0x8a   : > { %p2879_p10 = por %p3262_p6, %p46_p13  ;;  %p48_p5 = por %p47_p8, %p46_p13 }
  0x8b   : > { %s2888_s26 = sand.u32 1, %s2624_s19   ;;  %s1981_s16 = sshll.u32 %s2628_s20, 8 }
  0x8c   : > { %s1898_s15 = sshll.u32 %s2888_s26, 4  ;;  %s3264_s0 = sld [smem:[#allocation25_spill]] }
  0x8d   : > { %s390_s14 = scalar_lea.vmem [#allocation5], %s1898_s15  ;;  %p2899_p11 = pnand %p2249_p3, %p48_p5 }
  0x8e   : > { %s397_s27 = sshll.u32 %s390_s14, 4  ;;  %s387_s8 = scalar_lea.sflag [#allocation6], %s2888_s26  ;;  %s2897_s27 = int_to_ptr.vmem [resolvable:$true] %s397_s27 }
  0x8f   : > { %p2488_p9 = pneg %p2899_p11 }
  0x92   : > { %s2895_s12 = scalar_lea.hbm %s3264_s0, %s1981_s16  ;;  %s2491_s16 = scalar_lea.hbm %s3264_s0, 512 }
  0x93   : > { %s2486_s28 = scalar_lea.hbm %s2895_s12, 256  ;;  %p2492_p1 = scmp.lt.u32.totalorder %s2895_s12, %s3264_s0 }
  0x94   : > { %p2487_p7 = scmp.ne.s32.totalorder %s2895_s12, %s2486_s28  ;;  %p2493_p2 = scmp.lt.u32.totalorder %s2491_s16, %s2486_s28 }
  0x95   : > { %p2495_p4 = scmp.lt.u32.totalorder %s2486_s28, %s2895_s12 }
  0x96   : > { %p2489_p12 = pnand %p2488_p9, %p2487_p7  ;;  %p2494_p13 = por %p2493_p2, %p2492_p1 }
  0x98   : > { %p2490_p0 = pneg %p2489_p12  ;;  %p2496_p8 = por %p2495_p4, %p2494_p13 }
  0x9a   : > { %p2497_p6 = pnand %p2496_p8, %p2490_p0 }
  0x9c   : > { %2500 = shalt.err (!%p2497_p6)
}
  0x9d   : > { %s2501_s14 = scalar_lea.vmem %s2897_s27, 256  ;;  %s2636_s10 = smov [#allocation5]  }
  0x9e   : > { %p2502_p3 = scmp.ne.s32.totalorder %s2897_s27, %s2501_s14  ;;  %s2506_s15 = sshll.u32 %s2636_s10, 4  ;;  %s2507_s15 = int_to_ptr.vmem [resolvable:$false] %s2506_s15 }
  0x9f   : > { %s2508_s11 = scalar_lea.vmem %s2507_s15, 512  ;;  %p2509_p12 = scmp.lt.s32.totalorder %s2897_s27, %s2507_s15 }
  0xa0   : > { %p2504_p5 = pnand %p2502_p3, %p2488_p9  ;;  %p2510_p1 = scmp.lt.s32.totalorder %s2508_s11, %s2501_s14 }
  0xa2   : > { %p2505_p7 = pneg %p2504_p5  ;;  %p2511_p2 = por %p2510_p1, %p2509_p12 }
  0xa4   : > { %p2512_p13 = pnand %p2511_p2, %p2505_p7 }
  0xa6   : > { %2515 = shalt.err (!%p2512_p13)
}
  0xa7   : > { %s2637_s28 = smov 128   ;;  %s2638_s16 = smov 8  }
  0xa8   : > { %2237 = dma.hbm_to_vmem [thread:$0]  (!%p2899_p11), %s2895_s12, 256, %s2897_s27, %s387_s8, %s2637_s28, %s2637_s28, %s2638_s16  }
  0xa9   : > { %s2196_s29 = smul.u32 24, %s2888_s26  ;;  %s3266_s3 = sand.u32 1, %s2628_s20  }
  0xaa   : > { %s2197_s14 = smul.u32 384, %s2628_s20  ;;  %s2946_s5 = scalar_lea.sflag [#allocation9], %s3266_s3 }
  0xab   : > { %s411_s30 = scalar_lea.vmem [#allocation8], %s2196_s29  ;;  %s2521_s27 = scalar_lea.hbm %s3228_s1, 768 }
  0xac   : > { %s2940_s11 = scalar_lea.hbm %s3228_s1, %s2197_s14  ;;  %s418_s0 = sshll.u32 %s411_s30, 4  ;;  %s2942_s0 = int_to_ptr.vmem [resolvable:$true] %s418_s0 }
  0xad   : > { %s2516_s7 = scalar_lea.hbm %s2940_s11, 384  ;;  %p2522_p6 = scmp.lt.u32.totalorder %s2940_s11, %s3228_s1 }
  0xae   : > { %p2517_p0 = scmp.ne.s32.totalorder %s2940_s11, %s2516_s7  ;;  %p2523_p3 = scmp.lt.u32.totalorder %s2521_s27, %s2516_s7 }
  0xaf   : > { %p2525_p7 = scmp.lt.u32.totalorder %s2516_s7, %s2940_s11 }
  0xb0   : > { %p2519_p4 = pnand %p2517_p0, %p2488_p9  ;;  %p2524_p5 = por %p2523_p3, %p2522_p6 }
  0xb2   : > { %p2520_p8 = pneg %p2519_p4  ;;  %p2526_p12 = por %p2525_p7, %p2524_p5 }
  0xb4   : > { %p2527_p1 = pnand %p2526_p12, %p2520_p8 }
  0xb6   : > { %2530 = shalt.err (!%p2527_p1)
}
  0xb7   : > { %s2531_s3 = scalar_lea.vmem %s2942_s0, 384  ;;  %s2639_s30 = smov [#allocation8]  }
  0xb8   : > { %p2532_p2 = scmp.ne.s32.totalorder %s2942_s0, %s2531_s3  ;;  %s2536_s29 = sshll.u32 %s2639_s30, 4  ;;  %s2537_s29 = int_to_ptr.vmem [resolvable:$false] %s2536_s29 }
  0xb9   : > { %s2538_s10 = scalar_lea.vmem %s2537_s29, 768  ;;  %p2539_p4 = scmp.lt.s32.totalorder %s2942_s0, %s2537_s29 }
  0xba   : > { %p2534_p13 = pnand %p2532_p2, %p2488_p9  ;;  %p2540_p6 = scmp.lt.s32.totalorder %s2538_s10, %s2531_s3 }
  0xbc   : > { %p2535_p0 = pneg %p2534_p13  ;;  %p2541_p3 = por %p2540_p6, %p2539_p4 }
  0xbe   : > { %p2542_p5 = pnand %p2541_p3, %p2535_p0 }
  0xc0   : > { %2545 = shalt.err (!%p2542_p5)
}
  0xc1   : > { %2240 = dma.hbm_to_vmem [thread:$0]  (!%p2899_p11), %s2940_s11, 384, %s2942_s0, %s2946_s5, %s2637_s28, %s2637_s28, %s2638_s16  }
  0xc2   : > { %p3267_p9 = scmp.ne.s32.totalorder %s3256_s25, 0 }
  0xc3   : > { %s2978_s7 = sand.u32 (!%p3267_p9), 1, %s2620_s18   ;;  %p3268_p8 = scmp.ne.s32.totalorder (!%p3267_p9), %s3253_s23, 0 }
  0xc4   : > { %436 = sbr.rel (%p3267_p9) target bundleno = 3002 (0xbba), region = 64  ;;  %s1903_s15 = sshll.u32 (!%p3267_p9), %s2978_s7, 4 }
  0xc5   : > { %s439_s26 = scalar_lea.sflag (!%p3267_p9), [#allocation6], %s2978_s7  ;;  %s2984_s13 = scalar_lea.vmem (!%p3267_p9), [#allocation5], %s1903_s15 }
  0xcb   : > { %2591 = dma.done.wait (%p3268_p8), %s439_s26, 256  }
  0xcc   : > { %2593 = vsyncadd (%p3268_p8), %s439_s26, 4294967040  ;;  %s447_s0 = sand.u32 1, %s2729_s21   ;;  %s2198_s5 = smul.u32 24, %s2978_s7 }
  0xcd   : > { %s448_s25 = scalar_lea.sflag [#allocation9], %s447_s0 }
  0xce   : > { %s2992_s28 = scalar_lea.vmem [#allocation8], %s2198_s5 }
  0xcf   : > { %2595 = dma.done.wait (%p3268_p8), %s448_s25, 384  }
  0xd0   : > { %2597 = vsyncadd (%p3268_p8), %s448_s25, 4294966912  ;;  %p3269_p11 = scmp.eq.s32.totalorder %s2729_s21, 0 }
  0xd2   : > { %2599 = dma.done.wait (%p3269_p11), [#allocation9], 1024   ;;  %p3270_p7 = pmov %p3269_p11 }
  0xd4   : > { %2601 = vsyncadd (%p3270_p7), [#allocation9], 4294966272  ;;  %p3271_p12 = pmov %p3270_p7 }
  0xd5   : > { %p3272_p1 = pmov %p3270_p7 }
  0xd6   : > { %2603 = dma.done.wait (%p3271_p12), [#allocation12], 1024  }
  0xd7   : > { %2605 = vsyncadd (%p3272_p1), [#allocation12], 4294966272  ;;  %p3273_p2 = pmov %p3272_p1 }
  0xd8   : > { %p3274_p13 = pmov %p3272_p1 }
  0xd9   : > { %2607 = dma.done.wait (%p3273_p2), [#allocation15], 1024  }
  0xda   : > { %2609 = vsyncadd (%p3274_p13), [#allocation15], 4294966272  ;;  %v2640_v0 = vmov 0.0   ;;  %vm2641_vm0 = vmmov 0   ;;  %v2302_v1 = vld [vmem:[#allocation11] sm:$0xff]   ;;  %v2303_v2 = vld [vmem:[#allocation11 + $0x8] sm:$0xff]  }
  0xdb   : > { %2056 = vmatprep.subr.bf16.mxu0 %v2640_v0  ;;  %2072 = vmatprep.mubr.msk.bf16.mxu0 %vm2641_vm0, %v2640_v0  ;;  %v2305_v3 = vld [vmem:[#allocation10] sm:$0xff]   ;;  %v2304_v4 = vld [vmem:[#allocation11 + $0x10] sm:$0xff]   ;;  %v2307_v5 = vld [vmem:[#allocation10 + $0x8] sm:$0xff]   ;;  %vm679_vm1 = vcmask 523264   ;;  %vm875_vm2 = vcmask 261120   ;;  %p514_p0 = scmp.lt.s32.totalorder %s2729_s21, 1 }
  0xdc   : > { %2076 = vmatprep.subr.bf16.mxu1 %v2302_v1  ;;  %2057 = vmatpush3.bf16.msra.mxu0 %v2305_v3  ;;  %v521_v6 = vld [vmem:[%s2992_s28] sm:$0xff]  ;;  %v522_v7 = vld [vmem:[%s2992_s28 + $0x8] sm:$0xff]  ;;  %v523_v11 = vld [vmem:[%s2992_s28 + $0x10] sm:$0xff]  ;;  %vm926_vm3 = vcmask 195584   ;;  %s2642_s30 = smov 96   ;;  %s3275_s26 = sld [smem:[#allocation29_spill]] }
  0xdd   : > { %2077 = vmatpush3.bf16.msra.mxu1 %v2302_v1  ;;  %2058 = vmatprep.subr.bf16.mxu0 %v2640_v0  ;;  %v524_v8 = vpack.c.bf16 %v522_v7, %v521_v6  ;;  %v2306_v9 = vld [vmem:[#allocation11 + $0x18] sm:$0xff]   ;;  %v2308_v10 = vld [vmem:[#allocation10 + $0x10] sm:$0xff]   ;;  %v3019_v13 = vpack.c.bf16 %v523_v11, %v523_v11  ;;  %v2310_v14 = vld [vmem:[#allocation10 + $0x20] sm:$0xff]   ;;  %s515_s27 = scalar_select %p514_p0, %s2729_s21, 1  ;;  %vm962_vm4 = vcmask 1043456  }
  0xde   : > { %2078 = vmatprep.subr.bf16.mxu1 %v2303_v2  ;;  %v2309_v12 = vld [vmem:[#allocation10 + $0x18] sm:$0xff]   ;;  %v2311_v15 = vld [vmem:[#allocation10 + $0x28] sm:$0xff]   ;;  %v2312_v16 = vld [vmem:[#allocation10 + $0x30] sm:$0xff]   ;;  %s2644_s0 = smov 32   ;;  %s3276_s28 = sld [smem:[#allocation30_spill]] }
  0xdf   : > { %2084 = vmatprep.mubr.msk.bf16.mxu1 %vm679_vm1, %v524_v8  ;;  %v2313_v17 = vld [vmem:[#allocation10 + $0x38] sm:$0xff]   ;;  %v518_v18 = vld [vmem:[%s2984_s13] sm:$0xff]  ;;  %v2318_v44 = vld [vmem:[#allocation13 + $0x8] sm:$0xff]   ;;  %s516_s3 = scalar_lea.vmem %s3229_s2, %s515_s27  ;;  %s513_s23 = scalar_lea.vmem [#allocation16], %s1903_s15 }
  0xe0   : > { %2059 = vmatpush3.bf16.msra.mxu0 %v2307_v5  ;;  %v519_v19 = vld [vmem:[%s2984_s13 + $0x8] sm:$0xff]  ;;  %v2317_v43 = vld [vmem:[#allocation13] sm:$0xff]   ;;  %v2319_v45 = vld [vmem:[#allocation13 + $0x10] sm:$0xff]   ;;  %s2643_s13 = smov 64   ;;  %s1748_s16 = sshll.u32 %s513_s23, 4  ;;  %s3178_s16 = int_to_ptr.vmem [resolvable:$true] %s1748_s16 }
  0xe1   : > { %2079 = vmatpush3.bf16.msra.mxu1 %v2303_v2  ;;  %2060 = vmatprep.subr.bf16.mxu0 %v2640_v0  ;;  %v520_v20 = vpack.c.bf16 %v519_v19, %v518_v18  ;;  %v1918_v21 = vld [vmem:[%s3233_s6] ss:$0 sm:$0xff]  ;;  %s1988_s11 = sshll.u32 %s2729_s21, 8  ;;  %s3277_s8 = sld [smem:[#allocation31_spill]] }
  0xe2   : > { %2080 = vmatprep.subr.bf16.mxu1 %v2304_v4  ;;  %v1909_v32 = vld [vmem:[%s3231_s4] ss:$0 sm:$0xff]  ;;  %s1735_s15 = scalar_lea.sflag [#allocation7], %s2978_s7  ;;  %s2645_s21 = smov [#allocation16]  }
  0xe3   : > { %v2320_v46 = vld [vmem:[#allocation13 + $0x18] sm:$0xff]  }
  0xe4   : > { %2061 = vmatpush3.bf16.msra.mxu0 %v2308_v10  ;;  %v3060_v47 = vld [vmem:[%s516_s3] ss:$0 sm:$0xff]  ;;  %s2546_s3 = scalar_lea.vmem %s3178_s16, 256 }
  0xe5   : > { %2081 = vmatpush3.bf16.msra.mxu1 %v2304_v4  ;;  %2062 = vmatprep.subr.bf16.mxu0 %v2640_v0  ;;  %v1928_v57 = vld [vmem:[%s3275_s26] ss:$0 sm:$0xff]  ;;  %p2547_p4 = scmp.ne.s32.totalorder %s3178_s16, %s2546_s3 }
  0xe6   : > { %2082 = vmatprep.subr.bf16.mxu1 %v2306_v9 }
  0xe7   : > { %s3183_s14 = scalar_lea.hbm %s3277_s8, %s1988_s11  ;;  %p2548_p6 = pnand %p2547_p4, %p2879_p10 }
  0xe8   : > { %2063 = vmatpush3.bf16.msra.mxu0 %v2309_v12 }
  0xe9   : > { %2083 = vmatpush3.bf16.msra.mxu1 %v2306_v9  ;;  %2064 = vmatprep.subr.bf16.mxu0 %v2640_v0  ;;  %p2549_p3 = pneg %p2548_p6 }
  0xea   : > { %2088 = vmatprep.subr.bf16.mxu1 %v2317_v43 }
  0xec   : > { %2085 = vmatmul.mubr.msk.bf16.vlgmr.msra.gmra.mrb[0].mxu1 %vm679_vm1, %v3019_v13  ;;  %2065 = vmatpush3.bf16.msra.mxu0 %v2310_v14 }
  0xed   : > { %2096 = vmatprep.mubr.msk.bf16.mxu1 %vm679_vm1, %v524_v8  ;;  %2066 = vmatprep.subr.bf16.mxu0 %v2640_v0 }
  0xee   : > { %2089 = vmatpush3.bf16.msra.mxu1 %v2317_v43 }
  0xef   : > { %2090 = vmatprep.subr.bf16.mxu1 %v2318_v44 }
  0xf0   : > { %2067 = vmatpush3.bf16.msra.mxu0 %v2311_v15 }
  0xf1   : > { %2068 = vmatprep.subr.bf16.mxu0 %v2640_v0 }
  0xf2   : > { %2091 = vmatpush3.bf16.msra.mxu1 %v2318_v44 }
  0xf3   : > { %2092 = vmatprep.subr.bf16.mxu1 %v2319_v45 }
  0xf4   : > { %2069 = vmatpush3.bf16.msra.mxu0 %v2312_v16 }
  0xf5   : > { %2070 = vmatprep.subr.bf16.mxu0 %v2640_v0 }
  0xf6   : > { %2093 = vmatpush3.bf16.msra.mxu1 %v2319_v45 }
  0xf7   : > { %2094 = vmatprep.subr.bf16.mxu1 %v2320_v46 }
  0xf8   : > { %2071 = vmatpush3.bf16.msra.mxu0 %v2313_v17 }
  0xf9   : > { %2100 = vmatprep.subr.bf16.mxu0 %v2640_v0 }
  0xfa   : > { %2095 = vmatpush3.bf16.msra.mxu1 %v2320_v46 }
  0xfb   : > { %2073 = vmatmul.mubr.bf16.vlgmr.msra.gmra.mrb[0].mxu0 %v520_v20  ;;  %2108 = vmatprep.subr.bf16.mxu1 %v2640_v0 }
  0xfc   : > { %2104 = vmatprep.mubr.msk.bf16.mxu0 %vm2641_vm0, %v2640_v0 }
  0xfd   : > { %2097 = vmatmul.mubr.msk.bf16.vlgmr.msra.gmra.mrb[4].mxu1 %vm679_vm1, %v3019_v13 }
  0xfe   : > { %2112 = vmatprep.mubr.msk.bf16.mxu1 %vm2641_vm0, %v2640_v0 }
 0x1bf   : > { %v2086_v22 = vpop.f32.mrb[0].mxu1 }
 0x1c0   : > { %v729_v23 = vadd.f32 %v2086_v22, %v1918_v21  ;;  %v720_v24 = vpop.f32.mrb[1].mxu1 }
 0x1c1   : > { %v2087_v25 = vpop.f32.mrb[2].mxu1  ;;  %v721_v28 = vadd.f32 %v1918_v21, %v720_v24 }
 0x1c2   : > { %v1984_v26 = vpack.c.bf16 %v729_v23, %v729_v23  ;;  %v723_v27 = vpop.f32.mrb[3].mxu1 }
 0x1c3   : > { %v724_v29 = vadd.f32 %v1918_v21, %v723_v27 }
 0x1c4   : > { %749 = vst [vmem:[#allocation3 + $0x8] sm:$0xf] %v1984_v26 }
 0x1c5   : > { %v1992_v30 = vpack.c.bf16 %v724_v29, %v721_v28  ;;  %v2324_v29 = vld [vmem:[#allocation14] sm:$0xff]  }
 0x1c7   : > { %1993 = vst [vmem:[#allocation3] sm:$0xff] %v1992_v30  }
 0x1cb   : > { %v2315_v40 = vld [vmem:[#allocation3 + $0x8] ss:$0 sps:$4 sm:$0xff]  }
 0x1cc   : > { %v883_v42 = vsel %vm875_vm2, %v2315_v40, 0  ;;  %v2321_v17 = vld [vmem:[#allocation3 + $0x8] ss:$0 sps:$4 sm:$0xff]  }
 0x1ce   : > { %v2314_v31 = vld [vmem:[#allocation3] sm:$0xff]   ;;  %v631_v34 = vpop.f32.mrb[0].mxu0 }
 0x1cf   : > { %v880_v33 = vsel %vm875_vm2, %v2314_v31, 0  ;;  %v632_v35 = vadd.f32 %v1909_v32, %v631_v34  ;;  %v2074_v36 = vpop.f32.mrb[1].mxu0  ;;  %v2316_v56 = vld [vmem:[#allocation3] sm:$0xff]   ;;  %v2325_v31 = vld [vmem:[#allocation14 + $0x8] sm:$0xff]  }
 0x1d0   : > { %2101 = vmatpush3.bf16.xpose.msra.mxu0 %v880_v33  ;;  %v634_v37 = vpop.f32.mrb[2].mxu0  ;;  %v2098_v58 = vpop.f32.mrb[4].mxu1 }
 0x1d1   : > { %2102 = vmatprep.subr.bf16.mxu0 %v2640_v0  ;;  %v635_v38 = vadd.f32 %v1909_v32, %v634_v37  ;;  %v2075_v39 = vpop.f32.mrb[3].mxu0  ;;  %v832_v59 = vadd.f32 %v2098_v58, %v1928_v57  ;;  %v823_v60 = vpop.f32.mrb[5].mxu1 }
 0x1d2   : > { %v824_v61 = vadd.f32 %v1928_v57, %v823_v60  ;;  %v2099_v62 = vpop.f32.mrb[6].mxu1 }
 0x1d3   : > { %v3042_v41 = vpack.c.bf16 %v635_v38, %v632_v35  ;;  %v1987_v63 = vpack.c.bf16 %v832_v59, %v832_v59  ;;  %v826_v1 = vpop.f32.mrb[7].mxu1 }
 0x1d4   : > { %v827_v2 = vadd.f32 %v1928_v57, %v826_v1 }
 0x1d5   : > { %852 = vst [vmem:[#allocation4 + $0x8] sm:$0xf] %v1987_v63  ;;  %v2331_v63 = vld [vmem:[#allocation3] sm:$0xff]  }
 0x1d6   : > { %v1997_v3 = vpack.c.bf16 %v827_v2, %v824_v61 }
 0x1d8   : > { %2103 = vmatpush3.bf16.xpose.msra.mxu0 %v883_v42  ;;  %1998 = vst [vmem:[#allocation4] sm:$0xff] %v1997_v3  }
 0x1d9   : > { %2124 = vmatprep.subr.bf16.mxu0 %v2640_v0 }
 0x1dc   : > { %v2323_v15 = vld [vmem:[#allocation4 + $0x8] ss:$0 sps:$4 sm:$0xff]  }
 0x1dd   : > { %v964_v16 = vsel %vm962_vm4, %v2323_v15, 0  ;;  %v2330_v62 = vld [vmem:[#allocation4 + $0x8] ss:$0 sps:$4 sm:$0xff]  }
 0x1df   : > { %2105 = vmatmul.mubr.msk.bf16.vlgmr.msra.gmra.mrb[4].mxu0 %vm875_vm2, %v3042_v41  ;;  %v2322_v14 = vld [vmem:[#allocation4] sm:$0xff]  }
 0x1e0   : > { %2128 = vmatprep.mubr.msk.bf16.mxu0 %vm2641_vm0, %v2640_v0  ;;  %2109 = vmatpush3.bf16.msra.mxu1 %v2322_v14  ;;  %v2326_v46 = vld [vmem:[#allocation4] sm:$0xff]   ;;  %v2333_v14 = vld [vmem:[#allocation14 + $0x18] sm:$0xff]  }
 0x1e1   : > { %2110 = vmatprep.subr.bf16.mxu1 %v2640_v0 }
 0x1e4   : > { %2111 = vmatpush3.bf16.msra.mxu1 %v964_v16 }
 0x1e5   : > { %2116 = vmatprep.subr.bf16.mxu1 %v2640_v0 }
 0x2b2   : > { %v919_v48 = vpop.f32.mrb[4].mxu0 }
 0x2b3   : > { %v920_v49 = vadd.f32 %v3060_v47, %v919_v48  ;;  %v2106_v50 = vpop.f32.mrb[5].mxu0  ;;  %v2327_v48 = vld [vmem:[#allocation3] sm:$0xff]  }
 0x2b4   : > { %v922_v51 = vpop.f32.mrb[6].mxu0  ;;  %v2329_v50 = vld [vmem:[#allocation3 + $0x8] ss:$0 sps:$4 sm:$0xff]  }
 0x2b5   : > { %v923_v52 = vadd.f32 %v3060_v47, %v922_v51  ;;  %v2107_v53 = vpop.f32.mrb[7].mxu0  ;;  %v927_v54 = vsel %vm926_vm3, %v920_v49, -inf }
 0x2b6   : > { %928 = vmax.xlane.f32.xlu0 %v927_v54 }
 0x2b7   : > { %v930_v55 = vsel %vm926_vm3, %v923_v52, -inf }
 0x2ba   : > { %931 = vmax.xlane.f32.xlu0 %v930_v55 }
 0x2d0   : > { %1030 = vrot.lane.b32.xlu0 %v2316_v56, %s2642_s30 }
 0x343   : > { %v929_v4 = vpop.xlane.xlu0 %928 }
 0x344   : > { %v933_v5 = vsub.f32 %v920_v49, %v929_v4  ;;  %v2328_v49 = vld [vmem:[#allocation3 + $0x8] ss:$0 sps:$4 sm:$0xff]  }
 0x346   : > { %v935_v6 = vmul.f32 1.442695, %v933_v5 }
 0x347   : > { %v932_v7 = vpop.xlane.xlu0 %931 }
 0x348   : > { %2342 = vpow2.f32 %v935_v6  ;;  %v934_v8 = vsub.f32 %v923_v52, %v932_v7 }
 0x34a   : > { %v937_v9 = vmul.f32 1.442695, %v934_v8 }
 0x34b   : > { %v1031_v24 = vpop.permute.xlu0 %1030 }
 0x34c   : > { %2344 = vpow2.f32 %v937_v9  ;;  %v1038_v26 = vsel %vm875_vm2, %v1031_v24, 0 }
 0x352   : > { %v2343_v10 = vpop.eup %2342 }
 0x353   : > { %v939_v11 = vsel %vm926_vm3, %v2343_v10, 0.0 }
 0x354   : > { %940 = vadd.xlane.f32.xlu1 %v939_v11 }
 0x356   : > { %v2345_v12 = vpop.eup %2344 }
 0x357   : > { %v942_v13 = vsel %vm926_vm3, %v2345_v12, 0.0 }
 0x358   : > { %943 = vadd.xlane.f32.xlu1 %v942_v13  ;;  %v2332_v13 = vld [vmem:[#allocation14 + $0x10] sm:$0xff]  }
 0x369   : > { %1032 = vrot.lane.b32.xlu1 %v2321_v17, %s2642_s30 }
 0x36d   : > { %1020 = vrot.lane.b32.xlu1 %v3042_v41, %s2642_s30 }
 0x3e1   : > { %v941_v18 = vpop.xlane.xlu1 %940 }
 0x3e2   : > { %2346 = vrcp.f32 %v941_v18 }
 0x3e5   : > { %v944_v19 = vpop.xlane.xlu1 %943 }
 0x3e6   : > { %2348 = vrcp.f32 %v944_v19 }
 0x3e9   : > { %v1033_v27 = vpop.permute.xlu1 %1032 }
 0x3ea   : > { %v1041_v28 = vsel %vm875_vm2, %v1033_v27, 0 }
 0x3ec   : > { %v2347_v20 = vpop.eup %2346 }
 0x3ed   : > { %v946_v22 = vmul.f32 %v2347_v20, %v2343_v10  ;;  %v1021_v30 = vpop.permute.xlu1 %1020 }
 0x3f0   : > { %v2349_v21 = vpop.eup %2348 }
 0x3f1   : > { %v948_v23 = vmul.f32 %v2349_v21, %v2345_v12 }
 0x3f3   : > { %v949_v25 = vpack.c.bf16 %v948_v23, %v946_v22 }
 0x3f5   : > { %2113 = vmatmul.mubr.msk.bf16.vlgmr.msra.gmra.mrb[8].mxu1 %vm926_vm3, %v949_v25 }
 0x3f6   : > { %2117 = vmatpush3.bf16.xpose.msra.mxu1 %v1038_v26  ;;  %2120 = vmatprep.mubr.msk.bf16.mxu1 %vm2641_vm0, %v2640_v0 }
 0x3f7   : > { %2118 = vmatprep.subr.bf16.mxu1 %v2640_v0 }
 0x3fe   : > { %2119 = vmatpush3.bf16.xpose.msra.mxu1 %v1041_v28 }
 0x3ff   : > { %2140 = vmatprep.subr.bf16.mxu1 %v2640_v0 }
 0x405   : > { %2121 = vmatmul.mubr.msk.bf16.vlgmr.msra.gmra.mrb[12].mxu1 %vm875_vm2, %v1021_v30 }
 0x406   : > { %2141 = vmatpush3.bf16.msra.mxu1 %v2324_v29  ;;  %2144 = vmatprep.mubr.msk.bf16.mxu1 %vm2641_vm0, %v2640_v0 }
 0x407   : > { %2142 = vmatprep.subr.bf16.mxu1 %v2640_v0 }
 0x40a   : > { %2143 = vmatpush3.bf16.msra.mxu1 %v2325_v31 }
 0x40b   : > { %2156 = vmatprep.subr.bf16.mxu1 %v2640_v0 }
 0x4c8   : > { %v1000_v32 = vpop.f32.mrb[8].mxu1 }
 0x4c9   : > { %v2114_v33 = vpop.f32.mrb[9].mxu1 }
 0x4ca   : > { %v1003_v34 = vpop.f32.mrb[10].mxu1 }
 0x4cb   : > { %v1007_v35 = vpack.c.bf16 %v1003_v34, %v1000_v32  ;;  %v2115_v36 = vpop.f32.mrb[11].mxu1 }
 0x4cd   : > { %2145 = vmatmul.mubr.msk.bf16.vlgmr.msra.gmra.mrb[16].mxu1 %vm875_vm2, %v1007_v35 }
 0x4ce   : > { %2160 = vmatprep.mubr.msk.bf16.mxu1 %vm2641_vm0, %v2640_v0 }
 0x4d8   : > { %v1077_v37 = vpop.f32.mrb[12].mxu1 }
 0x4d9   : > { %v1078_v38 = vadd.f32 %v3060_v47, %v1077_v37  ;;  %v2122_v39 = vpop.f32.mrb[13].mxu1 }
 0x4da   : > { %v1080_v40 = vpop.f32.mrb[14].mxu1 }
 0x4db   : > { %v1081_v42 = vadd.f32 %v3060_v47, %v1080_v40  ;;  %v2123_v43 = vpop.f32.mrb[15].mxu1  ;;  %v1084_v44 = vsel %vm926_vm3, %v1078_v38, -inf }
 0x4dc   : > { %1085 = vmax.xlane.f32.xlu1 %v1084_v44 }
 0x4dd   : > { %v1087_v45 = vsel %vm926_vm3, %v1081_v42, -inf }
 0x4de   : > { %1088 = vmax.xlane.f32.xlu0 %v1087_v45 }
 0x4ed   : > { %1115 = vrot.lane.b32.xlu1 %v2326_v46, %s2642_s30 }
 0x4f1   : > { %1303 = vrot.lane.b32.xlu1 %v2327_v48, %s2643_s13 }
 0x4f5   : > { %1305 = vrot.lane.b32.xlu1 %v2328_v49, %s2643_s13 }
 0x4f9   : > { %1293 = vrot.lane.b32.xlu1 %v3042_v41, %s2643_s13 }
 0x4fd   : > { %1524 = vrot.lane.b32.xlu1 %v2329_v50, %s2644_s0  ;;  %v2334_v50 = vld [vmem:[#allocation4] sm:$0xff]  }
 0x569   : > { %v1086_v51 = vpop.xlane.xlu1 %1085 }
 0x56a   : > { %v1090_v52 = vsub.f32 %v1078_v38, %v1086_v51 }
 0x56b   : > { %v1089_v53 = vpop.xlane.xlu0 %1088 }
 0x56c   : > { %v1092_v54 = vmul.f32 1.442695, %v1090_v52  ;;  %v1091_v55 = vsub.f32 %v1081_v42, %v1089_v53 }
 0x56d   : > { %v1116_v56 = vpop.permute.xlu1 %1115 }
 0x56e   : > { %2350 = vpow2.f32 %v1092_v54  ;;  %v1094_v57 = vmul.f32 1.442695, %v1091_v55  ;;  %2125 = vmatpush3.bf16.msra.mxu0 %v1116_v56 }
 0x56f   : > { %2126 = vmatprep.subr.bf16.mxu0 %v2640_v0 }
 0x570   : > { %2352 = vpow2.f32 %v1094_v57 }
 0x571   : > { %v1304_v17 = vpop.permute.xlu1 %1303 }
 0x572   : > { %v1311_v21 = vsel %vm875_vm2, %v1304_v17, 0 }
 0x575   : > { %v1306_v22 = vpop.permute.xlu1 %1305 }
 0x576   : > { %v1314_v23 = vsel %vm875_vm2, %v1306_v22, 0  ;;  %v2337_v22 = vld [vmem:[#allocation4 + $0x8] ss:$0 sps:$4 sm:$0xff]  }
 0x578   : > { %v2351_v58 = vpop.eup %2350 }
 0x579   : > { %v1096_v59 = vsel %vm926_vm3, %v2351_v58, 0.0  ;;  %v1294_v25 = vpop.permute.xlu1 %1293 }
 0x57a   : > { %v2353_v60 = vpop.eup %2352  ;;  %1097 = vadd.xlane.f32.xlu0 %v1096_v59 }
 0x57b   : > { %v1099_v61 = vsel %vm926_vm3, %v2353_v60, 0.0 }
 0x57d   : > { %v1525_v27 = vpop.permute.xlu1 %1524 }
 0x57e   : > { %1100 = vadd.xlane.f32.xlu0 %v1099_v61  ;;  %v1533_v28 = vsel %vm875_vm2, %v1525_v27, 0 }
 0x594   : > { %1117 = vrot.lane.b32.xlu0 %v2330_v62, %s2642_s30  ;;  %s2550_s30 = sshll.u32 %s2645_s21, 4  ;;  %s2551_s30 = int_to_ptr.vmem [resolvable:$false] %s2550_s30 }
 0x595   : > { %s2552_s29 = scalar_lea.vmem %s2551_s30, 512  ;;  %p2553_p5 = scmp.lt.s32.totalorder %s3178_s16, %s2551_s30 }
 0x596   : > { %p2554_p9 = scmp.lt.s32.totalorder %s2552_s29, %s2546_s3 }
 0x598   : > { %1522 = vrot.lane.b32.xlu0 %v2331_v63, %s2644_s0  ;;  %p2555_p8 = por %p2554_p9, %p2553_p5 }
 0x59a   : > { %p2556_p11 = pnand %p2555_p8, %p2549_p3 }
 0x59c   : > { %1512 = vrot.lane.b32.xlu0 %v3042_v41, %s2644_s0 }
 0x5a0   : > { %v1278_v1 = vpop.f32.mrb[16].mxu1 }
 0x5a1   : > { %v2146_v2 = vpop.f32.mrb[17].mxu1 }
 0x5a2   : > { %v1281_v3 = vpop.f32.mrb[18].mxu1 }
 0x5a3   : > { %v2147_v4 = vpop.f32.mrb[19].mxu1 }
 0x607   : > { %v1098_v5 = vpop.xlane.xlu0 %1097 }
 0x608   : > { %2354 = vrcp.f32 %v1098_v5 }
 0x60b   : > { %v1101_v6 = vpop.xlane.xlu0 %1100 }
 0x60c   : > { %2356 = vrcp.f32 %v1101_v6 }
 0x60f   : > { %v1118_v7 = vpop.permute.xlu0 %1117 }
 0x610   : > { %v1124_v8 = vsel %vm962_vm4, %v1118_v7, 0 }
 0x611   : > { %2127 = vmatpush3.bf16.msra.mxu0 %v1124_v8 }
 0x612   : > { %2132 = vmatprep.subr.bf16.mxu0 %v2640_v0  ;;  %v2355_v9 = vpop.eup %2354 }
 0x613   : > { %v1103_v11 = vmul.f32 %v2355_v9, %v2351_v58  ;;  %v1523_v24 = vpop.permute.xlu0 %1522  ;;  %v2336_v9 = vld [vmem:[#allocation4] sm:$0xff]  }
 0x614   : > { %v1530_v26 = vsel %vm875_vm2, %v1523_v24, 0  ;;  %v2339_v24 = vld [vmem:[#allocation14 + $0x28] sm:$0xff]  }
 0x616   : > { %v2357_v10 = vpop.eup %2356 }
 0x617   : > { %v1105_v12 = vmul.f32 %v2357_v10, %v2353_v60  ;;  %v1513_v29 = vpop.permute.xlu0 %1512 }
 0x619   : > { %v1106_v41 = vpack.c.bf16 %v1105_v12, %v1103_v11 }
 0x61b   : > { %2129 = vmatmul.mubr.msk.bf16.vlgmr.msra.gmra.mrb[8].mxu0 %vm926_vm3, %v1106_v41 }
 0x61c   : > { %2133 = vmatpush3.bf16.msra.mxu0 %v2332_v13  ;;  %2136 = vmatprep.mubr.msk.bf16.mxu0 %vm2641_vm0, %v2640_v0 }
 0x61d   : > { %2134 = vmatprep.subr.bf16.mxu0 %v2640_v0 }
 0x620   : > { %2135 = vmatpush3.bf16.msra.mxu0 %v2333_v14 }
 0x621   : > { %2148 = vmatprep.subr.bf16.mxu0 %v2640_v0 }
 0x6ee   : > { %v1160_v15 = vpop.f32.mrb[8].mxu0 }
 0x6ef   : > { %v2130_v16 = vpop.f32.mrb[9].mxu0 }
 0x6f0   : > { %v1163_v18 = vpop.f32.mrb[10].mxu0 }
 0x6f1   : > { %v1167_v19 = vpack.c.bf16 %v1163_v18, %v1160_v15  ;;  %v2131_v20 = vpop.f32.mrb[11].mxu0 }
 0x6f3   : > { %2137 = vmatmul.mubr.msk.bf16.vlgmr.msra.gmra.mrb[12].mxu0 %vm875_vm2, %v1167_v19 }
 0x6f4   : > { %2149 = vmatpush3.bf16.xpose.msra.mxu0 %v1311_v21  ;;  %2152 = vmatprep.mubr.msk.bf16.mxu0 %vm2641_vm0, %v2640_v0 }
 0x6f5   : > { %2150 = vmatprep.subr.bf16.mxu0 %v2640_v0 }
 0x6fc   : > { %2151 = vmatpush3.bf16.xpose.msra.mxu0 %v1314_v23  ;;  %v2338_v23 = vld [vmem:[#allocation14 + $0x20] sm:$0xff]  }
 0x6fd   : > { %2172 = vmatprep.subr.bf16.mxu0 %v2640_v0 }
 0x703   : > { %2153 = vmatmul.mubr.msk.bf16.vlgmr.msra.gmra.mrb[16].mxu0 %vm875_vm2, %v1294_v25 }
 0x704   : > { %2173 = vmatpush3.bf16.xpose.msra.mxu0 %v1530_v26  ;;  %2176 = vmatprep.mubr.msk.bf16.mxu0 %vm2641_vm0, %v2640_v0 }
 0x705   : > { %2174 = vmatprep.subr.bf16.mxu0 %v2640_v0 }
 0x70c   : > { %2175 = vmatpush3.bf16.xpose.msra.mxu0 %v1533_v28 }
 0x713   : > { %2177 = vmatmul.mubr.msk.bf16.vlgmr.msra.gmra.mrb[20].mxu0 %vm875_vm2, %v1513_v29 }
 0x7c6   : > { %v1222_v30 = vpop.f32.mrb[12].mxu0 }
 0x7c7   : > { %v3131_v31 = vadd.f32 %v1278_v1, %v1222_v30  ;;  %v2138_v32 = vpop.f32.mrb[13].mxu0  ;;  %v2335_v1 = vld [vmem:[#allocation4 + $0x8] ss:$0 sps:$4 sm:$0xff]  }
 0x7c8   : > { %v1225_v33 = vpop.f32.mrb[14].mxu0 }
 0x7c9   : > { %v3133_v34 = vadd.f32 %v1281_v3, %v1225_v33  ;;  %v2139_v35 = vpop.f32.mrb[15].mxu0 }
 0x7d6   : > { %v1350_v36 = vpop.f32.mrb[16].mxu0 }
 0x7d7   : > { %v1351_v37 = vadd.f32 %v3060_v47, %v1350_v36  ;;  %v2154_v38 = vpop.f32.mrb[17].mxu0 }
 0x7d8   : > { %v1353_v39 = vpop.f32.mrb[18].mxu0 }
 0x7d9   : > { %v1354_v40 = vadd.f32 %v3060_v47, %v1353_v39  ;;  %v2155_v42 = vpop.f32.mrb[19].mxu0  ;;  %v1357_v43 = vsel %vm926_vm3, %v1351_v37, -inf }
 0x7da   : > { %1358 = vmax.xlane.f32.xlu1 %v1357_v43  ;;  %v2340_v43 = vld [vmem:[#allocation14 + $0x30] sm:$0xff]  }
 0x7db   : > { %v1360_v44 = vsel %vm926_vm3, %v1354_v40, -inf }
 0x7dc   : > { %1361 = vmax.xlane.f32.xlu0 %v1360_v44  ;;  %v2341_v44 = vld [vmem:[#allocation14 + $0x38] sm:$0xff]  }
 0x7e6   : > { %v1569_v45 = vpop.f32.mrb[20].mxu0 }
 0x7e7   : > { %v2178_v46 = vpop.f32.mrb[21].mxu0  ;;  %v1570_v51 = vadd.f32 %v3060_v47, %v1569_v45 }
 0x7e8   : > { %v1572_v48 = vpop.f32.mrb[22].mxu0 }
 0x7e9   : > { %v2179_v49 = vpop.f32.mrb[23].mxu0  ;;  %v1576_v52 = vsel %vm926_vm3, %v1570_v51, -inf  ;;  %v1573_v6 = vadd.f32 %v3060_v47, %v1572_v48 }
 0x7eb   : > { %1388 = vrot.lane.b32.xlu1 %v2334_v50, %s2643_s13  ;;  %v1579_v8 = vsel %vm926_vm3, %v1573_v6, -inf }
 0x80f   : > { %1577 = vmax.xlane.f32.xlu1 %v1576_v52 }
 0x867   : > { %v1359_v53 = vpop.xlane.xlu1 %1358 }
 0x868   : > { %v1363_v54 = vsub.f32 %v1351_v37, %v1359_v53 }
 0x869   : > { %v1362_v55 = vpop.xlane.xlu0 %1361 }
 0x86a   : > { %v1365_v56 = vmul.f32 1.442695, %v1363_v54  ;;  %v1364_v57 = vsub.f32 %v1354_v40, %v1362_v55 }
 0x86b   : > { %v1389_v58 = vpop.permute.xlu1 %1388 }
 0x86c   : > { %2358 = vpow2.f32 %v1365_v56  ;;  %v1367_v59 = vmul.f32 1.442695, %v1364_v57  ;;  %2157 = vmatpush3.bf16.msra.mxu1 %v1389_v58  ;;  %v1975_v57 = vld [vmem:[%s3276_s28] ss:$0 sm:$0xff] }
 0x86d   : > { %2158 = vmatprep.subr.bf16.mxu1 %v2640_v0 }
 0x86e   : > { %2360 = vpow2.f32 %v1367_v59 }
 0x876   : > { %v2359_v60 = vpop.eup %2358 }
 0x877   : > { %v1369_v61 = vsel %vm926_vm3, %v2359_v60, 0.0 }
 0x878   : > { %v2361_v62 = vpop.eup %2360  ;;  %1370 = vadd.xlane.f32.xlu0 %v1369_v61 }
 0x879   : > { %v1372_v63 = vsel %vm926_vm3, %v2361_v62, 0.0 }
 0x87c   : > { %1373 = vadd.xlane.f32.xlu0 %v1372_v63 }
 0x892   : > { %1390 = vrot.lane.b32.xlu0 %v2335_v1, %s2643_s13 }
 0x89c   : > { %v1578_v2 = vpop.xlane.xlu1 %1577 }
 0x89d   : > { %v1582_v3 = vsub.f32 %v1570_v51, %v1578_v2 }
 0x89f   : > { %v1584_v4 = vmul.f32 1.442695, %v1582_v3 }
 0x8a1   : > { %2362 = vpow2.f32 %v1584_v4 }
 0x8ab   : > { %v2363_v5 = vpop.eup %2362 }
 0x8ac   : > { %v1588_v7 = vsel %vm926_vm3, %v2363_v5, 0.0 }
 0x8ad   : > { %1589 = vadd.xlane.f32.xlu1 %v1588_v7 }
 0x8b1   : > { %1580 = vmax.xlane.f32.xlu0 %v1579_v8 }
 0x8be   : > { %1607 = vrot.lane.b32.xlu1 %v2336_v9, %s2644_s0 }
 0x905   : > { %v1371_v10 = vpop.xlane.xlu0 %1370 }
 0x906   : > { %2364 = vrcp.f32 %v1371_v10 }
 0x909   : > { %v1374_v11 = vpop.xlane.xlu0 %1373 }
 0x90a   : > { %2366 = vrcp.f32 %v1374_v11 }
 0x90d   : > { %v1391_v12 = vpop.permute.xlu0 %1390 }
 0x90e   : > { %v1397_v13 = vsel %vm962_vm4, %v1391_v12, 0 }
 0x90f   : > { %2159 = vmatpush3.bf16.msra.mxu1 %v1397_v13 }
 0x910   : > { %2164 = vmatprep.subr.bf16.mxu1 %v2640_v0  ;;  %v2365_v47 = vpop.eup %2364 }
 0x911   : > { %v1376_v14 = vmul.f32 %v2365_v47, %v2359_v60 }
 0x914   : > { %v2367_v41 = vpop.eup %2366 }
 0x915   : > { %v1378_v15 = vmul.f32 %v2367_v41, %v2361_v62 }
 0x917   : > { %v1379_v16 = vpack.c.bf16 %v1378_v15, %v1376_v14 }
 0x919   : > { %2161 = vmatmul.mubr.msk.bf16.vlgmr.msra.gmra.mrb[20].mxu1 %vm926_vm3, %v1379_v16 }
 0x91a   : > { %2168 = vmatprep.mubr.msk.bf16.mxu1 %vm2641_vm0, %v2640_v0  ;;  %2165 = vmatpush3.bf16.msra.mxu1 %v2338_v23 }
 0x91b   : > { %2166 = vmatprep.subr.bf16.mxu1 %v2640_v0 }
 0x91e   : > { %2167 = vmatpush3.bf16.msra.mxu1 %v2339_v24 }
 0x91f   : > { %2180 = vmatprep.subr.bf16.mxu1 %v2640_v0 }
 0x93a   : > { %v1590_v26 = vpop.xlane.xlu1 %1589 }
 0x93e   : > { %v1581_v17 = vpop.xlane.xlu0 %1580  ;;  %v1608_v35 = vpop.permute.xlu1 %1607 }
 0x93f   : > { %v1583_v18 = vsub.f32 %v1573_v6, %v1581_v17 }
 0x941   : > { %v1586_v19 = vmul.f32 1.442695, %v1583_v18 }
 0x943   : > { %2368 = vpow2.f32 %v1586_v19 }
 0x94d   : > { %v2369_v20 = vpop.eup %2368 }
 0x94e   : > { %v1591_v21 = vsel %vm926_vm3, %v2369_v20, 0.0 }
 0x94f   : > { %1592 = vadd.xlane.f32.xlu0 %v1591_v21 }
 0x965   : > { %1609 = vrot.lane.b32.xlu0 %v2337_v22, %s2644_s0 }
 0x9dc   : > { %v1593_v25 = vpop.xlane.xlu0 %1592 }
 0x9dd   : > { %2370 = vrcp.f32 %v1593_v25 }
 0x9de   : > { %2372 = vrcp.f32 %v1590_v26 }
 0x9e0   : > { %v1610_v37 = vpop.permute.xlu0 %1609 }
 0x9e1   : > { %v1616_v40 = vsel %vm962_vm4, %v1610_v37, 0 }
 0x9e7   : > { %v2371_v33 = vpop.eup %2370 }
 0x9e8   : > { %v2373_v36 = vpop.eup %2372  ;;  %v1597_v38 = vmul.f32 %v2371_v33, %v2369_v20 }
 0x9e9   : > { %v1595_v39 = vmul.f32 %v2373_v36, %v2363_v5 }
 0x9eb   : > { %v1598_v42 = vpack.c.bf16 %v1597_v38, %v1595_v39 }
 0x9ec   : > { %v1433_v27 = vpop.f32.mrb[20].mxu1 }
 0x9ed   : > { %v2162_v28 = vpop.f32.mrb[21].mxu1 }
 0x9ee   : > { %v1436_v29 = vpop.f32.mrb[22].mxu1 }
 0x9ef   : > { %v1440_v30 = vpack.c.bf16 %v1436_v29, %v1433_v27  ;;  %v2163_v32 = vpop.f32.mrb[23].mxu1 }
 0x9f1   : > { %2169 = vmatmul.mubr.msk.bf16.vlgmr.msra.gmra.mrb[24].mxu1 %vm875_vm2, %v1440_v30 }
 0x9f2   : > { %2181 = vmatpush3.bf16.msra.mxu1 %v1608_v35  ;;  %2184 = vmatprep.mubr.msk.bf16.mxu1 %vm2641_vm0, %v2640_v0 }
 0x9f3   : > { %2182 = vmatprep.subr.bf16.mxu1 %v2640_v0 }
 0x9f6   : > { %2183 = vmatpush3.bf16.msra.mxu1 %v1616_v40 }
 0x9f7   : > { %2188 = vmatprep.subr.bf16.mxu1 %v2640_v0 }
 0x9f9   : > { %2185 = vmatmul.mubr.msk.bf16.vlgmr.msra.gmra.mrb[28].mxu1 %vm926_vm3, %v1598_v42 }
 0x9fa   : > { %2192 = vmatprep.mubr.msk.bf16.mxu1 %vm2641_vm0, %v2640_v0  ;;  %2189 = vmatpush3.bf16.msra.mxu1 %v2340_v43 }
 0x9fb   : > { %2190 = vmatprep.subr.bf16.mxu1 %v2640_v0 }
 0x9fe   : > { %2191 = vmatpush3.bf16.msra.mxu1 %v2341_v44 }
 0xac4   : > { %v1495_v45 = vpop.f32.mrb[24].mxu1 }
 0xac5   : > { %v1502_v46 = vadd.f32 %v1495_v45, %v3131_v31  ;;  %v2170_v48 = vpop.f32.mrb[25].mxu1 }
 0xac6   : > { %v1498_v49 = vpop.f32.mrb[26].mxu1 }
 0xac7   : > { %v1503_v50 = vadd.f32 %v1498_v49, %v3133_v34  ;;  %v2171_v51 = vpop.f32.mrb[27].mxu1 }
 0xacc   : > { %v1652_v52 = vpop.f32.mrb[28].mxu1 }
 0xacd   : > { %v2186_v53 = vpop.f32.mrb[29].mxu1 }
 0xace   : > { %v1655_v54 = vpop.f32.mrb[30].mxu1 }
 0xacf   : > { %v1659_v55 = vpack.c.bf16 %v1655_v54, %v1652_v52  ;;  %v2187_v56 = vpop.f32.mrb[31].mxu1 }
 0xad1   : > { %2193 = vmatmul.mubr.msk.bf16.vlgmr.msra.gmra.mrb[32].mxu1 %vm875_vm2, %v1659_v55 }
 0xba4   : > { %v1714_v0 = vpop.f32.mrb[32].mxu1 }
 0xba5   : > { %v1721_v31 = vadd.f32 %v1714_v0, %v1502_v46  ;;  %v2194_v34 = vpop.f32.mrb[33].mxu1 }
 0xba6   : > { %v1717_v58 = vpop.f32.mrb[34].mxu1 }
 0xba7   : > { %v1730_v59 = vadd.f32 %v1975_v57, %v1721_v31  ;;  %v1722_v60 = vadd.f32 %v1717_v58, %v1503_v50  ;;  %v2195_v61 = vpop.f32.mrb[35].mxu1 }
 0xba9   : > { %1732 = vst [vmem:[%s513_s23] sm:$0xff] %v1730_v59  ;;  %v1731_v62 = vadd.f32 %v1975_v57, %v1722_v60 }
 0xbab   : > { %1733 = vst [vmem:[%s513_s23 + $0x8] sm:$0xff] %v1731_v62 }
 0xbac   : > { %2559 = shalt.err (!%p2556_p11)
}
 0xbad   : > { %s2560_s10 = scalar_lea.hbm %s3183_s14, 256  ;;  %s2564_s0 = scalar_lea.hbm %s3277_s8, 512 }
 0xbae   : > { %p2561_p7 = scmp.ne.s32.totalorder %s3183_s14, %s2560_s10  ;;  %p2565_p2 = scmp.lt.u32.totalorder %s3183_s14, %s3277_s8 }
 0xbaf   : > { %p2566_p13 = scmp.lt.u32.totalorder %s2564_s0, %s2560_s10  ;;  %p2568_p4 = scmp.lt.u32.totalorder %s2560_s10, %s3183_s14 }
 0xbb0   : > { %p2562_p12 = pnand %p2561_p7, %p2879_p10 }
 0xbb1   : > { %p2567_p0 = por %p2566_p13, %p2565_p2 }
 0xbb2   : > { %p2563_p1 = pneg %p2562_p12 }
 0xbb3   : > { %p2569_p6 = por %p2568_p4, %p2567_p0 }
 0xbb5   : > { %p2570_p3 = pnand %p2569_p6, %p2563_p1 }
 0xbb7   : > { %2573 = shalt.err (!%p2570_p3)
}
 0xbb8   : > { %s2646_s28 = smov 128   ;;  %s2647_s23 = smov 8  }
 0xbb9   : > { %2219 = dma.vmem_to_hbm [thread:$0]  (%p2879_p10), %s3178_s16, 256, %s3183_s14, %s1735_s15, %s2646_s28, %s2646_s28, %s2647_s23  }
 0xbba PF: > { %s3278_s11 = sld [smem:[#allocation23_spill]]  ;;  %s3279_s12 = sld [smem:[#allocation24_spill]] }
 0xbbb   : > { %p3281_p9 = scmp.ge.s32.totalorder %s2628_s20, 2 }
 0xbc0   : > { %s1763_s27 = sand.u32 1, %s3278_s11   ;;  %p3280_p5 = scmp.ne.s32.totalorder %s3279_s12, 0 }
 0xbc1   : > { %s1764_s3 = scalar_lea.sflag [#allocation7], %s1763_s27 }
 0xbc2   : > { %p2242_p8 = pnand %p3281_p9, %p3280_p5 }
 0xbc4   : > { %2611 = dma.done.wait (!%p2242_p8), %s1764_s3, 256  }
 0xbc5   : > { %2613 = vsyncadd (!%p2242_p8), %s1764_s3, 4294967040  ;;  %p29_p11 = scmp.ge.s32.totalorder %s2869_s24, 4   ;;  %s3282_s17 = smov %s2620_s18 }
 0xbc6   : > { %s3283_s18 = smov %s2624_s19  ;;  %s3284_s19 = smov %s2885_s22 }
 0xbc7   : > { %s3285_s20 = smov %s2869_s24  ;;  %31 = sbr.rel (!%p29_p11) target bundleno = 17 (0x11), region = 144 }
 0xbce   :  { %1769 = vsyncpa [#allocation6], 1 }
 0xbcf   :  { %1771 = vsyncpa [#allocation6 + $0x1], 1 }
 0xbd0   :  { %1772 = vsyncpa [#allocation9], 1 }
 0xbd1   :  { %1774 = vsyncpa [#allocation9 + $0x1], 1 }
 0xbd2   :  { %1775 = vsyncpa [#allocation12], 1 }
 0xbd3   :  { %1776 = vsyncpa [#allocation15], 1 }
 0xbd4   :  { %1777 = vsyncpa [#allocation7], 1 }
 0xbd5   :  { %1779 = vsyncpa [#allocation7 + $0x1], 1 }

// kernel: tpu_custom_call.1
= control target key start
LH: loop header
LB: loop body
LE: loop exit
PB: predicated region body
PF: predicated region fallthrough
CT: control target
= control target key end

     0   :  { %s3227_s0 = inlined_call_operand.hbm [shape: f32[2,16,128], index: 0, kind: input, shape index: {}]   ;;  %s3228_s1 = inlined_call_operand.hbm [shape: f32[2,24,64], index: 1, kind: input, shape index: {}]   ;;  %s3229_s2 = inlined_call_operand.vmem [shape: f32[2,1,24], index: 2, kind: input, shape index: {}]   ;;  %s3230_s3 = inlined_call_operand.hbm [shape: bf16[128,128], index: 3, kind: input, shape index: {}]   ;;  %s3231_s4 = inlined_call_operand.vmem [shape: f32[1,128], index: 4, kind: input, shape index: {}]   ;;  %s3232_s5 = inlined_call_operand.hbm [shape: bf16[64,128], index: 5, kind: input, shape index: {}]   ;;  %s3233_s6 = inlined_call_operand.vmem [shape: f32[1,128], index: 6, kind: input, shape index: {}]   ;;  %s3234_s7 = inlined_call_operand.hbm [shape: bf16[64,128], index: 7, kind: input, shape index: {}]   ;;  %s3235_s8 = inlined_call_operand.vmem [shape: f32[1,128], index: 8, kind: input, shape index: {}]   ;;  %s3236_s9 = inlined_call_operand.hbm [shape: bf16[4,32,128], index: 9, kind: input, shape index: {}]   ;;  %s3237_s10 = inlined_call_operand.vmem [shape: f32[1,128], index: 10, kind: input, shape index: {}]   ;;  %s3238_s11 = inlined_call_operand.hbm [shape: f32[2,16,128], index: 11, kind: output, shape index: {}]  }
   0x1   :  { %3245 = sst [smem:[#allocation25_spill]] %s3227_s0 }
   0x2   :  { %3246 = sst [smem:[#allocation26_spill]] %s3230_s3 }
   0x3   :  { %3247 = sst [smem:[#allocation27_spill]] %s3232_s5 }
   0x4   :  { %3248 = sst [smem:[#allocation28_spill]] %s3234_s7 }
   0x5   :  { %3249 = sst [smem:[#allocation29_spill]] %s3235_s8 }
   0x6   :  { %3250 = sst [smem:[#allocation30_spill]] %s3237_s10 }
   0x7   :  { %3251 = sst [smem:[#allocation31_spill]] %s3238_s11 }
   0x8   :  { %16 = vsyncpa [#allocation6], 0 }
   0x9   :  { %18 = vsyncpa [#allocation6 + $0x1], 0 }
   0xa   :  { %19 = vsyncpa [#allocation9], 0 }
   0xb   :  { %21 = vsyncpa [#allocation9 + $0x1], 0 }
   0xc   :  { %22 = vsyncpa [#allocation12], 0 }
   0xd   :  { %23 = vsyncpa [#allocation15], 0 }
   0xe   :  { %24 = vsyncpa [#allocation7], 0 }
   0xf   :  { %26 = vsyncpa [#allocation7 + $0x1], 0  ;;  %s2708_s17 = smov 0   ;;  %s2710_s18 = smov 0  }
  0x10   :  { %s2712_s19 = smov 0   ;;  %s2714_s20 = smov 0  }
  0x11 LB: > { %3252 = sst [smem:[#allocation23_spill]] %s2616_s17  ;;  %s2729_s21 = sadd.s32 4294967295, %s2628_s20   ;;  %s2628_s20 = sphi %s2714_s20, %s3285_s20   ;;  %s2624_s19 = sphi %s2712_s19, %s3284_s19   ;;  %s2620_s18 = sphi %s2710_s18, %s3283_s18   ;;  %s2616_s17 = sphi %s2708_s17, %s3282_s17  }
  0x12   : > { %s1891_s22 = sadd.s32 4294967294, %s2628_s20   ;;  %p52_p0 = scmp.ne.s32.totalorder %s2620_s18, %s2616_s17 }
  0x13   : > { %p3240_p1 = scmp.eq.s32.totalorder %s2729_s21, 0  ;;  %p302_p3 = scmp.eq.s32.totalorder %s1891_s22, 1 }
  0x14   : > { %p1892_p5 = scmp.ge.s32.totalorder %s2628_s20, 1  ;;  %p309_p7 = scmp.lt.s32.totalorder %s2628_s20, 3 }
  0x15   : > { %p2738_p4 = por %p3240_p1, %p52_p0  ;;  %p2743_p6 = por %p302_p3, %p52_p0 }
  0x16   : > { %p2748_p8 = pnand %p1892_p5, %p309_p7  ;;  %s2630_s26 = smov [#allocation10]  }
  0x17   : > { %s3253_s23 = scalar_select %p2738_p4, 1, 0 }
  0x18   : > { %s3254_s24 = scalar_select %p2743_p6, 1, 0 }
  0x19   : > { %s3256_s25 = scalar_select %p2748_p8, 1, 0 }
  0x1a   : > { %3255 = sst [smem:[#allocation24_spill]] %s3254_s24  ;;  %s321_s27 = sshll.u32 %s2630_s26, 4  ;;  %s2752_s27 = int_to_ptr.vmem [resolvable:$true] %s321_s27 }
  0x1b   : > { %p2221_p9 = pneg %p2748_p8  ;;  %s2631_s29 = smov [#allocation11]  }
  0x1c   : > { %s337_s30 = sshll.u32 %s2631_s29, 4  ;;  %s2632_s12 = smov [#allocation13]   ;;  %s2763_s30 = int_to_ptr.vmem [resolvable:$true] %s337_s30 }
  0x1d   : > { %p2759_p11 = pnand %p2221_p9, %p3240_p1  ;;  %s2765_s13 = sshll.u32 %s2632_s12, 4  ;;  %s354_s13 = int_to_ptr.vmem [resolvable:$true] %s2765_s13 }
  0x1e   : > { %s3258_s3 = sld [smem:[#allocation26_spill]] }
  0x1f   : > { %p2775_p13 = pneg %p2759_p11 }
  0x24   : > { %s2374_s16 = scalar_lea.hbm %s3258_s3, 1024 }
  0x25   : > { %p2375_p12 = scmp.ne.s32.totalorder %s3258_s3, %s2374_s16  ;;  %p2381_p5 = scmp.lt.u32.totalorder %s2374_s16, %s3258_s3 }
  0x27   : > { %p2377_p0 = pnand %p2775_p13, %p2375_p12 }
  0x29   : > { %p2378_p3 = pneg %p2377_p0 }
  0x2b   : > { %p2383_p7 = pnand %p2381_p5, %p2378_p3 }
  0x2d   : > { %2386 = shalt.err (!%p2383_p7)
}
  0x2e   : > { %s2387_s14 = scalar_lea.vmem %s2752_s27, 1024  ;;  %p2395_p2 = scmp.lt.s32.totalorder %s2752_s27, %s2752_s27 }
  0x2f   : > { %p2388_p9 = scmp.ne.s32.totalorder %s2752_s27, %s2387_s14  ;;  %p2396_p6 = scmp.lt.s32.totalorder %s2387_s14, %s2387_s14 }
  0x31   : > { %p2390_p10 = pnand %p2388_p9, %p2775_p13  ;;  %p2397_p12 = por %p2396_p6, %p2395_p2 }
  0x33   : > { %p2391_p1 = pneg %p2390_p10 }
  0x35   : > { %p2398_p0 = pnand %p2397_p12, %p2391_p1 }
  0x37   : > { %2401 = shalt.err (!%p2398_p0)
}
  0x38   : > { %s2633_s15 = smov 64   ;;  %s2634_s16 = smov 4  }
  0x39   : > { %2224 = dma.hbm_to_vmem [thread:$0]  (!%p2759_p11), %s3258_s3, 1024, %s2752_s27, [#allocation9], %s2633_s15, %s2633_s15, %s2634_s16  }
  0x3a   : > { %s3260_s5 = sld [smem:[#allocation27_spill]] }
  0x40   : > { %s2402_s14 = scalar_lea.hbm %s3260_s5, 512 }
  0x41   : > { %p2403_p1 = scmp.ne.s32.totalorder %s3260_s5, %s2402_s14  ;;  %p2409_p10 = scmp.lt.u32.totalorder %s2402_s14, %s3260_s5 }
  0x43   : > { %p2405_p2 = pnand %p2403_p1, %p2775_p13 }
  0x45   : > { %p2406_p6 = pneg %p2405_p2 }
  0x47   : > { %p2411_p3 = pnand %p2409_p10, %p2406_p6 }
  0x49   : > { %2414 = shalt.err (!%p2411_p3)
}
  0x4a   : > { %s2415_s27 = scalar_lea.vmem %s2763_s30, 512  ;;  %p2423_p12 = scmp.lt.s32.totalorder %s2763_s30, %s2763_s30 }
  0x4b   : > { %p2416_p5 = scmp.ne.s32.totalorder %s2763_s30, %s2415_s27  ;;  %p2424_p0 = scmp.lt.s32.totalorder %s2415_s27, %s2415_s27 }
  0x4d   : > { %p2418_p7 = pnand %p2416_p5, %p2775_p13  ;;  %p2425_p1 = por %p2424_p0, %p2423_p12 }
  0x4f   : > { %p2419_p9 = pneg %p2418_p7 }
  0x51   : > { %p2426_p2 = pnand %p2425_p1, %p2419_p9 }
  0x53   : > { %2429 = shalt.err (!%p2426_p2)
}
  0x54   : > { %2227 = dma.hbm_to_vmem [thread:$0]  (!%p2759_p11), %s3260_s5, 512, %s2763_s30, [#allocation12], %s2633_s15, %s2633_s15, %s2634_s16  }
  0x55   : > { %s3261_s7 = sld [smem:[#allocation28_spill]] }
  0x5b   : > { %s2430_s22 = scalar_lea.hbm %s3261_s7, 512 }
  0x5c   : > { %p2431_p6 = scmp.ne.s32.totalorder %s3261_s7, %s2430_s22  ;;  %p2437_p5 = scmp.lt.u32.totalorder %s2430_s22, %s3261_s7 }
  0x5e   : > { %p2433_p10 = pnand %p2431_p6, %p2775_p13 }
  0x60   : > { %p2434_p3 = pneg %p2433_p10 }
  0x62   : > { %p2439_p7 = pnand %p2437_p5, %p2434_p3 }
  0x64   : > { %2442 = shalt.err (!%p2439_p7)
}
  0x65   : > { %s2443_s27 = scalar_lea.vmem %s354_s13, 512  ;;  %p2451_p1 = scmp.lt.s32.totalorder %s354_s13, %s354_s13 }
  0x66   : > { %p2444_p9 = scmp.ne.s32.totalorder %s354_s13, %s2443_s27  ;;  %p2452_p2 = scmp.lt.s32.totalorder %s2443_s27, %s2443_s27 }
  0x68   : > { %p2446_p12 = pnand %p2444_p9, %p2775_p13  ;;  %p2453_p4 = por %p2452_p2, %p2451_p1 }
  0x6a   : > { %p2447_p0 = pneg %p2446_p12 }
  0x6c   : > { %p2454_p8 = pnand %p2453_p4, %p2447_p0 }
  0x6e   : > { %2457 = shalt.err (!%p2454_p8)
}
  0x6f   : > { %2230 = dma.hbm_to_vmem [thread:$0]  (!%p2759_p11), %s3261_s7, 512, %s354_s13, [#allocation12], %s2633_s15, %s2633_s15, %s2634_s16  }
  0x70   : > { %s2635_s10 = smov [#allocation14]   ;;  %s2458_s26 = scalar_lea.hbm %s3236_s9, 1024 }
  0x71   : > { %s369_s11 = sshll.u32 %s2635_s10, 4  ;;  %p2459_p4 = scmp.ne.s32.totalorder %s3236_s9, %s2458_s26  ;;  %s370_s11 = int_to_ptr.vmem [resolvable:$true] %s369_s11 }
  0x72   : > { %p2465_p10 = scmp.lt.u32.totalorder %s2458_s26, %s3236_s9 }
  0x73   : > { %p2461_p8 = pnand %p2459_p4, %p2775_p13 }
  0x75   : > { %p2462_p6 = pneg %p2461_p8 }
  0x77   : > { %p2467_p3 = pnand %p2465_p10, %p2462_p6 }
  0x79   : > { %2470 = shalt.err (!%p2467_p3)
}
  0x7a   : > { %s2471_s13 = scalar_lea.vmem %s370_s11, 1024  ;;  %p2479_p12 = scmp.lt.s32.totalorder %s370_s11, %s370_s11 }
  0x7b   : > { %p2472_p5 = scmp.ne.s32.totalorder %s370_s11, %s2471_s13  ;;  %p2480_p0 = scmp.lt.s32.totalorder %s2471_s13, %s2471_s13 }
  0x7d   : > { %p2474_p7 = pnand %p2472_p5, %p2775_p13  ;;  %p2481_p1 = por %p2480_p0, %p2479_p12 }
  0x7f   : > { %p2475_p9 = pneg %p2474_p7 }
  0x81   : > { %p2482_p2 = pnand %p2481_p1, %p2475_p9 }
  0x83   : > { %2485 = shalt.err (!%p2482_p2)
}
  0x84   : > { %2233 = dma.hbm_to_vmem [thread:$0]  (!%p2759_p11), %s3236_s9, 1024, %s370_s11, [#allocation15], %s2633_s15, %s2633_s15, %s2634_s16  }
  0x85   : > { %s2869_s24 = sadd.s32 1, %s2628_s20   ;;  %s39_s28 = sadd.s32 1, %s2624_s19 }
  0x86   : > { %s36_s10 = ssub.s32 %s2628_s20, %s2869_s24  ;;  %p46_p13 = scmp.ne.s32.totalorder %s2624_s19, %s2620_s18 }
  0x87   : > { %p37_p4 = scmp.eq.s32.totalorder %s36_s10, 0  ;;  %p47_p8 = scmp.eq.s32.totalorder %s2628_s20, 0 }
  0x88   : > { %p3262_p6 = scmp.eq.s32.totalorder %s2729_s21, 1  ;;  %p2249_p3 = scmp.lt.s32.totalorder %s2628_s20, 2 }
  0x89   : > { %s2885_s22 = scalar_select %p37_p4, %s2624_s19, %s39_s28  }
  0x8a   : > { %p2879_p10 = por %p3262_p6, %p46_p13  ;;  %p48_p5 = por %p47_p8, %p46_p13 }
  0x8b   : > { %s2888_s26 = sand.u32 1, %s2624_s19   ;;  %s1981_s16 = sshll.u32 %s2628_s20, 8 }
  0x8c   : > { %s1898_s15 = sshll.u32 %s2888_s26, 4  ;;  %s3264_s0 = sld [smem:[#allocation25_spill]] }
  0x8d   : > { %s390_s14 = scalar_lea.vmem [#allocation5], %s1898_s15  ;;  %p2899_p11 = pnand %p2249_p3, %p48_p5 }
  0x8e   : > { %s397_s27 = sshll.u32 %s390_s14, 4  ;;  %s387_s8 = scalar_lea.sflag [#allocation6], %s2888_s26  ;;  %s2897_s27 = int_to_ptr.vmem [resolvable:$true] %s397_s27 }
  0x8f   : > { %p2488_p9 = pneg %p2899_p11 }
  0x92   : > { %s2895_s12 = scalar_lea.hbm %s3264_s0, %s1981_s16  ;;  %s2491_s16 = scalar_lea.hbm %s3264_s0, 512 }
  0x93   : > { %s2486_s28 = scalar_lea.hbm %s2895_s12, 256  ;;  %p2492_p1 = scmp.lt.u32.totalorder %s2895_s12, %s3264_s0 }
  0x94   : > { %p2487_p7 = scmp.ne.s32.totalorder %s2895_s12, %s2486_s28  ;;  %p2493_p2 = scmp.lt.u32.totalorder %s2491_s16, %s2486_s28 }
  0x95   : > { %p2495_p4 = scmp.lt.u32.totalorder %s2486_s28, %s2895_s12 }
  0x96   : > { %p2489_p12 = pnand %p2488_p9, %p2487_p7  ;;  %p2494_p13 = por %p2493_p2, %p2492_p1 }
  0x98   : > { %p2490_p0 = pneg %p2489_p12  ;;  %p2496_p8 = por %p2495_p4, %p2494_p13 }
  0x9a   : > { %p2497_p6 = pnand %p2496_p8, %p2490_p0 }
  0x9c   : > { %2500 = shalt.err (!%p2497_p6)
}
  0x9d   : > { %s2501_s14 = scalar_lea.vmem %s2897_s27, 256  ;;  %s2636_s10 = smov [#allocation5]  }
  0x9e   : > { %p2502_p3 = scmp.ne.s32.totalorder %s2897_s27, %s2501_s14  ;;  %s2506_s15 = sshll.u32 %s2636_s10, 4  ;;  %s2507_s15 = int_to_ptr.vmem [resolvable:$false] %s2506_s15 }
  0x9f   : > { %s2508_s11 = scalar_lea.vmem %s2507_s15, 512  ;;  %p2509_p12 = scmp.lt.s32.totalorder %s2897_s27, %s2507_s15 }
  0xa0   : > { %p2504_p5 = pnand %p2502_p3, %p2488_p9  ;;  %p2510_p1 = scmp.lt.s32.totalorder %s2508_s11, %s2501_s14 }
  0xa2   : > { %p2505_p7 = pneg %p2504_p5  ;;  %p2511_p2 = por %p2510_p1, %p2509_p12 }
  0xa4   : > { %p2512_p13 = pnand %p2511_p2, %p2505_p7 }
  0xa6   : > { %2515 = shalt.err (!%p2512_p13)
}
  0xa7   : > { %s2637_s28 = smov 128   ;;  %s2638_s16 = smov 8  }
  0xa8   : > { %2237 = dma.hbm_to_vmem [thread:$0]  (!%p2899_p11), %s2895_s12, 256, %s2897_s27, %s387_s8, %s2637_s28, %s2637_s28, %s2638_s16  }
  0xa9   : > { %s2196_s29 = smul.u32 24, %s2888_s26  ;;  %s3266_s3 = sand.u32 1, %s2628_s20  }
  0xaa   : > { %s2197_s14 = smul.u32 384, %s2628_s20  ;;  %s2946_s5 = scalar_lea.sflag [#allocation9], %s3266_s3 }
  0xab   : > { %s411_s30 = scalar_lea.vmem [#allocation8], %s2196_s29  ;;  %s2521_s27 = scalar_lea.hbm %s3228_s1, 768 }
  0xac   : > { %s2940_s11 = scalar_lea.hbm %s3228_s1, %s2197_s14  ;;  %s418_s0 = sshll.u32 %s411_s30, 4  ;;  %s2942_s0 = int_to_ptr.vmem [resolvable:$true] %s418_s0 }
  0xad   : > { %s2516_s7 = scalar_lea.hbm %s2940_s11, 384  ;;  %p2522_p6 = scmp.lt.u32.totalorder %s2940_s11, %s3228_s1 }
  0xae   : > { %p2517_p0 = scmp.ne.s32.totalorder %s2940_s11, %s2516_s7  ;;  %p2523_p3 = scmp.lt.u32.totalorder %s2521_s27, %s2516_s7 }
  0xaf   : > { %p2525_p7 = scmp.lt.u32.totalorder %s2516_s7, %s2940_s11 }
  0xb0   : > { %p2519_p4 = pnand %p2517_p0, %p2488_p9  ;;  %p2524_p5 = por %p2523_p3, %p2522_p6 }
  0xb2   : > { %p2520_p8 = pneg %p2519_p4  ;;  %p2526_p12 = por %p2525_p7, %p2524_p5 }
  0xb4   : > { %p2527_p1 = pnand %p2526_p12, %p2520_p8 }
  0xb6   : > { %2530 = shalt.err (!%p2527_p1)
}
  0xb7   : > { %s2531_s3 = scalar_lea.vmem %s2942_s0, 384  ;;  %s2639_s30 = smov [#allocation8]  }
  0xb8   : > { %p2532_p2 = scmp.ne.s32.totalorder %s2942_s0, %s2531_s3  ;;  %s2536_s29 = sshll.u32 %s2639_s30, 4  ;;  %s2537_s29 = int_to_ptr.vmem [resolvable:$false] %s2536_s29 }
  0xb9   : > { %s2538_s10 = scalar_lea.vmem %s2537_s29, 768  ;;  %p2539_p4 = scmp.lt.s32.totalorder %s2942_s0, %s2537_s29 }
  0xba   : > { %p2534_p13 = pnand %p2532_p2, %p2488_p9  ;;  %p2540_p6 = scmp.lt.s32.totalorder %s2538_s10, %s2531_s3 }
  0xbc   : > { %p2535_p0 = pneg %p2534_p13  ;;  %p2541_p3 = por %p2540_p6, %p2539_p4 }
  0xbe   : > { %p2542_p5 = pnand %p2541_p3, %p2535_p0 }
  0xc0   : > { %2545 = shalt.err (!%p2542_p5)
}
  0xc1   : > { %2240 = dma.hbm_to_vmem [thread:$0]  (!%p2899_p11), %s2940_s11, 384, %s2942_s0, %s2946_s5, %s2637_s28, %s2637_s28, %s2638_s16  }
  0xc2   : > { %p3267_p9 = scmp.ne.s32.totalorder %s3256_s25, 0 }
  0xc3   : > { %s2978_s7 = sand.u32 (!%p3267_p9), 1, %s2620_s18   ;;  %p3268_p8 = scmp.ne.s32.totalorder (!%p3267_p9), %s3253_s23, 0 }
  0xc4   : > { %436 = sbr.rel (%p3267_p9) target bundleno = 3002 (0xbba), region = 64  ;;  %s1903_s15 = sshll.u32 (!%p3267_p9), %s2978_s7, 4 }
  0xc5   : > { %s439_s26 = scalar_lea.sflag (!%p3267_p9), [#allocation6], %s2978_s7  ;;  %s2984_s13 = scalar_lea.vmem (!%p3267_p9), [#allocation5], %s1903_s15 }
  0xcb   : > { %2591 = dma.done.wait (%p3268_p8), %s439_s26, 256  }
  0xcc   : > { %2593 = vsyncadd (%p3268_p8), %s439_s26, 4294967040  ;;  %s447_s0 = sand.u32 1, %s2729_s21   ;;  %s2198_s5 = smul.u32 24, %s2978_s7 }
  0xcd   : > { %s448_s25 = scalar_lea.sflag [#allocation9], %s447_s0 }
  0xce   : > { %s2992_s28 = scalar_lea.vmem [#allocation8], %s2198_s5 }
  0xcf   : > { %2595 = dma.done.wait (%p3268_p8), %s448_s25, 384  }
  0xd0   : > { %2597 = vsyncadd (%p3268_p8), %s448_s25, 4294966912  ;;  %p3269_p11 = scmp.eq.s32.totalorder %s2729_s21, 0 }
  0xd2   : > { %2599 = dma.done.wait (%p3269_p11), [#allocation9], 1024   ;;  %p3270_p7 = pmov %p3269_p11 }
  0xd4   : > { %2601 = vsyncadd (%p3270_p7), [#allocation9], 4294966272  ;;  %p3271_p12 = pmov %p3270_p7 }
  0xd5   : > { %p3272_p1 = pmov %p3270_p7 }
  0xd6   : > { %2603 = dma.done.wait (%p3271_p12), [#allocation12], 1024  }
  0xd7   : > { %2605 = vsyncadd (%p3272_p1), [#allocation12], 4294966272  ;;  %p3273_p2 = pmov %p3272_p1 }
  0xd8   : > { %p3274_p13 = pmov %p3272_p1 }
  0xd9   : > { %2607 = dma.done.wait (%p3273_p2), [#allocation15], 1024  }
  0xda   : > { %2609 = vsyncadd (%p3274_p13), [#allocation15], 4294966272  ;;  %v2640_v0 = vmov 0.0   ;;  %vm2641_vm0 = vmmov 0   ;;  %v2302_v1 = vld [vmem:[#allocation11] sm:$0xff]   ;;  %v2303_v2 = vld [vmem:[#allocation11 + $0x8] sm:$0xff]  }
  0xdb   : > { %2056 = vmatprep.subr.bf16.mxu0 %v2640_v0  ;;  %2072 = vmatprep.mubr.msk.bf16.mxu0 %vm2641_vm0, %v2640_v0  ;;  %v2305_v3 = vld [vmem:[#allocation10] sm:$0xff]   ;;  %v2304_v4 = vld [vmem:[#allocation11 + $0x10] sm:$0xff]   ;;  %v2307_v5 = vld [vmem:[#allocation10 + $0x8] sm:$0xff]   ;;  %vm679_vm1 = vcmask 523264   ;;  %vm875_vm2 = vcmask 261120   ;;  %p514_p0 = scmp.lt.s32.totalorder %s2729_s21, 1 }
  0xdc   : > { %2076 = vmatprep.subr.bf16.mxu1 %v2302_v1  ;;  %2057 = vmatpush3.bf16.msra.mxu0 %v2305_v3  ;;  %v521_v6 = vld [vmem:[%s2992_s28] sm:$0xff]  ;;  %v522_v7 = vld [vmem:[%s2992_s28 + $0x8] sm:$0xff]  ;;  %v523_v11 = vld [vmem:[%s2992_s28 + $0x10] sm:$0xff]  ;;  %vm926_vm3 = vcmask 195584   ;;  %s2642_s30 = smov 96   ;;  %s3275_s26 = sld [smem:[#allocation29_spill]] }
  0xdd   : > { %2077 = vmatpush3.bf16.msra.mxu1 %v2302_v1  ;;  %2058 = vmatprep.subr.bf16.mxu0 %v2640_v0  ;;  %v524_v8 = vpack.c.bf16 %v522_v7, %v521_v6  ;;  %v2306_v9 = vld [vmem:[#allocation11 + $0x18] sm:$0xff]   ;;  %v2308_v10 = vld [vmem:[#allocation10 + $0x10] sm:$0xff]   ;;  %v3019_v13 = vpack.c.bf16 %v523_v11, %v523_v11  ;;  %v2310_v14 = vld [vmem:[#allocation10 + $0x20] sm:$0xff]   ;;  %s515_s27 = scalar_select %p514_p0, %s2729_s21, 1  ;;  %vm962_vm4 = vcmask 1043456  }
  0xde   : > { %2078 = vmatprep.subr.bf16.mxu1 %v2303_v2  ;;  %v2309_v12 = vld [vmem:[#allocation10 + $0x18] sm:$0xff]   ;;  %v2311_v15 = vld [vmem:[#allocation10 + $0x28] sm:$0xff]   ;;  %v2312_v16 = vld [vmem:[#allocation10 + $0x30] sm:$0xff]   ;;  %s2644_s0 = smov 32   ;;  %s3276_s28 = sld [smem:[#allocation30_spill]] }
  0xdf   : > { %2084 = vmatprep.mubr.msk.bf16.mxu1 %vm679_vm1, %v524_v8  ;;  %v2313_v17 = vld [vmem:[#allocation10 + $0x38] sm:$0xff]   ;;  %v518_v18 = vld [vmem:[%s2984_s13] sm:$0xff]  ;;  %v2318_v44 = vld [vmem:[#allocation13 + $0x8] sm:$0xff]   ;;  %s516_s3 = scalar_lea.vmem %s3229_s2, %s515_s27  ;;  %s513_s23 = scalar_lea.vmem [#allocation16], %s1903_s15 }
  0xe0   : > { %2059 = vmatpush3.bf16.msra.mxu0 %v2307_v5  ;;  %v519_v19 = vld [vmem:[%s2984_s13 + $0x8] sm:$0xff]  ;;  %v2317_v43 = vld [vmem:[#allocation13] sm:$0xff]   ;;  %v2319_v45 = vld [vmem:[#allocation13 + $0x10] sm:$0xff]   ;;  %s2643_s13 = smov 64   ;;  %s1748_s16 = sshll.u32 %s513_s23, 4  ;;  %s3178_s16 = int_to_ptr.vmem [resolvable:$true] %s1748_s16 }
  0xe1   : > { %2079 = vmatpush3.bf16.msra.mxu1 %v2303_v2  ;;  %2060 = vmatprep.subr.bf16.mxu0 %v2640_v0  ;;  %v520_v20 = vpack.c.bf16 %v519_v19, %v518_v18  ;;  %v1918_v21 = vld [vmem:[%s3233_s6] ss:$0 sm:$0xff]  ;;  %s1988_s11 = sshll.u32 %s2729_s21, 8  ;;  %s3277_s8 = sld [smem:[#allocation31_spill]] }
  0xe2   : > { %2080 = vmatprep.subr.bf16.mxu1 %v2304_v4  ;;  %v1909_v32 = vld [vmem:[%s3231_s4] ss:$0 sm:$0xff]  ;;  %s1735_s15 = scalar_lea.sflag [#allocation7], %s2978_s7  ;;  %s2645_s21 = smov [#allocation16]  }
  0xe3   : > { %v2320_v46 = vld [vmem:[#allocation13 + $0x18] sm:$0xff]  }
  0xe4   : > { %2061 = vmatpush3.bf16.msra.mxu0 %v2308_v10  ;;  %v3060_v47 = vld [vmem:[%s516_s3] ss:$0 sm:$0xff]  ;;  %s2546_s3 = scalar_lea.vmem %s3178_s16, 256 }
  0xe5   : > { %2081 = vmatpush3.bf16.msra.mxu1 %v2304_v4  ;;  %2062 = vmatprep.subr.bf16.mxu0 %v2640_v0  ;;  %v1928_v57 = vld [vmem:[%s3275_s26] ss:$0 sm:$0xff]  ;;  %p2547_p4 = scmp.ne.s32.totalorder %s3178_s16, %s2546_s3 }
  0xe6   : > { %2082 = vmatprep.subr.bf16.mxu1 %v2306_v9 }
  0xe7   : > { %s3183_s14 = scalar_lea.hbm %s3277_s8, %s1988_s11  ;;  %p2548_p6 = pnand %p2547_p4, %p2879_p10 }
  0xe8   : > { %2063 = vmatpush3.bf16.msra.mxu0 %v2309_v12 }
  0xe9   : > { %2083 = vmatpush3.bf16.msra.mxu1 %v2306_v9  ;;  %2064 = vmatprep.subr.bf16.mxu0 %v2640_v0  ;;  %p2549_p3 = pneg %p2548_p6 }
  0xea   : > { %2088 = vmatprep.subr.bf16.mxu1 %v2317_v43 }
  0xec   : > { %2085 = vmatmul.mubr.msk.bf16.vlgmr.msra.gmra.mrb[0].mxu1 %vm679_vm1, %v3019_v13  ;;  %2065 = vmatpush3.bf16.msra.mxu0 %v2310_v14 }
  0xed   : > { %2096 = vmatprep.mubr.msk.bf16.mxu1 %vm679_vm1, %v524_v8  ;;  %2066 = vmatprep.subr.bf16.mxu0 %v2640_v0 }
  0xee   : > { %2089 = vmatpush3.bf16.msra.mxu1 %v2317_v43 }
  0xef   : > { %2090 = vmatprep.subr.bf16.mxu1 %v2318_v44 }
  0xf0   : > { %2067 = vmatpush3.bf16.msra.mxu0 %v2311_v15 }
  0xf1   : > { %2068 = vmatprep.subr.bf16.mxu0 %v2640_v0 }
  0xf2   : > { %2091 = vmatpush3.bf16.msra.mxu1 %v2318_v44 }
  0xf3   : > { %2092 = vmatprep.subr.bf16.mxu1 %v2319_v45 }
  0xf4   : > { %2069 = vmatpush3.bf16.msra.mxu0 %v2312_v16 }
  0xf5   : > { %2070 = vmatprep.subr.bf16.mxu0 %v2640_v0 }
  0xf6   : > { %2093 = vmatpush3.bf16.msra.mxu1 %v2319_v45 }
  0xf7   : > { %2094 = vmatprep.subr.bf16.mxu1 %v2320_v46 }
  0xf8   : > { %2071 = vmatpush3.bf16.msra.mxu0 %v2313_v17 }
  0xf9   : > { %2100 = vmatprep.subr.bf16.mxu0 %v2640_v0 }
  0xfa   : > { %2095 = vmatpush3.bf16.msra.mxu1 %v2320_v46 }
  0xfb   : > { %2073 = vmatmul.mubr.bf16.vlgmr.msra.gmra.mrb[0].mxu0 %v520_v20  ;;  %2108 = vmatprep.subr.bf16.mxu1 %v2640_v0 }
  0xfc   : > { %2104 = vmatprep.mubr.msk.bf16.mxu0 %vm2641_vm0, %v2640_v0 }
  0xfd   : > { %2097 = vmatmul.mubr.msk.bf16.vlgmr.msra.gmra.mrb[4].mxu1 %vm679_vm1, %v3019_v13 }
  0xfe   : > { %2112 = vmatprep.mubr.msk.bf16.mxu1 %vm2641_vm0, %v2640_v0 }
 0x1bf   : > { %v2086_v22 = vpop.f32.mrb[0].mxu1 }
 0x1c0   : > { %v729_v23 = vadd.f32 %v2086_v22, %v1918_v21  ;;  %v720_v24 = vpop.f32.mrb[1].mxu1 }
 0x1c1   : > { %v2087_v25 = vpop.f32.mrb[2].mxu1  ;;  %v721_v28 = vadd.f32 %v1918_v21, %v720_v24 }
 0x1c2   : > { %v1984_v26 = vpack.c.bf16 %v729_v23, %v729_v23  ;;  %v723_v27 = vpop.f32.mrb[3].mxu1 }
 0x1c3   : > { %v724_v29 = vadd.f32 %v1918_v21, %v723_v27 }
 0x1c4   : > { %749 = vst [vmem:[#allocation3 + $0x8] sm:$0xf] %v1984_v26 }
 0x1c5   : > { %v1992_v30 = vpack.c.bf16 %v724_v29, %v721_v28  ;;  %v2324_v29 = vld [vmem:[#allocation14] sm:$0xff]  }
 0x1c7   : > { %1993 = vst [vmem:[#allocation3] sm:$0xff] %v1992_v30  }
 0x1cb   : > { %v2315_v40 = vld [vmem:[#allocation3 + $0x8] ss:$0 sps:$4 sm:$0xff]  }
 0x1cc   : > { %v883_v42 = vsel %vm875_vm2, %v2315_v40, 0  ;;  %v2321_v17 = vld [vmem:[#allocation3 + $0x8] ss:$0 sps:$4 sm:$0xff]  }
 0x1ce   : > { %v2314_v31 = vld [vmem:[#allocation3] sm:$0xff]   ;;  %v631_v34 = vpop.f32.mrb[0].mxu0 }
 0x1cf   : > { %v880_v33 = vsel %vm875_vm2, %v2314_v31, 0  ;;  %v632_v35 = vadd.f32 %v1909_v32, %v631_v34  ;;  %v2074_v36 = vpop.f32.mrb[1].mxu0  ;;  %v2316_v56 = vld [vmem:[#allocation3] sm:$0xff]   ;;  %v2325_v31 = vld [vmem:[#allocation14 + $0x8] sm:$0xff]  }
 0x1d0   : > { %2101 = vmatpush3.bf16.xpose.msra.mxu0 %v880_v33  ;;  %v634_v37 = vpop.f32.mrb[2].mxu0  ;;  %v2098_v58 = vpop.f32.mrb[4].mxu1 }
 0x1d1   : > { %2102 = vmatprep.subr.bf16.mxu0 %v2640_v0  ;;  %v635_v38 = vadd.f32 %v1909_v32, %v634_v37  ;;  %v2075_v39 = vpop.f32.mrb[3].mxu0  ;;  %v832_v59 = vadd.f32 %v2098_v58, %v1928_v57  ;;  %v823_v60 = vpop.f32.mrb[5].mxu1 }
 0x1d2   : > { %v824_v61 = vadd.f32 %v1928_v57, %v823_v60  ;;  %v2099_v62 = vpop.f32.mrb[6].mxu1 }
 0x1d3   : > { %v3042_v41 = vpack.c.bf16 %v635_v38, %v632_v35  ;;  %v1987_v63 = vpack.c.bf16 %v832_v59, %v832_v59  ;;  %v826_v1 = vpop.f32.mrb[7].mxu1 }
 0x1d4   : > { %v827_v2 = vadd.f32 %v1928_v57, %v826_v1 }
 0x1d5   : > { %852 = vst [vmem:[#allocation4 + $0x8] sm:$0xf] %v1987_v63  ;;  %v2331_v63 = vld [vmem:[#allocation3] sm:$0xff]  }
 0x1d6   : > { %v1997_v3 = vpack.c.bf16 %v827_v2, %v824_v61 }
 0x1d8   : > { %2103 = vmatpush3.bf16.xpose.msra.mxu0 %v883_v42  ;;  %1998 = vst [vmem:[#allocation4] sm:$0xff] %v1997_v3  }
 0x1d9   : > { %2124 = vmatprep.subr.bf16.mxu0 %v2640_v0 }
 0x1dc   : > { %v2323_v15 = vld [vmem:[#allocation4 + $0x8] ss:$0 sps:$4 sm:$0xff]  }
 0x1dd   : > { %v964_v16 = vsel %vm962_vm4, %v2323_v15, 0  ;;  %v2330_v62 = vld [vmem:[#allocation4 + $0x8] ss:$0 sps:$4 sm:$0xff]  }
 0x1df   : > { %2105 = vmatmul.mubr.msk.bf16.vlgmr.msra.gmra.mrb[4].mxu0 %vm875_vm2, %v3042_v41  ;;  %v2322_v14 = vld [vmem:[#allocation4] sm:$0xff]  }
 0x1e0   : > { %2128 = vmatprep.mubr.msk.bf16.mxu0 %vm2641_vm0, %v2640_v0  ;;  %2109 = vmatpush3.bf16.msra.mxu1 %v2322_v14  ;;  %v2326_v46 = vld [vmem:[#allocation4] sm:$0xff]   ;;  %v2333_v14 = vld [vmem:[#allocation14 + $0x18] sm:$0xff]  }
 0x1e1   : > { %2110 = vmatprep.subr.bf16.mxu1 %v2640_v0 }
 0x1e4   : > { %2111 = vmatpush3.bf16.msra.mxu1 %v964_v16 }
 0x1e5   : > { %2116 = vmatprep.subr.bf16.mxu1 %v2640_v0 }
 0x2b2   : > { %v919_v48 = vpop.f32.mrb[4].mxu0 }
 0x2b3   : > { %v920_v49 = vadd.f32 %v3060_v47, %v919_v48  ;;  %v2106_v50 = vpop.f32.mrb[5].mxu0  ;;  %v2327_v48 = vld [vmem:[#allocation3] sm:$0xff]  }
 0x2b4   : > { %v922_v51 = vpop.f32.mrb[6].mxu0  ;;  %v2329_v50 = vld [vmem:[#allocation3 + $0x8] ss:$0 sps:$4 sm:$0xff]  }
 0x2b5   : > { %v923_v52 = vadd.f32 %v3060_v47, %v922_v51  ;;  %v2107_v53 = vpop.f32.mrb[7].mxu0  ;;  %v927_v54 = vsel %vm926_vm3, %v920_v49, -inf }
 0x2b6   : > { %928 = vmax.xlane.f32.xlu0 %v927_v54 }
 0x2b7   : > { %v930_v55 = vsel %vm926_vm3, %v923_v52, -inf }
 0x2ba   : > { %931 = vmax.xlane.f32.xlu0 %v930_v55 }
 0x2d0   : > { %1030 = vrot.lane.b32.xlu0 %v2316_v56, %s2642_s30 }
 0x343   : > { %v929_v4 = vpop.xlane.xlu0 %928 }
 0x344   : > { %v933_v5 = vsub.f32 %v920_v49, %v929_v4  ;;  %v2328_v49 = vld [vmem:[#allocation3 + $0x8] ss:$0 sps:$4 sm:$0xff]  }
 0x346   : > { %v935_v6 = vmul.f32 1.442695, %v933_v5 }
 0x347   : > { %v932_v7 = vpop.xlane.xlu0 %931 }
 0x348   : > { %2342 = vpow2.f32 %v935_v6  ;;  %v934_v8 = vsub.f32 %v923_v52, %v932_v7 }
 0x34a   : > { %v937_v9 = vmul.f32 1.442695, %v934_v8 }
 0x34b   : > { %v1031_v24 = vpop.permute.xlu0 %1030 }
 0x34c   : > { %2344 = vpow2.f32 %v937_v9  ;;  %v1038_v26 = vsel %vm875_vm2, %v1031_v24, 0 }
 0x352   : > { %v2343_v10 = vpop.eup %2342 }
 0x353   : > { %v939_v11 = vsel %vm926_vm3, %v2343_v10, 0.0 }
 0x354   : > { %940 = vadd.xlane.f32.xlu1 %v939_v11 }
 0x356   : > { %v2345_v12 = vpop.eup %2344 }
 0x357   : > { %v942_v13 = vsel %vm926_vm3, %v2345_v12, 0.0 }
 0x358   : > { %943 = vadd.xlane.f32.xlu1 %v942_v13  ;;  %v2332_v13 = vld [vmem:[#allocation14 + $0x10] sm:$0xff]  }
 0x369   : > { %1032 = vrot.lane.b32.xlu1 %v2321_v17, %s2642_s30 }
 0x36d   : > { %1020 = vrot.lane.b32.xlu1 %v3042_v41, %s2642_s30 }
 0x3e1   : > { %v941_v18 = vpop.xlane.xlu1 %940 }
 0x3e2   : > { %2346 = vrcp.f32 %v941_v18 }
 0x3e5   : > { %v944_v19 = vpop.xlane.xlu1 %943 }
 0x3e6   : > { %2348 = vrcp.f32 %v944_v19 }
 0x3e9   : > { %v1033_v27 = vpop.permute.xlu1 %1032 }
 0x3ea   : > { %v1041_v28 = vsel %vm875_vm2, %v1033_v27, 0 }
 0x3ec   : > { %v2347_v20 = vpop.eup %2346 }
 0x3ed   : > { %v946_v22 = vmul.f32 %v2347_v20, %v2343_v10  ;;  %v1021_v30 = vpop.permute.xlu1 %1020 }
 0x3f0   : > { %v2349_v21 = vpop.eup %2348 }
 0x3f1   : > { %v948_v23 = vmul.f32 %v2349_v21, %v2345_v12 }
 0x3f3   : > { %v949_v25 = vpack.c.bf16 %v948_v23, %v946_v22 }
 0x3f5   : > { %2113 = vmatmul.mubr.msk.bf16.vlgmr.msra.gmra.mrb[8].mxu1 %vm926_vm3, %v949_v25 }
 0x3f6   : > { %2117 = vmatpush3.bf16.xpose.msra.mxu1 %v1038_v26  ;;  %2120 = vmatprep.mubr.msk.bf16.mxu1 %vm2641_vm0, %v2640_v0 }
 0x3f7   : > { %2118 = vmatprep.subr.bf16.mxu1 %v2640_v0 }
 0x3fe   : > { %2119 = vmatpush3.bf16.xpose.msra.mxu1 %v1041_v28 }
 0x3ff   : > { %2140 = vmatprep.subr.bf16.mxu1 %v2640_v0 }
 0x405   : > { %2121 = vmatmul.mubr.msk.bf16.vlgmr.msra.gmra.mrb[12].mxu1 %vm875_vm2, %v1021_v30 }
 0x406   : > { %2141 = vmatpush3.bf16.msra.mxu1 %v2324_v29  ;;  %2144 = vmatprep.mubr.msk.bf16.mxu1 %vm2641_vm0, %v2640_v0 }
 0x407   : > { %2142 = vmatprep.subr.bf16.mxu1 %v2640_v0 }
 0x40a   : > { %2143 = vmatpush3.bf16.msra.mxu1 %v2325_v31 }
 0x40b   : > { %2156 = vmatprep.subr.bf16.mxu1 %v2640_v0 }
 0x4c8   : > { %v1000_v32 = vpop.f32.mrb[8].mxu1 }
 0x4c9   : > { %v2114_v33 = vpop.f32.mrb[9].mxu1 }
 0x4ca   : > { %v1003_v34 = vpop.f32.mrb[10].mxu1 }
 0x4cb   : > { %v1007_v35 = vpack.c.bf16 %v1003_v34, %v1000_v32  ;;  %v2115_v36 = vpop.f32.mrb[11].mxu1 }
 0x4cd   : > { %2145 = vmatmul.mubr.msk.bf16.vlgmr.msra.gmra.mrb[16].mxu1 %vm875_vm2, %v1007_v35 }
 0x4ce   : > { %2160 = vmatprep.mubr.msk.bf16.mxu1 %vm2641_vm0, %v2640_v0 }
 0x4d8   : > { %v1077_v37 = vpop.f32.mrb[12].mxu1 }
 0x4d9   : > { %v1078_v38 = vadd.f32 %v3060_v47, %v1077_v37  ;;  %v2122_v39 = vpop.f32.mrb[13].mxu1 }
 0x4da   : > { %v1080_v40 = vpop.f32.mrb[14].mxu1 }
 0x4db   : > { %v1081_v42 = vadd.f32 %v3060_v47, %v1080_v40  ;;  %v2123_v43 = vpop.f32.mrb[15].mxu1  ;;  %v1084_v44 = vsel %vm926_vm3, %v1078_v38, -inf }
 0x4dc   : > { %1085 = vmax.xlane.f32.xlu1 %v1084_v44 }
 0x4dd   : > { %v1087_v45 = vsel %vm926_vm3, %v1081_v42, -inf }
 0x4de   : > { %1088 = vmax.xlane.f32.xlu0 %v1087_v45 }
 0x4ed   : > { %1115 = vrot.lane.b32.xlu1 %v2326_v46, %s2642_s30 }
 0x4f1   : > { %1303 = vrot.lane.b32.xlu1 %v2327_v48, %s2643_s13 }
 0x4f5   : > { %1305 = vrot.lane.b32.xlu1 %v2328_v49, %s2643_s13 }
 0x4f9   : > { %1293 = vrot.lane.b32.xlu1 %v3042_v41, %s2643_s13 }
 0x4fd   : > { %1524 = vrot.lane.b32.xlu1 %v2329_v50, %s2644_s0  ;;  %v2334_v50 = vld [vmem:[#allocation4] sm:$0xff]  }
 0x569   : > { %v1086_v51 = vpop.xlane.xlu1 %1085 }
 0x56a   : > { %v1090_v52 = vsub.f32 %v1078_v38, %v1086_v51 }
 0x56b   : > { %v1089_v53 = vpop.xlane.xlu0 %1088 }
 0x56c   : > { %v1092_v54 = vmul.f32 1.442695, %v1090_v52  ;;  %v1091_v55 = vsub.f32 %v1081_v42, %v1089_v53 }
 0x56d   : > { %v1116_v56 = vpop.permute.xlu1 %1115 }
 0x56e   : > { %2350 = vpow2.f32 %v1092_v54  ;;  %v1094_v57 = vmul.f32 1.442695, %v1091_v55  ;;  %2125 = vmatpush3.bf16.msra.mxu0 %v1116_v56 }
 0x56f   : > { %2126 = vmatprep.subr.bf16.mxu0 %v2640_v0 }
 0x570   : > { %2352 = vpow2.f32 %v1094_v57 }
 0x571   : > { %v1304_v17 = vpop.permute.xlu1 %1303 }
 0x572   : > { %v1311_v21 = vsel %vm875_vm2, %v1304_v17, 0 }
 0x575   : > { %v1306_v22 = vpop.permute.xlu1 %1305 }
 0x576   : > { %v1314_v23 = vsel %vm875_vm2, %v1306_v22, 0  ;;  %v2337_v22 = vld [vmem:[#allocation4 + $0x8] ss:$0 sps:$4 sm:$0xff]  }
 0x578   : > { %v2351_v58 = vpop.eup %2350 }
 0x579   : > { %v1096_v59 = vsel %vm926_vm3, %v2351_v58, 0.0  ;;  %v1294_v25 = vpop.permute.xlu1 %1293 }
 0x57a   : > { %v2353_v60 = vpop.eup %2352  ;;  %1097 = vadd.xlane.f32.xlu0 %v1096_v59 }
 0x57b   : > { %v1099_v61 = vsel %vm926_vm3, %v2353_v60, 0.0 }
 0x57d   : > { %v1525_v27 = vpop.permute.xlu1 %1524 }
 0x57e   : > { %1100 = vadd.xlane.f32.xlu0 %v1099_v61  ;;  %v1533_v28 = vsel %vm875_vm2, %v1525_v27, 0 }
 0x594   : > { %1117 = vrot.lane.b32.xlu0 %v2330_v62, %s2642_s30  ;;  %s2550_s30 = sshll.u32 %s2645_s21, 4  ;;  %s2551_s30 = int_to_ptr.vmem [resolvable:$false] %s2550_s30 }
 0x595   : > { %s2552_s29 = scalar_lea.vmem %s2551_s30, 512  ;;  %p2553_p5 = scmp.lt.s32.totalorder %s3178_s16, %s2551_s30 }
 0x596   : > { %p2554_p9 = scmp.lt.s32.totalorder %s2552_s29, %s2546_s3 }
 0x598   : > { %1522 = vrot.lane.b32.xlu0 %v2331_v63, %s2644_s0  ;;  %p2555_p8 = por %p2554_p9, %p2553_p5 }
 0x59a   : > { %p2556_p11 = pnand %p2555_p8, %p2549_p3 }
 0x59c   : > { %1512 = vrot.lane.b32.xlu0 %v3042_v41, %s2644_s0 }
 0x5a0   : > { %v1278_v1 = vpop.f32.mrb[16].mxu1 }
 0x5a1   : > { %v2146_v2 = vpop.f32.mrb[17].mxu1 }
 0x5a2   : > { %v1281_v3 = vpop.f32.mrb[18].mxu1 }
 0x5a3   : > { %v2147_v4 = vpop.f32.mrb[19].mxu1 }
 0x607   : > { %v1098_v5 = vpop.xlane.xlu0 %1097 }
 0x608   : > { %2354 = vrcp.f32 %v1098_v5 }
 0x60b   : > { %v1101_v6 = vpop.xlane.xlu0 %1100 }
 0x60c   : > { %2356 = vrcp.f32 %v1101_v6 }
 0x60f   : > { %v1118_v7 = vpop.permute.xlu0 %1117 }
 0x610   : > { %v1124_v8 = vsel %vm962_vm4, %v1118_v7, 0 }
 0x611   : > { %2127 = vmatpush3.bf16.msra.mxu0 %v1124_v8 }
 0x612   : > { %2132 = vmatprep.subr.bf16.mxu0 %v2640_v0  ;;  %v2355_v9 = vpop.eup %2354 }
 0x613   : > { %v1103_v11 = vmul.f32 %v2355_v9, %v2351_v58  ;;  %v1523_v24 = vpop.permute.xlu0 %1522  ;;  %v2336_v9 = vld [vmem:[#allocation4] sm:$0xff]  }
 0x614   : > { %v1530_v26 = vsel %vm875_vm2, %v1523_v24, 0  ;;  %v2339_v24 = vld [vmem:[#allocation14 + $0x28] sm:$0xff]  }
 0x616   : > { %v2357_v10 = vpop.eup %2356 }
 0x617   : > { %v1105_v12 = vmul.f32 %v2357_v10, %v2353_v60  ;;  %v1513_v29 = vpop.permute.xlu0 %1512 }
 0x619   : > { %v1106_v41 = vpack.c.bf16 %v1105_v12, %v1103_v11 }
 0x61b   : > { %2129 = vmatmul.mubr.msk.bf16.vlgmr.msra.gmra.mrb[8].mxu0 %vm926_vm3, %v1106_v41 }
 0x61c   : > { %2133 = vmatpush3.bf16.msra.mxu0 %v2332_v13  ;;  %2136 = vmatprep.mubr.msk.bf16.mxu0 %vm2641_vm0, %v2640_v0 }
 0x61d   : > { %2134 = vmatprep.subr.bf16.mxu0 %v2640_v0 }
 0x620   : > { %2135 = vmatpush3.bf16.msra.mxu0 %v2333_v14 }
 0x621   : > { %2148 = vmatprep.subr.bf16.mxu0 %v2640_v0 }
 0x6ee   : > { %v1160_v15 = vpop.f32.mrb[8].mxu0 }
 0x6ef   : > { %v2130_v16 = vpop.f32.mrb[9].mxu0 }
 0x6f0   : > { %v1163_v18 = vpop.f32.mrb[10].mxu0 }
 0x6f1   : > { %v1167_v19 = vpack.c.bf16 %v1163_v18, %v1160_v15  ;;  %v2131_v20 = vpop.f32.mrb[11].mxu0 }
 0x6f3   : > { %2137 = vmatmul.mubr.msk.bf16.vlgmr.msra.gmra.mrb[12].mxu0 %vm875_vm2, %v1167_v19 }
 0x6f4   : > { %2149 = vmatpush3.bf16.xpose.msra.mxu0 %v1311_v21  ;;  %2152 = vmatprep.mubr.msk.bf16.mxu0 %vm2641_vm0, %v2640_v0 }
 0x6f5   : > { %2150 = vmatprep.subr.bf16.mxu0 %v2640_v0 }
 0x6fc   : > { %2151 = vmatpush3.bf16.xpose.msra.mxu0 %v1314_v23  ;;  %v2338_v23 = vld [vmem:[#allocation14 + $0x20] sm:$0xff]  }
 0x6fd   : > { %2172 = vmatprep.subr.bf16.mxu0 %v2640_v0 }
 0x703   : > { %2153 = vmatmul.mubr.msk.bf16.vlgmr.msra.gmra.mrb[16].mxu0 %vm875_vm2, %v1294_v25 }
 0x704   : > { %2173 = vmatpush3.bf16.xpose.msra.mxu0 %v1530_v26  ;;  %2176 = vmatprep.mubr.msk.bf16.mxu0 %vm2641_vm0, %v2640_v0 }
 0x705   : > { %2174 = vmatprep.subr.bf16.mxu0 %v2640_v0 }
 0x70c   : > { %2175 = vmatpush3.bf16.xpose.msra.mxu0 %v1533_v28 }
 0x713   : > { %2177 = vmatmul.mubr.msk.bf16.vlgmr.msra.gmra.mrb[20].mxu0 %vm875_vm2, %v1513_v29 }
 0x7c6   : > { %v1222_v30 = vpop.f32.mrb[12].mxu0 }
 0x7c7   : > { %v3131_v31 = vadd.f32 %v1278_v1, %v1222_v30  ;;  %v2138_v32 = vpop.f32.mrb[13].mxu0  ;;  %v2335_v1 = vld [vmem:[#allocation4 + $0x8] ss:$0 sps:$4 sm:$0xff]  }
 0x7c8   : > { %v1225_v33 = vpop.f32.mrb[14].mxu0 }
 0x7c9   : > { %v3133_v34 = vadd.f32 %v1281_v3, %v1225_v33  ;;  %v2139_v35 = vpop.f32.mrb[15].mxu0 }
 0x7d6   : > { %v1350_v36 = vpop.f32.mrb[16].mxu0 }
 0x7d7   : > { %v1351_v37 = vadd.f32 %v3060_v47, %v1350_v36  ;;  %v2154_v38 = vpop.f32.mrb[17].mxu0 }
 0x7d8   : > { %v1353_v39 = vpop.f32.mrb[18].mxu0 }
 0x7d9   : > { %v1354_v40 = vadd.f32 %v3060_v47, %v1353_v39  ;;  %v2155_v42 = vpop.f32.mrb[19].mxu0  ;;  %v1357_v43 = vsel %vm926_vm3, %v1351_v37, -inf }
 0x7da   : > { %1358 = vmax.xlane.f32.xlu1 %v1357_v43  ;;  %v2340_v43 = vld [vmem:[#allocation14 + $0x30] sm:$0xff]  }
 0x7db   : > { %v1360_v44 = vsel %vm926_vm3, %v1354_v40, -inf }
 0x7dc   : > { %1361 = vmax.xlane.f32.xlu0 %v1360_v44  ;;  %v2341_v44 = vld [vmem:[#allocation14 + $0x38] sm:$0xff]  }
 0x7e6   : > { %v1569_v45 = vpop.f32.mrb[20].mxu0 }
 0x7e7   : > { %v2178_v46 = vpop.f32.mrb[21].mxu0  ;;  %v1570_v51 = vadd.f32 %v3060_v47, %v1569_v45 }
 0x7e8   : > { %v1572_v48 = vpop.f32.mrb[22].mxu0 }
 0x7e9   : > { %v2179_v49 = vpop.f32.mrb[23].mxu0  ;;  %v1576_v52 = vsel %vm926_vm3, %v1570_v51, -inf  ;;  %v1573_v6 = vadd.f32 %v3060_v47, %v1572_v48 }
 0x7eb   : > { %1388 = vrot.lane.b32.xlu1 %v2334_v50, %s2643_s13  ;;  %v1579_v8 = vsel %vm926_vm3, %v1573_v6, -inf }
 0x80f   : > { %1577 = vmax.xlane.f32.xlu1 %v1576_v52 }
 0x867   : > { %v1359_v53 = vpop.xlane.xlu1 %1358 }
 0x868   : > { %v1363_v54 = vsub.f32 %v1351_v37, %v1359_v53 }
 0x869   : > { %v1362_v55 = vpop.xlane.xlu0 %1361 }
 0x86a   : > { %v1365_v56 = vmul.f32 1.442695, %v1363_v54  ;;  %v1364_v57 = vsub.f32 %v1354_v40, %v1362_v55 }
 0x86b   : > { %v1389_v58 = vpop.permute.xlu1 %1388 }
 0x86c   : > { %2358 = vpow2.f32 %v1365_v56  ;;  %v1367_v59 = vmul.f32 1.442695, %v1364_v57  ;;  %2157 = vmatpush3.bf16.msra.mxu1 %v1389_v58  ;;  %v1975_v57 = vld [vmem:[%s3276_s28] ss:$0 sm:$0xff] }
 0x86d   : > { %2158 = vmatprep.subr.bf16.mxu1 %v2640_v0 }
 0x86e   : > { %2360 = vpow2.f32 %v1367_v59 }
 0x876   : > { %v2359_v60 = vpop.eup %2358 }
 0x877   : > { %v1369_v61 = vsel %vm926_vm3, %v2359_v60, 0.0 }
 0x878   : > { %v2361_v62 = vpop.eup %2360  ;;  %1370 = vadd.xlane.f32.xlu0 %v1369_v61 }
 0x879   : > { %v1372_v63 = vsel %vm926_vm3, %v2361_v62, 0.0 }
 0x87c   : > { %1373 = vadd.xlane.f32.xlu0 %v1372_v63 }
 0x892   : > { %1390 = vrot.lane.b32.xlu0 %v2335_v1, %s2643_s13 }
 0x89c   : > { %v1578_v2 = vpop.xlane.xlu1 %1577 }
 0x89d   : > { %v1582_v3 = vsub.f32 %v1570_v51, %v1578_v2 }
 0x89f   : > { %v1584_v4 = vmul.f32 1.442695, %v1582_v3 }
 0x8a1   : > { %2362 = vpow2.f32 %v1584_v4 }
 0x8ab   : > { %v2363_v5 = vpop.eup %2362 }
 0x8ac   : > { %v1588_v7 = vsel %vm926_vm3, %v2363_v5, 0.0 }
 0x8ad   : > { %1589 = vadd.xlane.f32.xlu1 %v1588_v7 }
 0x8b1   : > { %1580 = vmax.xlane.f32.xlu0 %v1579_v8 }
 0x8be   : > { %1607 = vrot.lane.b32.xlu1 %v2336_v9, %s2644_s0 }
 0x905   : > { %v1371_v10 = vpop.xlane.xlu0 %1370 }
 0x906   : > { %2364 = vrcp.f32 %v1371_v10 }
 0x909   : > { %v1374_v11 = vpop.xlane.xlu0 %1373 }
 0x90a   : > { %2366 = vrcp.f32 %v1374_v11 }
 0x90d   : > { %v1391_v12 = vpop.permute.xlu0 %1390 }
 0x90e   : > { %v1397_v13 = vsel %vm962_vm4, %v1391_v12, 0 }
 0x90f   : > { %2159 = vmatpush3.bf16.msra.mxu1 %v1397_v13 }
 0x910   : > { %2164 = vmatprep.subr.bf16.mxu1 %v2640_v0  ;;  %v2365_v47 = vpop.eup %2364 }
 0x911   : > { %v1376_v14 = vmul.f32 %v2365_v47, %v2359_v60 }
 0x914   : > { %v2367_v41 = vpop.eup %2366 }
 0x915   : > { %v1378_v15 = vmul.f32 %v2367_v41, %v2361_v62 }
 0x917   : > { %v1379_v16 = vpack.c.bf16 %v1378_v15, %v1376_v14 }
 0x919   : > { %2161 = vmatmul.mubr.msk.bf16.vlgmr.msra.gmra.mrb[20].mxu1 %vm926_vm3, %v1379_v16 }
 0x91a   : > { %2168 = vmatprep.mubr.msk.bf16.mxu1 %vm2641_vm0, %v2640_v0  ;;  %2165 = vmatpush3.bf16.msra.mxu1 %v2338_v23 }
 0x91b   : > { %2166 = vmatprep.subr.bf16.mxu1 %v2640_v0 }
 0x91e   : > { %2167 = vmatpush3.bf16.msra.mxu1 %v2339_v24 }
 0x91f   : > { %2180 = vmatprep.subr.bf16.mxu1 %v2640_v0 }
 0x93a   : > { %v1590_v26 = vpop.xlane.xlu1 %1589 }
 0x93e   : > { %v1581_v17 = vpop.xlane.xlu0 %1580  ;;  %v1608_v35 = vpop.permute.xlu1 %1607 }
 0x93f   : > { %v1583_v18 = vsub.f32 %v1573_v6, %v1581_v17 }
 0x941   : > { %v1586_v19 = vmul.f32 1.442695, %v1583_v18 }
 0x943   : > { %2368 = vpow2.f32 %v1586_v19 }
 0x94d   : > { %v2369_v20 = vpop.eup %2368 }
 0x94e   : > { %v1591_v21 = vsel %vm926_vm3, %v2369_v20, 0.0 }
 0x94f   : > { %1592 = vadd.xlane.f32.xlu0 %v1591_v21 }
 0x965   : > { %1609 = vrot.lane.b32.xlu0 %v2337_v22, %s2644_s0 }
 0x9dc   : > { %v1593_v25 = vpop.xlane.xlu0 %1592 }
 0x9dd   : > { %2370 = vrcp.f32 %v1593_v25 }
 0x9de   : > { %2372 = vrcp.f32 %v1590_v26 }
 0x9e0   : > { %v1610_v37 = vpop.permute.xlu0 %1609 }
 0x9e1   : > { %v1616_v40 = vsel %vm962_vm4, %v1610_v37, 0 }
 0x9e7   : > { %v2371_v33 = vpop.eup %2370 }
 0x9e8   : > { %v2373_v36 = vpop.eup %2372  ;;  %v1597_v38 = vmul.f32 %v2371_v33, %v2369_v20 }
 0x9e9   : > { %v1595_v39 = vmul.f32 %v2373_v36, %v2363_v5 }
 0x9eb   : > { %v1598_v42 = vpack.c.bf16 %v1597_v38, %v1595_v39 }
 0x9ec   : > { %v1433_v27 = vpop.f32.mrb[20].mxu1 }
 0x9ed   : > { %v2162_v28 = vpop.f32.mrb[21].mxu1 }
 0x9ee   : > { %v1436_v29 = vpop.f32.mrb[22].mxu1 }
 0x9ef   : > { %v1440_v30 = vpack.c.bf16 %v1436_v29, %v1433_v27  ;;  %v2163_v32 = vpop.f32.mrb[23].mxu1 }
 0x9f1   : > { %2169 = vmatmul.mubr.msk.bf16.vlgmr.msra.gmra.mrb[24].mxu1 %vm875_vm2, %v1440_v30 }
 0x9f2   : > { %2181 = vmatpush3.bf16.msra.mxu1 %v1608_v35  ;;  %2184 = vmatprep.mubr.msk.bf16.mxu1 %vm2641_vm0, %v2640_v0 }
 0x9f3   : > { %2182 = vmatprep.subr.bf16.mxu1 %v2640_v0 }
 0x9f6   : > { %2183 = vmatpush3.bf16.msra.mxu1 %v1616_v40 }
 0x9f7   : > { %2188 = vmatprep.subr.bf16.mxu1 %v2640_v0 }
 0x9f9   : > { %2185 = vmatmul.mubr.msk.bf16.vlgmr.msra.gmra.mrb[28].mxu1 %vm926_vm3, %v1598_v42 }
 0x9fa   : > { %2192 = vmatprep.mubr.msk.bf16.mxu1 %vm2641_vm0, %v2640_v0  ;;  %2189 = vmatpush3.bf16.msra.mxu1 %v2340_v43 }
 0x9fb   : > { %2190 = vmatprep.subr.bf16.mxu1 %v2640_v0 }
 0x9fe   : > { %2191 = vmatpush3.bf16.msra.mxu1 %v2341_v44 }
 0xac4   : > { %v1495_v45 = vpop.f32.mrb[24].mxu1 }
 0xac5   : > { %v1502_v46 = vadd.f32 %v1495_v45, %v3131_v31  ;;  %v2170_v48 = vpop.f32.mrb[25].mxu1 }
 0xac6   : > { %v1498_v49 = vpop.f32.mrb[26].mxu1 }
 0xac7   : > { %v1503_v50 = vadd.f32 %v1498_v49, %v3133_v34  ;;  %v2171_v51 = vpop.f32.mrb[27].mxu1 }
 0xacc   : > { %v1652_v52 = vpop.f32.mrb[28].mxu1 }
 0xacd   : > { %v2186_v53 = vpop.f32.mrb[29].mxu1 }
 0xace   : > { %v1655_v54 = vpop.f32.mrb[30].mxu1 }
 0xacf   : > { %v1659_v55 = vpack.c.bf16 %v1655_v54, %v1652_v52  ;;  %v2187_v56 = vpop.f32.mrb[31].mxu1 }
 0xad1   : > { %2193 = vmatmul.mubr.msk.bf16.vlgmr.msra.gmra.mrb[32].mxu1 %vm875_vm2, %v1659_v55 }
 0xba4   : > { %v1714_v0 = vpop.f32.mrb[32].mxu1 }
 0xba5   : > { %v1721_v31 = vadd.f32 %v1714_v0, %v1502_v46  ;;  %v2194_v34 = vpop.f32.mrb[33].mxu1 }
 0xba6   : > { %v1717_v58 = vpop.f32.mrb[34].mxu1 }
 0xba7   : > { %v1730_v59 = vadd.f32 %v1975_v57, %v1721_v31  ;;  %v1722_v60 = vadd.f32 %v1717_v58, %v1503_v50  ;;  %v2195_v61 = vpop.f32.mrb[35].mxu1 }
 0xba9   : > { %1732 = vst [vmem:[%s513_s23] sm:$0xff] %v1730_v59  ;;  %v1731_v62 = vadd.f32 %v1975_v57, %v1722_v60 }
 0xbab   : > { %1733 = vst [vmem:[%s513_s23 + $0x8] sm:$0xff] %v1731_v62 }
 0xbac   : > { %2559 = shalt.err (!%p2556_p11)
}
 0xbad   : > { %s2560_s10 = scalar_lea.hbm %s3183_s14, 256  ;;  %s2564_s0 = scalar_lea.hbm %s3277_s8, 512 }
 0xbae   : > { %p2561_p7 = scmp.ne.s32.totalorder %s3183_s14, %s2560_s10  ;;  %p2565_p2 = scmp.lt.u32.totalorder %s3183_s14, %s3277_s8 }
 0xbaf   : > { %p2566_p13 = scmp.lt.u32.totalorder %s2564_s0, %s2560_s10  ;;  %p2568_p4 = scmp.lt.u32.totalorder %s2560_s10, %s3183_s14 }
 0xbb0   : > { %p2562_p12 = pnand %p2561_p7, %p2879_p10 }
 0xbb1   : > { %p2567_p0 = por %p2566_p13, %p2565_p2 }
 0xbb2   : > { %p2563_p1 = pneg %p2562_p12 }
 0xbb3   : > { %p2569_p6 = por %p2568_p4, %p2567_p0 }
 0xbb5   : > { %p2570_p3 = pnand %p2569_p6, %p2563_p1 }
 0xbb7   : > { %2573 = shalt.err (!%p2570_p3)
}
 0xbb8   : > { %s2646_s28 = smov 128   ;;  %s2647_s23 = smov 8  }
 0xbb9   : > { %2219 = dma.vmem_to_hbm [thread:$0]  (%p2879_p10), %s3178_s16, 256, %s3183_s14, %s1735_s15, %s2646_s28, %s2646_s28, %s2647_s23  }
 0xbba PF: > { %s3278_s11 = sld [smem:[#allocation23_spill]]  ;;  %s3279_s12 = sld [smem:[#allocation24_spill]] }
 0xbbb   : > { %p3281_p9 = scmp.ge.s32.totalorder %s2628_s20, 2 }
 0xbc0   : > { %s1763_s27 = sand.u32 1, %s3278_s11   ;;  %p3280_p5 = scmp.ne.s32.totalorder %s3279_s12, 0 }
 0xbc1   : > { %s1764_s3 = scalar_lea.sflag [#allocation7], %s1763_s27 }
 0xbc2   : > { %p2242_p8 = pnand %p3281_p9, %p3280_p5 }
 0xbc4   : > { %2611 = dma.done.wait (!%p2242_p8), %s1764_s3, 256  }
 0xbc5   : > { %2613 = vsyncadd (!%p2242_p8), %s1764_s3, 4294967040  ;;  %p29_p11 = scmp.ge.s32.totalorder %s2869_s24, 4   ;;  %s3282_s17 = smov %s2620_s18 }
 0xbc6   : > { %s3283_s18 = smov %s2624_s19  ;;  %s3284_s19 = smov %s2885_s22 }
 0xbc7   : > { %s3285_s20 = smov %s2869_s24  ;;  %31 = sbr.rel (!%p29_p11) target bundleno = 17 (0x11), region = 144 }
 0xbce   :  { %1769 = vsyncpa [#allocation6], 1 }
 0xbcf   :  { %1771 = vsyncpa [#allocation6 + $0x1], 1 }
 0xbd0   :  { %1772 = vsyncpa [#allocation9], 1 }
 0xbd1   :  { %1774 = vsyncpa [#allocation9 + $0x1], 1 }
 0xbd2   :  { %1775 = vsyncpa [#allocation12], 1 }
 0xbd3   :  { %1776 = vsyncpa [#allocation15], 1 }
 0xbd4   :  { %1777 = vsyncpa [#allocation7], 1 }
 0xbd5   :  { %1779 = vsyncpa [#allocation7 + $0x1], 1 }

</bundles_post_ra>
